<compile_context>
chip_gen: v7x
topology: tpu7x:2x2x1
jax: 0.10.0
libtpu: 0.0.40
codegen_flags: <defaults>
</compile_context>

<pallas_src>
import functools

import jax
import jax.numpy as jnp
from jax.experimental import pallas as pl
from jax.experimental.pallas import tpu as pltpu

_VMEM_LIMIT = 48 * 1024 * 1024   # headroom for double-buffered 512x2048 tiles
_N_ALIGN = 256                   # node-dim padding granularity


def _round_up(x, m):
    return ((x + m - 1) // m) * m


def _row_tile(n):
    """Row tile: <= 512, divides n, leaves >= 2 row tiles (v7x 2-TC sharding)."""
    for t in (512, 256, 128, 64, 32, 16, 8):
        if n % t == 0 and n // t >= 2:
            return t
    return n


def _red_tile(n):
    """Reduction tile along adj columns (big tiles -> fewer grid steps)."""
    for t in (2048, 1024, 512, 256, 128):
        if n % t == 0:
            return t
    return n


def _col_tile(n):
    """Output-column tile for dense matmuls with a large d_out."""
    for t in (512, 256, 128):
        if n % t == 0:
            return t
    return n


# ---------------------------------------------------------------------------
# Kernels
# ---------------------------------------------------------------------------
def _gcn_fused_kernel(adj_ref, x_ref, w_ref, o_ref, acc_ref, *, apply_relu):
    """o = maybe_relu((adj @ x) @ W).  Grid = (row tiles, reduction tiles)."""
    k = pl.program_id(1)

    @pl.when(k == 0)
    def _():
        acc_ref[...] = jnp.zeros_like(acc_ref)

    acc_ref[...] += jnp.dot(adj_ref[...], x_ref[...],
                            preferred_element_type=jnp.float32)

    @pl.when(k == pl.num_programs(1) - 1)
    def _():
        r = jnp.dot(acc_ref[...].astype(w_ref.dtype), w_ref[...],
                    preferred_element_type=jnp.float32)
        if apply_relu:
            r = jnp.maximum(r, 0.0)
        o_ref[...] = r.astype(o_ref.dtype)


def _adj_matmul_kernel(adj_ref, x_ref, o_ref, acc_ref):
    """o = adj @ x (no weight, no relu).  Grid = (row tiles, reduction tiles)."""
    k = pl.program_id(1)

    @pl.when(k == 0)
    def _():
        acc_ref[...] = jnp.zeros_like(acc_ref)

    acc_ref[...] += jnp.dot(adj_ref[...], x_ref[...],
                            preferred_element_type=jnp.float32)

    @pl.when(k == pl.num_programs(1) - 1)
    def _():
        o_ref[...] = acc_ref[...].astype(o_ref.dtype)


def _dense_matmul_kernel(x_ref, w_ref, o_ref, *, apply_relu):
    """o = maybe_relu(x @ w); reduction dim (small) whole, rows/cols tiled."""
    r = jnp.dot(x_ref[...], w_ref[...], preferred_element_type=jnp.float32)
    if apply_relu:
        r = jnp.maximum(r, 0.0)
    o_ref[...] = r.astype(o_ref.dtype)


def _mlp_softmax_kernel(z_ref, wt_ref, b_ref, o_ref):
    """probs = softmax(z @ w^T + b) over the last axis (torch dim=1)."""
    logits = jnp.dot(z_ref[...], wt_ref[...],
                     preferred_element_type=jnp.float32) + b_ref[...]
    m = jnp.max(logits, axis=-1, keepdims=True)
    e = jnp.exp(logits - m)
    o_ref[...] = (e / jnp.sum(e, axis=-1, keepdims=True)).astype(o_ref.dtype)


# ---------------------------------------------------------------------------
# Wrappers
# ---------------------------------------------------------------------------
def gcn_fused(adj_bf16, x_bf16, w, *, relu=True, out_dtype=jnp.bfloat16):
    """One GCN layer in a single pallas_call: maybe_relu((adj @ x) @ W)."""
    n = adj_bf16.shape[0]
    d_in = x_bf16.shape[1]
    d_out = w.shape[1]
    tm = _row_tile(n)
    tk = _red_tile(n)
    return pl.pallas_call(
        functools.partial(_gcn_fused_kernel, apply_relu=relu),
        out_shape=jax.ShapeDtypeStruct((n, d_out), out_dtype),
        grid_spec=pltpu.PrefetchScalarGridSpec(
            num_scalar_prefetch=0,
            grid=(n // tm, n // tk),
            in_specs=[pl.BlockSpec((tm, tk), lambda i, k: (i, k)),
                      pl.BlockSpec((tk, d_in), lambda i, k: (k, 0)),
                      pl.BlockSpec((d_in, d_out), lambda i, k: (0, 0))],
            out_specs=pl.BlockSpec((tm, d_out), lambda i, k: (i, 0)),
            scratch_shapes=[pltpu.VMEM((tm, d_in), jnp.float32)]),
        compiler_params=pltpu.CompilerParams(
            dimension_semantics=("parallel", "arbitrary"),
            vmem_limit_bytes=_VMEM_LIMIT),
    )(adj_bf16, x_bf16, w.astype(jnp.bfloat16))


def adj_matmul(adj_bf16, x_bf16, *, out_dtype=jnp.bfloat16):
    """t = adj @ x (shared adjacency pass for the merged decoder depth-3)."""
    n = adj_bf16.shape[0]
    d = x_bf16.shape[1]
    tm = _row_tile(n)
    tk = _red_tile(n)
    return pl.pallas_call(
        _adj_matmul_kernel,
        out_shape=jax.ShapeDtypeStruct((n, d), out_dtype),
        grid_spec=pltpu.PrefetchScalarGridSpec(
            num_scalar_prefetch=0,
            grid=(n // tm, n // tk),
            in_specs=[pl.BlockSpec((tm, tk), lambda i, k: (i, k)),
                      pl.BlockSpec((tk, d), lambda i, k: (k, 0))],
            out_specs=pl.BlockSpec((tm, d), lambda i, k: (i, 0)),
            scratch_shapes=[pltpu.VMEM((tm, d), jnp.float32)]),
        compiler_params=pltpu.CompilerParams(
            dimension_semantics=("parallel", "arbitrary"),
            vmem_limit_bytes=_VMEM_LIMIT),
    )(adj_bf16, x_bf16)


def dense_matmul(x, w, *, relu, out_dtype=jnp.float32):
    """out = maybe_relu(x @ w): small reduction dim, rows / output cols tiled."""
    mrows, d_in = x.shape
    d_out = w.shape[1]
    tm = _row_tile(mrows)
    tn = _col_tile(d_out)
    return pl.pallas_call(
        functools.partial(_dense_matmul_kernel, apply_relu=relu),
        out_shape=jax.ShapeDtypeStruct((mrows, d_out), out_dtype),
        grid_spec=pltpu.PrefetchScalarGridSpec(
            num_scalar_prefetch=0,
            grid=(mrows // tm, d_out // tn),
            in_specs=[pl.BlockSpec((tm, d_in), lambda i, j: (i, 0)),
                      pl.BlockSpec((d_in, tn), lambda i, j: (0, j))],
            out_specs=pl.BlockSpec((tm, tn), lambda i, j: (i, j))),
        compiler_params=pltpu.CompilerParams(
            dimension_semantics=("parallel", "parallel"),
            vmem_limit_bytes=_VMEM_LIMIT),
    )(x.astype(jnp.bfloat16), w.astype(jnp.bfloat16))


def mlp_softmax(z, w, b):
    n, d_in = z.shape
    clusters = w.shape[0]
    tm = _row_tile(n)
    wt = w.T.astype(jnp.bfloat16)                    # pre-transpose in wrapper
    b2d = b.reshape(1, clusters).astype(jnp.float32)
    return pl.pallas_call(
        _mlp_softmax_kernel,
        out_shape=jax.ShapeDtypeStruct((n, clusters), jnp.float32),
        grid_spec=pltpu.PrefetchScalarGridSpec(
            num_scalar_prefetch=0,
            grid=(n // tm,),
            in_specs=[pl.BlockSpec((tm, d_in), lambda i: (i, 0)),
                      pl.BlockSpec((d_in, clusters), lambda i: (0, 0)),
                      pl.BlockSpec((1, clusters), lambda i: (0, 0))],
            out_specs=pl.BlockSpec((tm, clusters), lambda i: (i, 0))),
        compiler_params=pltpu.CompilerParams(
            dimension_semantics=("parallel",),
            vmem_limit_bytes=_VMEM_LIMIT),
    )(z.astype(jnp.bfloat16), wt, b2d)


# ---------------------------------------------------------------------------
# GAE model (parameter container + forward composed of Pallas kernels)
# ---------------------------------------------------------------------------
def init_gae_params(key, input_dim, hidden_dim, clusters):
    n_nodes, feat_dim = input_dim
    h = hidden_dim
    hh = hidden_dim // 2

    def glorot(k, shape):
        fan_in, fan_out = shape
        limit = jnp.sqrt(6.0 / (fan_in + fan_out))
        return jax.random.uniform(k, shape, jnp.float32, -limit, limit)

    keys = jax.random.split(key, 11)
    return {
        "encoder_1": glorot(keys[0], (feat_dim, h)),
        "encoder_2": glorot(keys[1], (h, h)),
        "encoder_3": glorot(keys[2], (h, hh)),
        "decoder_1_X": glorot(keys[3], (hh, h)),
        "decoder_2_X": glorot(keys[4], (h, h)),
        "decoder_3_X": glorot(keys[5], (h, feat_dim)),
        "decoder_1_adj": glorot(keys[6], (hh, h)),
        "decoder_2_adj": glorot(keys[7], (h, h)),
        "decoder_3_adj": glorot(keys[8], (h, n_nodes)),
        "mlp1_w": glorot(keys[9], (clusters, hh)),     # nn.Linear weight (out, in)
        "mlp1_b": jax.random.uniform(keys[10], (clusters,), jnp.float32, -0.1, 0.1),
    }


@jax.jit
def gae_forward(params, X, adj):
    n, feat = X.shape
    h = params["decoder_1_X"].shape[1]

    # Pad the node dimension so adj tiles stay bounded (never a full-(N,N) block)
    # and the grid divides exactly; padded rows/cols are zero and sliced off.
    pad = (-n) % _N_ALIGN
    np_ = n + pad
    if pad:
        X = jnp.pad(X, ((0, pad), (0, 0)))
        adj = jnp.pad(adj, ((0, pad), (0, pad)))

    adj_bf = adj.astype(jnp.bfloat16)      # cast once; reused by all 6 adj passes
    x_bf = X.astype(jnp.bfloat16)

    # --- encoder (3 fused GCN layers, bf16 intermediates) ---------------------
    z = gcn_fused(adj_bf, x_bf, params["encoder_1"])
    z = gcn_fused(adj_bf, z, params["encoder_2"])
    z = gcn_fused(adj_bf, z, params["encoder_3"])               # (Np, h//2) bf16

    # --- decoder depth 1: both branches read z -> one adj pass, concat weights
    w1 = jnp.concatenate([params["decoder_1_X"], params["decoder_1_adj"]], axis=1)
    d1 = gcn_fused(adj_bf, z, w1)                               # (Np, 2h) bf16

    # --- decoder depth 2: block-diagonal weight keeps the branches independent
    w2x, w2a = params["decoder_2_X"], params["decoder_2_adj"]
    zeros = jnp.zeros_like(w2x)
    w2 = jnp.concatenate(
        [jnp.concatenate([w2x, zeros], axis=1),
         jnp.concatenate([zeros, w2a], axis=1)], axis=0)        # (2h, 2h)
    d2 = gcn_fused(adj_bf, d1, w2)                              # (Np, 2h) bf16

    # --- decoder depth 3: ONE shared adjacency pass, then two dense matmuls ---
    t = adj_matmul(adj_bf, d2)                                  # (Np, 2h) bf16
    z_X = dense_matmul(t[:, :h], params["decoder_3_X"], relu=True)       # (Np, F)
    w3a = params["decoder_3_adj"]
    if pad:
        w3a = jnp.pad(w3a, ((0, 0), (0, pad)))
    z_adj = dense_matmul(t[:, h:], w3a, relu=True)              # (Np, Np)

    # --- clustering head -------------------------------------------------------
    probabilities = mlp_softmax(z, params["mlp1_w"], params["mlp1_b"])

    return z_X[:n, :feat], z_adj[:n, :n], probabilities[:n]


# ---------------------------------------------------------------------------
# Pure-JAX f32 reference (for a loose numerical check of the bf16 kernels)
# ---------------------------------------------------------------------------
def _ref_forward(params, X, adj):
    def gcn(x, w):
        return jax.nn.relu(adj @ (x @ w))
    z = gcn(X, params["encoder_1"])
    z = gcn(z, params["encoder_2"])
    z = gcn(z, params["encoder_3"])
    zx = gcn(z, params["decoder_1_X"])
    zx = gcn(zx, params["decoder_2_X"])
    zx = gcn(zx, params["decoder_3_X"])
    za = gcn(z, params["decoder_1_adj"])
    za = gcn(za, params["decoder_2_adj"])
    za = gcn(za, params["decoder_3_adj"])
    probs = jax.nn.softmax(z @ params["mlp1_w"].T + params["mlp1_b"], axis=1)
    return zx, za, probs


def _close(a, b, tol=0.1):
    scale = max(float(jnp.max(jnp.abs(b))), 1.0)
    return float(jnp.max(jnp.abs(a - b))) <= tol * scale


# ---------------------------------------------------------------------------
# Demo
# ---------------------------------------------------------------------------
if __name__ == "__main__":
    key = jax.random.PRNGKey(0)
    k_x, k_a, k_p = jax.random.split(key, 3)

    # small, deterministic example shapes (2h = 128 -> lane-dense decoder passes)
    N_NODES, FEAT_DIM = 32, 16          # input_dim = (32, 16)
    HIDDEN_DIM = 64
    CLUSTERS = 4

    X = jax.random.normal(k_x, (N_NODES, FEAT_DIM), jnp.float32)

    # symmetric, row-normalized adjacency with self-loops
    A = (jax.random.uniform(k_a, (N_NODES, N_NODES)) < 0.2).astype(jnp.float32)
    A = jnp.maximum(A, A.T) + jnp.eye(N_NODES, dtype=jnp.float32)
    deg = jnp.sum(A, axis=1, keepdims=True)
    adj = A / deg

    params = init_gae_params(k_p, (N_NODES, FEAT_DIM), HIDDEN_DIM, CLUSTERS)

    z_X, z_adj, probs = gae_forward(params, X, adj)
    jax.block_until_ready((z_X, z_adj, probs))

    assert z_X.shape == (N_NODES, FEAT_DIM)
    assert z_adj.shape == (N_NODES, N_NODES)
    assert probs.shape == (N_NODES, CLUSTERS)
    # exact f32 divide in the softmax -> tight sum-to-one
    assert jnp.allclose(jnp.sum(probs, axis=1), 1.0, atol=1e-4)

    # loose check against an f32 reference (bf16 MXU operands -> ~1% scale error)
    r_zx, r_za, r_p = _ref_forward(params, X, adj)
    assert _close(z_X, r_zx)
    assert _close(z_adj, r_za)
    assert _close(probs, r_p)

    print("KERNEL_OK")
</pallas_src>

<mosaic_0001>
module attributes {stable_mosaic.version = 11 : i64} {
  func.func @_gcn_fused_kernel(%arg0: i32, %arg1: i32, %arg2: memref<128x256xbf16, #tpu.memory_space<vmem>>, %arg3: memref<256x64xbf16, #tpu.memory_space<vmem>>, %arg4: memref<64x64xbf16, #tpu.memory_space<vmem>>, %arg5: memref<128x64xbf16, #tpu.memory_space<vmem>>, %arg6: memref<128x64xf32, #tpu.memory_space<vmem>>) attributes {dimension_semantics = [#tpu.dimension_semantics<parallel>, #tpu.dimension_semantics<arbitrary>], iteration_bounds = array<i64: 2, 1>, scalar_prefetch = 0 : i64, scratch_operands = 1 : i64, tpu.core_type = #tpu.core_type<tc>, window_params = [{transform_indices = @transform_0, window_bounds = array<i64: 128, 256>}, {transform_indices = @transform_1, window_bounds = array<i64: 256, 64>}, {pipeline_mode = #tpu.pipeline_mode<synchronous>, transform_indices = @transform_2, window_bounds = array<i64: 64, 64>}, {transform_indices = @transform_3, window_bounds = array<i64: 128, 64>}]} {
    %c0_i32 = arith.constant 0 : i32
    %0 = arith.cmpi eq, %arg1, %c0_i32 : i32
    %1 = arith.extui %0 : i1 to i32
    %c0_i32_0 = arith.constant 0 : i32
    %2 = arith.cmpi ne, %1, %c0_i32_0 : i32
    scf.if %2 {
      %cst_10 = arith.constant 0.000000e+00 : f32
      %12 = vector.broadcast %cst_10 : f32 to vector<128x64xf32>
      %c0_11 = arith.constant 0 : index
      %c0_12 = arith.constant 0 : index
      %13 = vector.load %arg6[%c0_11, %c0_12] : memref<128x64xf32, #tpu.memory_space<vmem>>, vector<128x64xf32>
      tpu.vector_store %arg6[%c0_11, %c0_12], %12 {strides = array<i32>} : memref<128x64xf32, #tpu.memory_space<vmem>>, vector<128x64xf32>,
    } else {
    }
    %c0 = arith.constant 0 : index
    %c0_1 = arith.constant 0 : index
    %3 = vector.load %arg6[%c0, %c0_1] : memref<128x64xf32, #tpu.memory_space<vmem>>, vector<128x64xf32>
    %c0_2 = arith.constant 0 : index
    %c0_3 = arith.constant 0 : index
    %4 = vector.load %arg2[%c0_2, %c0_3] : memref<128x256xbf16, #tpu.memory_space<vmem>>, vector<128x256xbf16>
    %c0_4 = arith.constant 0 : index
    %c0_5 = arith.constant 0 : index
    %5 = vector.load %arg3[%c0_4, %c0_5] : memref<256x64xbf16, #tpu.memory_space<vmem>>, vector<256x64xbf16>
    %cst = arith.constant dense<0.000000e+00> : vector<128x64xf32>
    %6 = tpu.matmul %4, %5, %cst {dimension_numbers = #tpu.dot_dimension_numbers<[1], [0], [0], [1], [0, 0, 1, 1], [], []>} : vector<128x256xbf16>, vector<256x64xbf16>, vector<128x64xf32> -> vector<128x64xf32>
    %7 = arith.addf %3, %6 : vector<128x64xf32>
    %c0_6 = arith.constant 0 : index
    %c0_7 = arith.constant 0 : index
    %8 = vector.load %arg6[%c0_6, %c0_7] : memref<128x64xf32, #tpu.memory_space<vmem>>, vector<128x64xf32>
    tpu.vector_store %arg6[%c0_6, %c0_7], %7 {strides = array<i32>} : memref<128x64xf32, #tpu.memory_space<vmem>>, vector<128x64xf32>,
    %c0_i32_8 = arith.constant 0 : i32
    %9 = arith.cmpi eq, %arg1, %c0_i32_8 : i32
    %10 = arith.extui %9 : i1 to i32
    %c0_i32_9 = arith.constant 0 : i32
    %11 = arith.cmpi ne, %10, %c0_i32_9 : i32
    scf.if %11 {
      %c0_10 = arith.constant 0 : index
      %c0_11 = arith.constant 0 : index
      %12 = vector.load %arg6[%c0_10, %c0_11] : memref<128x64xf32, #tpu.memory_space<vmem>>, vector<128x64xf32>
      %13 = arith.truncf %12 : vector<128x64xf32> to vector<128x64xbf16>
      %c0_12 = arith.constant 0 : index
      %c0_13 = arith.constant 0 : index
      %14 = vector.load %arg4[%c0_12, %c0_13] : memref<64x64xbf16, #tpu.memory_space<vmem>>, vector<64x64xbf16>
      %cst_14 = arith.constant dense<0.000000e+00> : vector<128x64xf32>
      %15 = tpu.matmul %13, %14, %cst_14 {dimension_numbers = #tpu.dot_dimension_numbers<[1], [0], [0], [1], [0, 0, 1, 1], [], []>} : vector<128x64xbf16>, vector<64x64xbf16>, vector<128x64xf32> -> vector<128x64xf32>
      %cst_15 = arith.constant 0.000000e+00 : f32
      %16 = vector.broadcast %cst_15 : f32 to vector<128x64xf32>
      %17 = arith.maximumf %15, %16 : vector<128x64xf32>
      %18 = arith.truncf %17 : vector<128x64xf32> to vector<128x64xbf16>
      %c0_16 = arith.constant 0 : index
      %c0_17 = arith.constant 0 : index
      %19 = vector.load %arg5[%c0_16, %c0_17] : memref<128x64xbf16, #tpu.memory_space<vmem>>, vector<128x64xbf16>
      tpu.vector_store %arg5[%c0_16, %c0_17], %18 {strides = array<i32>} : memref<128x64xbf16, #tpu.memory_space<vmem>>, vector<128x64xbf16>,
    } else {
    }
    return
  }
  func.func @transform_0(%arg0: i32, %arg1: i32) -> (i32, i32) {
    %c0_i32 = arith.constant 0 : i32
    return %arg0, %arg1 : i32, i32
  }
  func.func @transform_1(%arg0: i32, %arg1: i32) -> (i32, i32) {
    %c0_i32 = arith.constant 0 : i32
    %c0_i32_0 = arith.constant 0 : i32
    return %arg1, %c0_i32 : i32, i32
  }
  func.func @transform_2(%arg0: i32, %arg1: i32) -> (i32, i32) {
    %c0_i32 = arith.constant 0 : i32
    %c0_i32_0 = arith.constant 0 : i32
    %c0_i32_1 = arith.constant 0 : i32
    return %c0_i32, %c0_i32_0 : i32, i32
  }
  func.func @transform_3(%arg0: i32, %arg1: i32) -> (i32, i32) {
    %c0_i32 = arith.constant 0 : i32
    %c0_i32_0 = arith.constant 0 : i32
    return %arg0, %c0_i32 : i32, i32
  }
}

module attributes {stable_mosaic.version = 11 : i64} {
  func.func @_gcn_fused_kernel(%arg0: i32, %arg1: i32, %arg2: memref<128x256xbf16, #tpu.memory_space<vmem>>, %arg3: memref<256x64xbf16, #tpu.memory_space<vmem>>, %arg4: memref<64x32xbf16, #tpu.memory_space<vmem>>, %arg5: memref<128x32xbf16, #tpu.memory_space<vmem>>, %arg6: memref<128x64xf32, #tpu.memory_space<vmem>>) attributes {dimension_semantics = [#tpu.dimension_semantics<parallel>, #tpu.dimension_semantics<arbitrary>], iteration_bounds = array<i64: 2, 1>, scalar_prefetch = 0 : i64, scratch_operands = 1 : i64, tpu.core_type = #tpu.core_type<tc>, window_params = [{transform_indices = @transform_0, window_bounds = array<i64: 128, 256>}, {transform_indices = @transform_1, window_bounds = array<i64: 256, 64>}, {pipeline_mode = #tpu.pipeline_mode<synchronous>, transform_indices = @transform_2, window_bounds = array<i64: 64, 32>}, {transform_indices = @transform_3, window_bounds = array<i64: 128, 32>}]} {
    %c0_i32 = arith.constant 0 : i32
    %0 = arith.cmpi eq, %arg1, %c0_i32 : i32
    %1 = arith.extui %0 : i1 to i32
    %c0_i32_0 = arith.constant 0 : i32
    %2 = arith.cmpi ne, %1, %c0_i32_0 : i32
    scf.if %2 {
      %cst_10 = arith.constant 0.000000e+00 : f32
      %12 = vector.broadcast %cst_10 : f32 to vector<128x64xf32>
      %c0_11 = arith.constant 0 : index
      %c0_12 = arith.constant 0 : index
      %13 = vector.load %arg6[%c0_11, %c0_12] : memref<128x64xf32, #tpu.memory_space<vmem>>, vector<128x64xf32>
      tpu.vector_store %arg6[%c0_11, %c0_12], %12 {strides = array<i32>} : memref<128x64xf32, #tpu.memory_space<vmem>>, vector<128x64xf32>,
    } else {
    }
    %c0 = arith.constant 0 : index
    %c0_1 = arith.constant 0 : index
    %3 = vector.load %arg6[%c0, %c0_1] : memref<128x64xf32, #tpu.memory_space<vmem>>, vector<128x64xf32>
    %c0_2 = arith.constant 0 : index
    %c0_3 = arith.constant 0 : index
    %4 = vector.load %arg2[%c0_2, %c0_3] : memref<128x256xbf16, #tpu.memory_space<vmem>>, vector<128x256xbf16>
    %c0_4 = arith.constant 0 : index
    %c0_5 = arith.constant 0 : index
    %5 = vector.load %arg3[%c0_4, %c0_5] : memref<256x64xbf16, #tpu.memory_space<vmem>>, vector<256x64xbf16>
    %cst = arith.constant dense<0.000000e+00> : vector<128x64xf32>
    %6 = tpu.matmul %4, %5, %cst {dimension_numbers = #tpu.dot_dimension_numbers<[1], [0], [0], [1], [0, 0, 1, 1], [], []>} : vector<128x256xbf16>, vector<256x64xbf16>, vector<128x64xf32> -> vector<128x64xf32>
    %7 = arith.addf %3, %6 : vector<128x64xf32>
    %c0_6 = arith.constant 0 : index
    %c0_7 = arith.constant 0 : index
    %8 = vector.load %arg6[%c0_6, %c0_7] : memref<128x64xf32, #tpu.memory_space<vmem>>, vector<128x64xf32>
    tpu.vector_store %arg6[%c0_6, %c0_7], %7 {strides = array<i32>} : memref<128x64xf32, #tpu.memory_space<vmem>>, vector<128x64xf32>,
    %c0_i32_8 = arith.constant 0 : i32
    %9 = arith.cmpi eq, %arg1, %c0_i32_8 : i32
    %10 = arith.extui %9 : i1 to i32
    %c0_i32_9 = arith.constant 0 : i32
    %11 = arith.cmpi ne, %10, %c0_i32_9 : i32
    scf.if %11 {
      %c0_10 = arith.constant 0 : index
      %c0_11 = arith.constant 0 : index
      %12 = vector.load %arg6[%c0_10, %c0_11] : memref<128x64xf32, #tpu.memory_space<vmem>>, vector<128x64xf32>
      %13 = arith.truncf %12 : vector<128x64xf32> to vector<128x64xbf16>
      %c0_12 = arith.constant 0 : index
      %c0_13 = arith.constant 0 : index
      %14 = vector.load %arg4[%c0_12, %c0_13] : memref<64x32xbf16, #tpu.memory_space<vmem>>, vector<64x32xbf16>
      %cst_14 = arith.constant dense<0.000000e+00> : vector<128x32xf32>
      %15 = tpu.matmul %13, %14, %cst_14 {dimension_numbers = #tpu.dot_dimension_numbers<[1], [0], [0], [1], [0, 0, 1, 1], [], []>} : vector<128x64xbf16>, vector<64x32xbf16>, vector<128x32xf32> -> vector<128x32xf32>
      %cst_15 = arith.constant 0.000000e+00 : f32
      %16 = vector.broadcast %cst_15 : f32 to vector<128x32xf32>
      %17 = arith.maximumf %15, %16 : vector<128x32xf32>
      %18 = arith.truncf %17 : vector<128x32xf32> to vector<128x32xbf16>
      %c0_16 = arith.constant 0 : index
      %c0_17 = arith.constant 0 : index
      %19 = vector.load %arg5[%c0_16, %c0_17] : memref<128x32xbf16, #tpu.memory_space<vmem>>, vector<128x32xbf16>
      tpu.vector_store %arg5[%c0_16, %c0_17], %18 {strides = array<i32>} : memref<128x32xbf16, #tpu.memory_space<vmem>>, vector<128x32xbf16>,
    } else {
    }
    return
  }
  func.func @transform_0(%arg0: i32, %arg1: i32) -> (i32, i32) {
    %c0_i32 = arith.constant 0 : i32
    return %arg0, %arg1 : i32, i32
  }
  func.func @transform_1(%arg0: i32, %arg1: i32) -> (i32, i32) {
    %c0_i32 = arith.constant 0 : i32
    %c0_i32_0 = arith.constant 0 : i32
    return %arg1, %c0_i32 : i32, i32
  }
  func.func @transform_2(%arg0: i32, %arg1: i32) -> (i32, i32) {
    %c0_i32 = arith.constant 0 : i32
    %c0_i32_0 = arith.constant 0 : i32
    %c0_i32_1 = arith.constant 0 : i32
    return %c0_i32, %c0_i32_0 : i32, i32
  }
  func.func @transform_3(%arg0: i32, %arg1: i32) -> (i32, i32) {
    %c0_i32 = arith.constant 0 : i32
    %c0_i32_0 = arith.constant 0 : i32
    return %arg0, %c0_i32 : i32, i32
  }
}

module attributes {stable_mosaic.version = 11 : i64} {
  func.func @_gcn_fused_kernel(%arg0: i32, %arg1: i32, %arg2: memref<128x256xbf16, #tpu.memory_space<vmem>>, %arg3: memref<256x32xbf16, #tpu.memory_space<vmem>>, %arg4: memref<32x128xbf16, #tpu.memory_space<vmem>>, %arg5: memref<128x128xbf16, #tpu.memory_space<vmem>>, %arg6: memref<128x32xf32, #tpu.memory_space<vmem>>) attributes {dimension_semantics = [#tpu.dimension_semantics<parallel>, #tpu.dimension_semantics<arbitrary>], iteration_bounds = array<i64: 2, 1>, scalar_prefetch = 0 : i64, scratch_operands = 1 : i64, tpu.core_type = #tpu.core_type<tc>, window_params = [{transform_indices = @transform_0, window_bounds = array<i64: 128, 256>}, {transform_indices = @transform_1, window_bounds = array<i64: 256, 32>}, {pipeline_mode = #tpu.pipeline_mode<synchronous>, transform_indices = @transform_2, window_bounds = array<i64: 32, 128>}, {transform_indices = @transform_3, window_bounds = array<i64: 128, 128>}]} {
    %c0_i32 = arith.constant 0 : i32
    %0 = arith.cmpi eq, %arg1, %c0_i32 : i32
    %1 = arith.extui %0 : i1 to i32
    %c0_i32_0 = arith.constant 0 : i32
    %2 = arith.cmpi ne, %1, %c0_i32_0 : i32
    scf.if %2 {
      %cst_10 = arith.constant 0.000000e+00 : f32
      %12 = vector.broadcast %cst_10 : f32 to vector<128x32xf32>
      %c0_11 = arith.constant 0 : index
      %c0_12 = arith.constant 0 : index
      %13 = vector.load %arg6[%c0_11, %c0_12] : memref<128x32xf32, #tpu.memory_space<vmem>>, vector<128x32xf32>
      tpu.vector_store %arg6[%c0_11, %c0_12], %12 {strides = array<i32>} : memref<128x32xf32, #tpu.memory_space<vmem>>, vector<128x32xf32>,
    } else {
    }
    %c0 = arith.constant 0 : index
    %c0_1 = arith.constant 0 : index
    %3 = vector.load %arg6[%c0, %c0_1] : memref<128x32xf32, #tpu.memory_space<vmem>>, vector<128x32xf32>
    %c0_2 = arith.constant 0 : index
    %c0_3 = arith.constant 0 : index
    %4 = vector.load %arg2[%c0_2, %c0_3] : memref<128x256xbf16, #tpu.memory_space<vmem>>, vector<128x256xbf16>
    %c0_4 = arith.constant 0 : index
    %c0_5 = arith.constant 0 : index
    %5 = vector.load %arg3[%c0_4, %c0_5] : memref<256x32xbf16, #tpu.memory_space<vmem>>, vector<256x32xbf16>
    %cst = arith.constant dense<0.000000e+00> : vector<128x32xf32>
    %6 = tpu.matmul %4, %5, %cst {dimension_numbers = #tpu.dot_dimension_numbers<[1], [0], [0], [1], [0, 0, 1, 1], [], []>} : vector<128x256xbf16>, vector<256x32xbf16>, vector<128x32xf32> -> vector<128x32xf32>
    %7 = arith.addf %3, %6 : vector<128x32xf32>
    %c0_6 = arith.constant 0 : index
    %c0_7 = arith.constant 0 : index
    %8 = vector.load %arg6[%c0_6, %c0_7] : memref<128x32xf32, #tpu.memory_space<vmem>>, vector<128x32xf32>
    tpu.vector_store %arg6[%c0_6, %c0_7], %7 {strides = array<i32>} : memref<128x32xf32, #tpu.memory_space<vmem>>, vector<128x32xf32>,
    %c0_i32_8 = arith.constant 0 : i32
    %9 = arith.cmpi eq, %arg1, %c0_i32_8 : i32
    %10 = arith.extui %9 : i1 to i32
    %c0_i32_9 = arith.constant 0 : i32
    %11 = arith.cmpi ne, %10, %c0_i32_9 : i32
    scf.if %11 {
      %c0_10 = arith.constant 0 : index
      %c0_11 = arith.constant 0 : index
      %12 = vector.load %arg6[%c0_10, %c0_11] : memref<128x32xf32, #tpu.memory_space<vmem>>, vector<128x32xf32>
      %13 = arith.truncf %12 : vector<128x32xf32> to vector<128x32xbf16>
      %c0_12 = arith.constant 0 : index
      %c0_13 = arith.constant 0 : index
      %14 = vector.load %arg4[%c0_12, %c0_13] : memref<32x128xbf16, #tpu.memory_space<vmem>>, vector<32x128xbf16>
      %cst_14 = arith.constant dense<0.000000e+00> : vector<128x128xf32>
      %15 = tpu.matmul %13, %14, %cst_14 {dimension_numbers = #tpu.dot_dimension_numbers<[1], [0], [0], [1], [0, 0, 1, 1], [], []>} : vector<128x32xbf16>, vector<32x128xbf16>, vector<128x128xf32> -> vector<128x128xf32>
      %cst_15 = arith.constant 0.000000e+00 : f32
      %16 = vector.broadcast %cst_15 : f32 to vector<128x128xf32>
      %17 = arith.maximumf %15, %16 : vector<128x128xf32>
      %18 = arith.truncf %17 : vector<128x128xf32> to vector<128x128xbf16>
      %c0_16 = arith.constant 0 : index
      %c0_17 = arith.constant 0 : index
      %19 = vector.load %arg5[%c0_16, %c0_17] : memref<128x128xbf16, #tpu.memory_space<vmem>>, vector<128x128xbf16>
      tpu.vector_store %arg5[%c0_16, %c0_17], %18 {strides = array<i32>} : memref<128x128xbf16, #tpu.memory_space<vmem>>, vector<128x128xbf16>,
    } else {
    }
    return
  }
  func.func @transform_0(%arg0: i32, %arg1: i32) -> (i32, i32) {
    %c0_i32 = arith.constant 0 : i32
    return %arg0, %arg1 : i32, i32
  }
  func.func @transform_1(%arg0: i32, %arg1: i32) -> (i32, i32) {
    %c0_i32 = arith.constant 0 : i32
    %c0_i32_0 = arith.constant 0 : i32
    return %arg1, %c0_i32 : i32, i32
  }
  func.func @transform_2(%arg0: i32, %arg1: i32) -> (i32, i32) {
    %c0_i32 = arith.constant 0 : i32
    %c0_i32_0 = arith.constant 0 : i32
    %c0_i32_1 = arith.constant 0 : i32
    return %c0_i32, %c0_i32_0 : i32, i32
  }
  func.func @transform_3(%arg0: i32, %arg1: i32) -> (i32, i32) {
    %c0_i32 = arith.constant 0 : i32
    %c0_i32_0 = arith.constant 0 : i32
    return %arg0, %c0_i32 : i32, i32
  }
}

module attributes {stable_mosaic.version = 11 : i64} {
  func.func @_gcn_fused_kernel(%arg0: i32, %arg1: i32, %arg2: memref<128x256xbf16, #tpu.memory_space<vmem>>, %arg3: memref<256x16xbf16, #tpu.memory_space<vmem>>, %arg4: memref<16x64xbf16, #tpu.memory_space<vmem>>, %arg5: memref<128x64xbf16, #tpu.memory_space<vmem>>, %arg6: memref<128x16xf32, #tpu.memory_space<vmem>>) attributes {dimension_semantics = [#tpu.dimension_semantics<parallel>, #tpu.dimension_semantics<arbitrary>], iteration_bounds = array<i64: 2, 1>, scalar_prefetch = 0 : i64, scratch_operands = 1 : i64, tpu.core_type = #tpu.core_type<tc>, window_params = [{transform_indices = @transform_0, window_bounds = array<i64: 128, 256>}, {transform_indices = @transform_1, window_bounds = array<i64: 256, 16>}, {pipeline_mode = #tpu.pipeline_mode<synchronous>, transform_indices = @transform_2, window_bounds = array<i64: 16, 64>}, {transform_indices = @transform_3, window_bounds = array<i64: 128, 64>}]} {
    %c0_i32 = arith.constant 0 : i32
    %0 = arith.cmpi eq, %arg1, %c0_i32 : i32
    %1 = arith.extui %0 : i1 to i32
    %c0_i32_0 = arith.constant 0 : i32
    %2 = arith.cmpi ne, %1, %c0_i32_0 : i32
    scf.if %2 {
      %cst_10 = arith.constant 0.000000e+00 : f32
      %12 = vector.broadcast %cst_10 : f32 to vector<128x16xf32>
      %c0_11 = arith.constant 0 : index
      %c0_12 = arith.constant 0 : index
      %13 = vector.load %arg6[%c0_11, %c0_12] : memref<128x16xf32, #tpu.memory_space<vmem>>, vector<128x16xf32>
      tpu.vector_store %arg6[%c0_11, %c0_12], %12 {strides = array<i32>} : memref<128x16xf32, #tpu.memory_space<vmem>>, vector<128x16xf32>,
    } else {
    }
    %c0 = arith.constant 0 : index
    %c0_1 = arith.constant 0 : index
    %3 = vector.load %arg6[%c0, %c0_1] : memref<128x16xf32, #tpu.memory_space<vmem>>, vector<128x16xf32>
    %c0_2 = arith.constant 0 : index
    %c0_3 = arith.constant 0 : index
    %4 = vector.load %arg2[%c0_2, %c0_3] : memref<128x256xbf16, #tpu.memory_space<vmem>>, vector<128x256xbf16>
    %c0_4 = arith.constant 0 : index
    %c0_5 = arith.constant 0 : index
    %5 = vector.load %arg3[%c0_4, %c0_5] : memref<256x16xbf16, #tpu.memory_space<vmem>>, vector<256x16xbf16>
    %cst = arith.constant dense<0.000000e+00> : vector<128x16xf32>
    %6 = tpu.matmul %4, %5, %cst {dimension_numbers = #tpu.dot_dimension_numbers<[1], [0], [0], [1], [0, 0, 1, 1], [], []>} : vector<128x256xbf16>, vector<256x16xbf16>, vector<128x16xf32> -> vector<128x16xf32>
    %7 = arith.addf %3, %6 : vector<128x16xf32>
    %c0_6 = arith.constant 0 : index
    %c0_7 = arith.constant 0 : index
    %8 = vector.load %arg6[%c0_6, %c0_7] : memref<128x16xf32, #tpu.memory_space<vmem>>, vector<128x16xf32>
    tpu.vector_store %arg6[%c0_6, %c0_7], %7 {strides = array<i32>} : memref<128x16xf32, #tpu.memory_space<vmem>>, vector<128x16xf32>,
    %c0_i32_8 = arith.constant 0 : i32
    %9 = arith.cmpi eq, %arg1, %c0_i32_8 : i32
    %10 = arith.extui %9 : i1 to i32
    %c0_i32_9 = arith.constant 0 : i32
    %11 = arith.cmpi ne, %10, %c0_i32_9 : i32
    scf.if %11 {
      %c0_10 = arith.constant 0 : index
      %c0_11 = arith.constant 0 : index
      %12 = vector.load %arg6[%c0_10, %c0_11] : memref<128x16xf32, #tpu.memory_space<vmem>>, vector<128x16xf32>
      %13 = arith.truncf %12 : vector<128x16xf32> to vector<128x16xbf16>
      %c0_12 = arith.constant 0 : index
      %c0_13 = arith.constant 0 : index
      %14 = vector.load %arg4[%c0_12, %c0_13] : memref<16x64xbf16, #tpu.memory_space<vmem>>, vector<16x64xbf16>
      %cst_14 = arith.constant dense<0.000000e+00> : vector<128x64xf32>
      %15 = tpu.matmul %13, %14, %cst_14 {dimension_numbers = #tpu.dot_dimension_numbers<[1], [0], [0], [1], [0, 0, 1, 1], [], []>} : vector<128x16xbf16>, vector<16x64xbf16>, vector<128x64xf32> -> vector<128x64xf32>
      %cst_15 = arith.constant 0.000000e+00 : f32
      %16 = vector.broadcast %cst_15 : f32 to vector<128x64xf32>
      %17 = arith.maximumf %15, %16 : vector<128x64xf32>
      %18 = arith.truncf %17 : vector<128x64xf32> to vector<128x64xbf16>
      %c0_16 = arith.constant 0 : index
      %c0_17 = arith.constant 0 : index
      %19 = vector.load %arg5[%c0_16, %c0_17] : memref<128x64xbf16, #tpu.memory_space<vmem>>, vector<128x64xbf16>
      tpu.vector_store %arg5[%c0_16, %c0_17], %18 {strides = array<i32>} : memref<128x64xbf16, #tpu.memory_space<vmem>>, vector<128x64xbf16>,
    } else {
    }
    return
  }
  func.func @transform_0(%arg0: i32, %arg1: i32) -> (i32, i32) {
    %c0_i32 = arith.constant 0 : i32
    return %arg0, %arg1 : i32, i32
  }
  func.func @transform_1(%arg0: i32, %arg1: i32) -> (i32, i32) {
    %c0_i32 = arith.constant 0 : i32
    %c0_i32_0 = arith.constant 0 : i32
    return %arg1, %c0_i32 : i32, i32
  }
  func.func @transform_2(%arg0: i32, %arg1: i32) -> (i32, i32) {
    %c0_i32 = arith.constant 0 : i32
    %c0_i32_0 = arith.constant 0 : i32
    %c0_i32_1 = arith.constant 0 : i32
    return %c0_i32, %c0_i32_0 : i32, i32
  }
  func.func @transform_3(%arg0: i32, %arg1: i32) -> (i32, i32) {
    %c0_i32 = arith.constant 0 : i32
    %c0_i32_0 = arith.constant 0 : i32
    return %arg0, %c0_i32 : i32, i32
  }
}

module attributes {stable_mosaic.version = 11 : i64} {
  func.func @_adj_matmul_kernel(%arg0: i32, %arg1: i32, %arg2: memref<128x256xbf16, #tpu.memory_space<vmem>>, %arg3: memref<256x128xbf16, #tpu.memory_space<vmem>>, %arg4: memref<128x128xbf16, #tpu.memory_space<vmem>>, %arg5: memref<128x128xf32, #tpu.memory_space<vmem>>) attributes {dimension_semantics = [#tpu.dimension_semantics<parallel>, #tpu.dimension_semantics<arbitrary>], iteration_bounds = array<i64: 2, 1>, scalar_prefetch = 0 : i64, scratch_operands = 1 : i64, tpu.core_type = #tpu.core_type<tc>, window_params = [{transform_indices = @transform_0, window_bounds = array<i64: 128, 256>}, {transform_indices = @transform_1, window_bounds = array<i64: 256, 128>}, {transform_indices = @transform_2, window_bounds = array<i64: 128, 128>}]} {
    %c0_i32 = arith.constant 0 : i32
    %0 = arith.cmpi eq, %arg1, %c0_i32 : i32
    %1 = arith.extui %0 : i1 to i32
    %c0_i32_0 = arith.constant 0 : i32
    %2 = arith.cmpi ne, %1, %c0_i32_0 : i32
    scf.if %2 {
      %cst_10 = arith.constant 0.000000e+00 : f32
      %12 = vector.broadcast %cst_10 : f32 to vector<128x128xf32>
      %c0_11 = arith.constant 0 : index
      %c0_12 = arith.constant 0 : index
      %13 = vector.load %arg5[%c0_11, %c0_12] : memref<128x128xf32, #tpu.memory_space<vmem>>, vector<128x128xf32>
      tpu.vector_store %arg5[%c0_11, %c0_12], %12 {strides = array<i32>} : memref<128x128xf32, #tpu.memory_space<vmem>>, vector<128x128xf32>,
    } else {
    }
    %c0 = arith.constant 0 : index
    %c0_1 = arith.constant 0 : index
    %3 = vector.load %arg5[%c0, %c0_1] : memref<128x128xf32, #tpu.memory_space<vmem>>, vector<128x128xf32>
    %c0_2 = arith.constant 0 : index
    %c0_3 = arith.constant 0 : index
    %4 = vector.load %arg2[%c0_2, %c0_3] : memref<128x256xbf16, #tpu.memory_space<vmem>>, vector<128x256xbf16>
    %c0_4 = arith.constant 0 : index
    %c0_5 = arith.constant 0 : index
    %5 = vector.load %arg3[%c0_4, %c0_5] : memref<256x128xbf16, #tpu.memory_space<vmem>>, vector<256x128xbf16>
    %cst = arith.constant dense<0.000000e+00> : vector<128x128xf32>
    %6 = tpu.matmul %4, %5, %cst {dimension_numbers = #tpu.dot_dimension_numbers<[1], [0], [0], [1], [0, 0, 1, 1], [], []>} : vector<128x256xbf16>, vector<256x128xbf16>, vector<128x128xf32> -> vector<128x128xf32>
    %7 = arith.addf %3, %6 : vector<128x128xf32>
    %c0_6 = arith.constant 0 : index
    %c0_7 = arith.constant 0 : index
    %8 = vector.load %arg5[%c0_6, %c0_7] : memref<128x128xf32, #tpu.memory_space<vmem>>, vector<128x128xf32>
    tpu.vector_store %arg5[%c0_6, %c0_7], %7 {strides = array<i32>} : memref<128x128xf32, #tpu.memory_space<vmem>>, vector<128x128xf32>,
    %c0_i32_8 = arith.constant 0 : i32
    %9 = arith.cmpi eq, %arg1, %c0_i32_8 : i32
    %10 = arith.extui %9 : i1 to i32
    %c0_i32_9 = arith.constant 0 : i32
    %11 = arith.cmpi ne, %10, %c0_i32_9 : i32
    scf.if %11 {
      %c0_10 = arith.constant 0 : index
      %c0_11 = arith.constant 0 : index
      %12 = vector.load %arg5[%c0_10, %c0_11] : memref<128x128xf32, #tpu.memory_space<vmem>>, vector<128x128xf32>
      %13 = arith.truncf %12 : vector<128x128xf32> to vector<128x128xbf16>
      %c0_12 = arith.constant 0 : index
      %c0_13 = arith.constant 0 : index
      %14 = vector.load %arg4[%c0_12, %c0_13] : memref<128x128xbf16, #tpu.memory_space<vmem>>, vector<128x128xbf16>
      tpu.vector_store %arg4[%c0_12, %c0_13], %13 {strides = array<i32>} : memref<128x128xbf16, #tpu.memory_space<vmem>>, vector<128x128xbf16>,
    } else {
    }
    return
  }
  func.func @transform_0(%arg0: i32, %arg1: i32) -> (i32, i32) {
    %c0_i32 = arith.constant 0 : i32
    return %arg0, %arg1 : i32, i32
  }
  func.func @transform_1(%arg0: i32, %arg1: i32) -> (i32, i32) {
    %c0_i32 = arith.constant 0 : i32
    %c0_i32_0 = arith.constant 0 : i32
    return %arg1, %c0_i32 : i32, i32
  }
  func.func @transform_2(%arg0: i32, %arg1: i32) -> (i32, i32) {
    %c0_i32 = arith.constant 0 : i32
    %c0_i32_0 = arith.constant 0 : i32
    return %arg0, %c0_i32 : i32, i32
  }
}

module attributes {stable_mosaic.version = 11 : i64} {
  func.func @_gcn_fused_kernel(%arg0: i32, %arg1: i32, %arg2: memref<128x256xbf16, #tpu.memory_space<vmem>>, %arg3: memref<256x128xbf16, #tpu.memory_space<vmem>>, %arg4: memref<128x128xbf16, #tpu.memory_space<vmem>>, %arg5: memref<128x128xbf16, #tpu.memory_space<vmem>>, %arg6: memref<128x128xf32, #tpu.memory_space<vmem>>) attributes {dimension_semantics = [#tpu.dimension_semantics<parallel>, #tpu.dimension_semantics<arbitrary>], iteration_bounds = array<i64: 2, 1>, scalar_prefetch = 0 : i64, scratch_operands = 1 : i64, tpu.core_type = #tpu.core_type<tc>, window_params = [{transform_indices = @transform_0, window_bounds = array<i64: 128, 256>}, {transform_indices = @transform_1, window_bounds = array<i64: 256, 128>}, {pipeline_mode = #tpu.pipeline_mode<synchronous>, transform_indices = @transform_2, window_bounds = array<i64: 128, 128>}, {transform_indices = @transform_3, window_bounds = array<i64: 128, 128>}]} {
    %c0_i32 = arith.constant 0 : i32
    %0 = arith.cmpi eq, %arg1, %c0_i32 : i32
    %1 = arith.extui %0 : i1 to i32
    %c0_i32_0 = arith.constant 0 : i32
    %2 = arith.cmpi ne, %1, %c0_i32_0 : i32
    scf.if %2 {
      %cst_10 = arith.constant 0.000000e+00 : f32
      %12 = vector.broadcast %cst_10 : f32 to vector<128x128xf32>
      %c0_11 = arith.constant 0 : index
      %c0_12 = arith.constant 0 : index
      %13 = vector.load %arg6[%c0_11, %c0_12] : memref<128x128xf32, #tpu.memory_space<vmem>>, vector<128x128xf32>
      tpu.vector_store %arg6[%c0_11, %c0_12], %12 {strides = array<i32>} : memref<128x128xf32, #tpu.memory_space<vmem>>, vector<128x128xf32>,
    } else {
    }
    %c0 = arith.constant 0 : index
    %c0_1 = arith.constant 0 : index
    %3 = vector.load %arg6[%c0, %c0_1] : memref<128x128xf32, #tpu.memory_space<vmem>>, vector<128x128xf32>
    %c0_2 = arith.constant 0 : index
    %c0_3 = arith.constant 0 : index
    %4 = vector.load %arg2[%c0_2, %c0_3] : memref<128x256xbf16, #tpu.memory_space<vmem>>, vector<128x256xbf16>
    %c0_4 = arith.constant 0 : index
    %c0_5 = arith.constant 0 : index
    %5 = vector.load %arg3[%c0_4, %c0_5] : memref<256x128xbf16, #tpu.memory_space<vmem>>, vector<256x128xbf16>
    %cst = arith.constant dense<0.000000e+00> : vector<128x128xf32>
    %6 = tpu.matmul %4, %5, %cst {dimension_numbers = #tpu.dot_dimension_numbers<[1], [0], [0], [1], [0, 0, 1, 1], [], []>} : vector<128x256xbf16>, vector<256x128xbf16>, vector<128x128xf32> -> vector<128x128xf32>
    %7 = arith.addf %3, %6 : vector<128x128xf32>
    %c0_6 = arith.constant 0 : index
    %c0_7 = arith.constant 0 : index
    %8 = vector.load %arg6[%c0_6, %c0_7] : memref<128x128xf32, #tpu.memory_space<vmem>>, vector<128x128xf32>
    tpu.vector_store %arg6[%c0_6, %c0_7], %7 {strides = array<i32>} : memref<128x128xf32, #tpu.memory_space<vmem>>, vector<128x128xf32>,
    %c0_i32_8 = arith.constant 0 : i32
    %9 = arith.cmpi eq, %arg1, %c0_i32_8 : i32
    %10 = arith.extui %9 : i1 to i32
    %c0_i32_9 = arith.constant 0 : i32
    %11 = arith.cmpi ne, %10, %c0_i32_9 : i32
    scf.if %11 {
      %c0_10 = arith.constant 0 : index
      %c0_11 = arith.constant 0 : index
      %12 = vector.load %arg6[%c0_10, %c0_11] : memref<128x128xf32, #tpu.memory_space<vmem>>, vector<128x128xf32>
      %13 = arith.truncf %12 : vector<128x128xf32> to vector<128x128xbf16>
      %c0_12 = arith.constant 0 : index
      %c0_13 = arith.constant 0 : index
      %14 = vector.load %arg4[%c0_12, %c0_13] : memref<128x128xbf16, #tpu.memory_space<vmem>>, vector<128x128xbf16>
      %cst_14 = arith.constant dense<0.000000e+00> : vector<128x128xf32>
      %15 = tpu.matmul %13, %14, %cst_14 {dimension_numbers = #tpu.dot_dimension_numbers<[1], [0], [0], [1], [0, 0, 1, 1], [], []>} : vector<128x128xbf16>, vector<128x128xbf16>, vector<128x128xf32> -> vector<128x128xf32>
      %cst_15 = arith.constant 0.000000e+00 : f32
      %16 = vector.broadcast %cst_15 : f32 to vector<128x128xf32>
      %17 = arith.maximumf %15, %16 : vector<128x128xf32>
      %18 = arith.truncf %17 : vector<128x128xf32> to vector<128x128xbf16>
      %c0_16 = arith.constant 0 : index
      %c0_17 = arith.constant 0 : index
      %19 = vector.load %arg5[%c0_16, %c0_17] : memref<128x128xbf16, #tpu.memory_space<vmem>>, vector<128x128xbf16>
      tpu.vector_store %arg5[%c0_16, %c0_17], %18 {strides = array<i32>} : memref<128x128xbf16, #tpu.memory_space<vmem>>, vector<128x128xbf16>,
    } else {
    }
    return
  }
  func.func @transform_0(%arg0: i32, %arg1: i32) -> (i32, i32) {
    %c0_i32 = arith.constant 0 : i32
    return %arg0, %arg1 : i32, i32
  }
  func.func @transform_1(%arg0: i32, %arg1: i32) -> (i32, i32) {
    %c0_i32 = arith.constant 0 : i32
    %c0_i32_0 = arith.constant 0 : i32
    return %arg1, %c0_i32 : i32, i32
  }
  func.func @transform_2(%arg0: i32, %arg1: i32) -> (i32, i32) {
    %c0_i32 = arith.constant 0 : i32
    %c0_i32_0 = arith.constant 0 : i32
    %c0_i32_1 = arith.constant 0 : i32
    return %c0_i32, %c0_i32_0 : i32, i32
  }
  func.func @transform_3(%arg0: i32, %arg1: i32) -> (i32, i32) {
    %c0_i32 = arith.constant 0 : i32
    %c0_i32_0 = arith.constant 0 : i32
    return %arg0, %c0_i32 : i32, i32
  }
}

module attributes {stable_mosaic.version = 11 : i64} {
  func.func @_mlp_softmax_kernel(%arg0: i32, %arg1: memref<128x32xbf16, #tpu.memory_space<vmem>>, %arg2: memref<32x4xbf16, #tpu.memory_space<vmem>>, %arg3: memref<1x4xf32, #tpu.memory_space<vmem>>, %arg4: memref<128x4xf32, #tpu.memory_space<vmem>>) attributes {dimension_semantics = [#tpu.dimension_semantics<parallel>], iteration_bounds = array<i64: 2>, scalar_prefetch = 0 : i64, scratch_operands = 0 : i64, tpu.core_type = #tpu.core_type<tc>, window_params = [{transform_indices = @transform_0, window_bounds = array<i64: 128, 32>}, {pipeline_mode = #tpu.pipeline_mode<synchronous>, transform_indices = @transform_1, window_bounds = array<i64: 32, 4>}, {pipeline_mode = #tpu.pipeline_mode<synchronous>, transform_indices = @transform_2, window_bounds = array<i64: 1, 4>}, {transform_indices = @transform_3, window_bounds = array<i64: 128, 4>}]} {
    %c0 = arith.constant 0 : index
    %c0_0 = arith.constant 0 : index
    %0 = vector.load %arg1[%c0, %c0_0] : memref<128x32xbf16, #tpu.memory_space<vmem>>, vector<128x32xbf16>
    %c0_1 = arith.constant 0 : index
    %c0_2 = arith.constant 0 : index
    %1 = vector.load %arg2[%c0_1, %c0_2] : memref<32x4xbf16, #tpu.memory_space<vmem>>, vector<32x4xbf16>
    %cst = arith.constant dense<0.000000e+00> : vector<128x4xf32>
    %2 = tpu.matmul %0, %1, %cst {dimension_numbers = #tpu.dot_dimension_numbers<[1], [0], [0], [1], [0, 0, 1, 1], [], []>} : vector<128x32xbf16>, vector<32x4xbf16>, vector<128x4xf32> -> vector<128x4xf32>
    %c0_3 = arith.constant 0 : index
    %c0_4 = arith.constant 0 : index
    %3 = vector.load %arg3[%c0_3, %c0_4] : memref<1x4xf32, #tpu.memory_space<vmem>>, vector<1x4xf32>
    %4 = vector.broadcast %3 : vector<1x4xf32> to vector<128x4xf32>
    %5 = arith.addf %2, %4 : vector<128x4xf32>
    %cst_5 = arith.constant dense<0xFF800000> : vector<128xf32>
    %6 = vector.multi_reduction <maximumf>, %5, %cst_5 [1] : vector<128x4xf32> to vector<128xf32>
    %7 = vector.shape_cast %6 : vector<128xf32> to vector<128x1xf32>
    %8 = vector.broadcast %7 : vector<128x1xf32> to vector<128x4xf32>
    %9 = arith.subf %5, %8 : vector<128x4xf32>
    %10 = math.exp %9 : vector<128x4xf32>
    %cst_6 = arith.constant dense<0.000000e+00> : vector<128xf32>
    %11 = vector.multi_reduction <add>, %10, %cst_6 [1] : vector<128x4xf32> to vector<128xf32>
    %12 = vector.shape_cast %11 : vector<128xf32> to vector<128x1xf32>
    %13 = vector.broadcast %12 : vector<128x1xf32> to vector<128x4xf32>
    %14 = arith.divf %10, %13 : vector<128x4xf32>
    %c0_7 = arith.constant 0 : index
    %c0_8 = arith.constant 0 : index
    %15 = vector.load %arg4[%c0_7, %c0_8] : memref<128x4xf32, #tpu.memory_space<vmem>>, vector<128x4xf32>
    tpu.vector_store %arg4[%c0_7, %c0_8], %14 {strides = array<i32>} : memref<128x4xf32, #tpu.memory_space<vmem>>, vector<128x4xf32>,
    return
  }
  func.func @transform_0(%arg0: i32) -> (i32, i32) {
    %c0_i32 = arith.constant 0 : i32
    %c0_i32_0 = arith.constant 0 : i32
    return %arg0, %c0_i32 : i32, i32
  }
  func.func @transform_1(%arg0: i32) -> (i32, i32) {
    %c0_i32 = arith.constant 0 : i32
    %c0_i32_0 = arith.constant 0 : i32
    %c0_i32_1 = arith.constant 0 : i32
    return %c0_i32, %c0_i32_0 : i32, i32
  }
  func.func @transform_2(%arg0: i32) -> (i32, i32) {
    %c0_i32 = arith.constant 0 : i32
    %c0_i32_0 = arith.constant 0 : i32
    %c0_i32_1 = arith.constant 0 : i32
    return %c0_i32, %c0_i32_0 : i32, i32
  }
  func.func @transform_3(%arg0: i32) -> (i32, i32) {
    %c0_i32 = arith.constant 0 : i32
    %c0_i32_0 = arith.constant 0 : i32
    return %arg0, %c0_i32 : i32, i32
  }
}

module attributes {stable_mosaic.version = 11 : i64} {
  func.func @_dense_matmul_kernel(%arg0: i32, %arg1: i32, %arg2: memref<128x64xbf16, #tpu.memory_space<vmem>>, %arg3: memref<64x16xbf16, #tpu.memory_space<vmem>>, %arg4: memref<128x16xf32, #tpu.memory_space<vmem>>) attributes {dimension_semantics = [#tpu.dimension_semantics<parallel>, #tpu.dimension_semantics<parallel>], iteration_bounds = array<i64: 2, 1>, scalar_prefetch = 0 : i64, scratch_operands = 0 : i64, tpu.core_type = #tpu.core_type<tc>, window_params = [{transform_indices = @transform_0, window_bounds = array<i64: 128, 64>}, {transform_indices = @transform_1, window_bounds = array<i64: 64, 16>}, {transform_indices = @transform_2, window_bounds = array<i64: 128, 16>}]} {
    %c0 = arith.constant 0 : index
    %c0_0 = arith.constant 0 : index
    %0 = vector.load %arg2[%c0, %c0_0] : memref<128x64xbf16, #tpu.memory_space<vmem>>, vector<128x64xbf16>
    %c0_1 = arith.constant 0 : index
    %c0_2 = arith.constant 0 : index
    %1 = vector.load %arg3[%c0_1, %c0_2] : memref<64x16xbf16, #tpu.memory_space<vmem>>, vector<64x16xbf16>
    %cst = arith.constant dense<0.000000e+00> : vector<128x16xf32>
    %2 = tpu.matmul %0, %1, %cst {dimension_numbers = #tpu.dot_dimension_numbers<[1], [0], [0], [1], [0, 0, 1, 1], [], []>} : vector<128x64xbf16>, vector<64x16xbf16>, vector<128x16xf32> -> vector<128x16xf32>
    %cst_3 = arith.constant 0.000000e+00 : f32
    %3 = vector.broadcast %cst_3 : f32 to vector<128x16xf32>
    %4 = arith.maximumf %2, %3 : vector<128x16xf32>
    %c0_4 = arith.constant 0 : index
    %c0_5 = arith.constant 0 : index
    %5 = vector.load %arg4[%c0_4, %c0_5] : memref<128x16xf32, #tpu.memory_space<vmem>>, vector<128x16xf32>
    tpu.vector_store %arg4[%c0_4, %c0_5], %4 {strides = array<i32>} : memref<128x16xf32, #tpu.memory_space<vmem>>, vector<128x16xf32>,
    return
  }
  func.func @transform_0(%arg0: i32, %arg1: i32) -> (i32, i32) {
    %c0_i32 = arith.constant 0 : i32
    %c0_i32_0 = arith.constant 0 : i32
    return %arg0, %c0_i32 : i32, i32
  }
  func.func @transform_1(%arg0: i32, %arg1: i32) -> (i32, i32) {
    %c0_i32 = arith.constant 0 : i32
    %c0_i32_0 = arith.constant 0 : i32
    return %c0_i32, %arg1 : i32, i32
  }
  func.func @transform_2(%arg0: i32, %arg1: i32) -> (i32, i32) {
    %c0_i32 = arith.constant 0 : i32
    return %arg0, %arg1 : i32, i32
  }
}

module attributes {stable_mosaic.version = 11 : i64} {
  func.func @_dense_matmul_kernel(%arg0: i32, %arg1: i32, %arg2: memref<128x64xbf16, #tpu.memory_space<vmem>>, %arg3: memref<64x256xbf16, #tpu.memory_space<vmem>>, %arg4: memref<128x256xf32, #tpu.memory_space<vmem>>) attributes {dimension_semantics = [#tpu.dimension_semantics<parallel>, #tpu.dimension_semantics<parallel>], iteration_bounds = array<i64: 2, 1>, scalar_prefetch = 0 : i64, scratch_operands = 0 : i64, tpu.core_type = #tpu.core_type<tc>, window_params = [{transform_indices = @transform_0, window_bounds = array<i64: 128, 64>}, {transform_indices = @transform_1, window_bounds = array<i64: 64, 256>}, {transform_indices = @transform_2, window_bounds = array<i64: 128, 256>}]} {
    %c0 = arith.constant 0 : index
    %c0_0 = arith.constant 0 : index
    %0 = vector.load %arg2[%c0, %c0_0] : memref<128x64xbf16, #tpu.memory_space<vmem>>, vector<128x64xbf16>
    %c0_1 = arith.constant 0 : index
    %c0_2 = arith.constant 0 : index
    %1 = vector.load %arg3[%c0_1, %c0_2] : memref<64x256xbf16, #tpu.memory_space<vmem>>, vector<64x256xbf16>
    %cst = arith.constant dense<0.000000e+00> : vector<128x256xf32>
    %2 = tpu.matmul %0, %1, %cst {dimension_numbers = #tpu.dot_dimension_numbers<[1], [0], [0], [1], [0, 0, 1, 1], [], []>} : vector<128x64xbf16>, vector<64x256xbf16>, vector<128x256xf32> -> vector<128x256xf32>
    %cst_3 = arith.constant 0.000000e+00 : f32
    %3 = vector.broadcast %cst_3 : f32 to vector<128x256xf32>
    %4 = arith.maximumf %2, %3 : vector<128x256xf32>
    %c0_4 = arith.constant 0 : index
    %c0_5 = arith.constant 0 : index
    %5 = vector.load %arg4[%c0_4, %c0_5] : memref<128x256xf32, #tpu.memory_space<vmem>>, vector<128x256xf32>
    tpu.vector_store %arg4[%c0_4, %c0_5], %4 {strides = array<i32>} : memref<128x256xf32, #tpu.memory_space<vmem>>, vector<128x256xf32>,
    return
  }
  func.func @transform_0(%arg0: i32, %arg1: i32) -> (i32, i32) {
    %c0_i32 = arith.constant 0 : i32
    %c0_i32_0 = arith.constant 0 : i32
    return %arg0, %c0_i32 : i32, i32
  }
  func.func @transform_1(%arg0: i32, %arg1: i32) -> (i32, i32) {
    %c0_i32 = arith.constant 0 : i32
    %c0_i32_0 = arith.constant 0 : i32
    return %c0_i32, %arg1 : i32, i32
  }
  func.func @transform_2(%arg0: i32, %arg1: i32) -> (i32, i32) {
    %c0_i32 = arith.constant 0 : i32
    return %arg0, %arg1 : i32, i32
  }
}

</mosaic_0001>

<bundles_post_ra>
// kernel: gae_forward.10
= control target key start
LH: loop header
LB: loop body
LE: loop exit
PB: predicated region body
PF: predicated region fallthrough
CT: control target
= control target key end

     0   :  { %s1302_s12 = smov 0   ;;  %s1304_s13 = smov 0   ;;  %s1491_s0 = inlined_call_operand.vmem [shape: bf16[256,256], index: 0, kind: input, shape index: {}]   ;;  %s1492_s1 = inlined_call_operand.vmem [shape: bf16[256,64], index: 1, kind: input, shape index: {}]   ;;  %s1493_s2 = inlined_call_operand.vmem [shape: bf16[64,64], index: 2, kind: input, shape index: {}]   ;;  %s1494_s3 = inlined_call_operand.vmem [shape: bf16[256,64], index: 3, kind: output, shape index: {}]  }
   0x1   :  { %s1306_s14 = smov 0  }
   0x2 LB: > { %s25_s15 = sadd.s32 1, %s1275_s13  ;;  %p987_p0 = scmp.ge.s32.totalorder %s1279_s14, 1  ;;  %s1279_s14 = sphi %s1306_s14, %s13_s14   ;;  %s1275_s13 = sphi %s1304_s13, %s1496_s13   ;;  %s1271_s12 = sphi %s1302_s12, %s1495_s12  }
   0x3   : > { %p27_p1 = scmp.ge.s32.totalorder %s25_s15, 2  ;;  %p169_p2 = scmp.lt.s32.totalorder %s1279_s14, 3 }
   0x5   : > { %s1498_s15 = smov (%p27_p1, %s25_s15), 0  ;;  %p170_p3 = pnand %p987_p0, %p169_p2 }
   0x6   : > { %v1213_v0 = vld [vmem:[%s1492_s1 + $0x40] sm:$0xff] (!%p170_p3)   ;;  %s988_s18 = sshll.u32 (!%p170_p3), %s1271_s12, 4  ;;  %v1215_v2 = vld [vmem:[%s1492_s1 + $0x48] sm:$0xff] (!%p170_p3)   ;;  %v1217_v4 = vld [vmem:[%s1492_s1 + $0x50] sm:$0xff] (!%p170_p3)   ;;  %vm232_vm0 = vcmask (!%p170_p3), 523264   ;;  %v1281_v32 = vmov (!%p170_p3), 0.0  }
   0x7   : > { %173 = sbr.rel (%p170_p3) target bundleno = 536 (0x218), region = 32  ;;  %v1214_v1 = vld [vmem:[%s1492_s1] sm:$0xff] (!%p170_p3)   ;;  %1072 = vmatprep.subr.bf16.mxu0 (!%p170_p3), %v1213_v0  ;;  %1172 = vmatprep.subr.bf16.mxu1 (!%p170_p3), %v1213_v0  ;;  %v1216_v3 = vld [vmem:[%s1492_s1 + $0x8] sm:$0xff] (!%p170_p3)   ;;  %p205_p4 = scmp.lt.s32.totalorder (!%p170_p3), %s988_s18, 31  ;;  %v1218_v5 = vld [vmem:[%s1492_s1 + $0x10] sm:$0xff] (!%p170_p3)   ;;  %233 = vst.msk [vmem:[#allocation2] sm:$0xff] (!%p170_p3), %vm232_vm0, %v1281_v32 }
   0x8   : > { %1073 = vmatpush3.bf16.msra.mxu0 (!%p170_p3), %v1214_v1  ;;  %1180 = vmatpush3.bf16.msra.mxu1 (!%p170_p3), %v1214_v1  ;;  %v1219_v6 = vld [vmem:[%s1492_s1 + $0x58] sm:$0xff] (!%p170_p3)   ;;  %v1221_v8 = vld [vmem:[%s1492_s1 + $0x60] sm:$0xff] (!%p170_p3)   ;;  %v1223_v10 = vld [vmem:[%s1492_s1 + $0x68] sm:$0xff] (!%p170_p3)   ;;  %234 = vst.msk [vmem:[#allocation2 + $0x8] sm:$0xff] (!%p170_p3), %vm232_vm0, %v1281_v32  ;;  %vm879_vm1 = vcmask (!%p170_p3), 519168  }
   0x9   : > { %1074 = vmatprep.subr.bf16.mxu0 (!%p170_p3), %v1215_v2  ;;  %1173 = vmatprep.subr.bf16.mxu1 (!%p170_p3), %v1215_v2  ;;  %v1220_v7 = vld [vmem:[%s1492_s1 + $0x18] sm:$0xff] (!%p170_p3)   ;;  %v1222_v9 = vld [vmem:[%s1492_s1 + $0x20] sm:$0xff] (!%p170_p3)   ;;  %v1224_v12 = vld [vmem:[%s1492_s1 + $0x28] sm:$0xff] (!%p170_p3)   ;;  %235 = vst.msk [vmem:[#allocation2 + $0x10] sm:$0xff] (!%p170_p3), %vm232_vm0, %v1281_v32 }
   0xa   : > { %v1225_v13 = vld [vmem:[%s1492_s1 + $0x70] sm:$0xff] (!%p170_p3)   ;;  %v1227_v16 = vld [vmem:[%s1492_s1 + $0x78] sm:$0xff] (!%p170_p3)   ;;  %236 = vst.msk [vmem:[#allocation2 + $0x18] sm:$0xff] (!%p170_p3), %vm232_vm0, %v1281_v32  ;;  %237 = vst.msk [vmem:[#allocation2 + $0x20] sm:$0xff] (!%p170_p3), %vm232_vm0, %v1281_v32 }
   0xb   : > { %v1226_v14 = vld [vmem:[%s1492_s1 + $0x30] sm:$0xff] (!%p170_p3)   ;;  %v1228_v17 = vld [vmem:[%s1492_s1 + $0x38] sm:$0xff] (!%p170_p3)   ;;  %238 = vst.msk [vmem:[#allocation2 + $0x28] sm:$0xff] (!%p170_p3), %vm232_vm0, %v1281_v32  ;;  %239 = vst.msk [vmem:[#allocation2 + $0x30] sm:$0xff] (!%p170_p3), %vm232_vm0, %v1281_v32 }
   0xc   : > { %1075 = vmatpush3.bf16.msra.mxu0 (!%p170_p3), %v1216_v3  ;;  %1181 = vmatpush3.bf16.msra.mxu1 (!%p170_p3), %v1216_v3  ;;  %240 = vst.msk [vmem:[#allocation2 + $0x38] sm:$0xff] (!%p170_p3), %vm232_vm0, %v1281_v32  ;;  %241 = vst.msk [vmem:[#allocation2 + $0x40] sm:$0xff] (!%p170_p3), %vm232_vm0, %v1281_v32  ;;  %v1253_v33 = vld [vmem:[%s1493_s2] sm:$0xff] (!%p170_p3)   ;;  %v1254_v34 = vld [vmem:[%s1493_s2 + $0x8] sm:$0xff] (!%p170_p3)  }
   0xd   : > { %1076 = vmatprep.subr.bf16.mxu0 (!%p170_p3), %v1217_v4  ;;  %1174 = vmatprep.subr.bf16.mxu1 (!%p170_p3), %v1217_v4  ;;  %242 = vst.msk [vmem:[#allocation2 + $0x48] sm:$0xff] (!%p170_p3), %vm232_vm0, %v1281_v32  ;;  %243 = vst.msk [vmem:[#allocation2 + $0x50] sm:$0xff] (!%p170_p3), %vm232_vm0, %v1281_v32  ;;  %v1255_v35 = vld [vmem:[%s1493_s2 + $0x10] sm:$0xff] (!%p170_p3)   ;;  %v1256_v36 = vld [vmem:[%s1493_s2 + $0x18] sm:$0xff] (!%p170_p3)  }
   0xe   : > { %s1500_s18 = smov (!%p205_p4, %s988_s18), 31  ;;  %244 = vst.msk [vmem:[#allocation2 + $0x58] sm:$0xff] %vm232_vm0, %v1281_v32  ;;  %245 = vst.msk [vmem:[#allocation2 + $0x60] sm:$0xff] %vm232_vm0, %v1281_v32  ;;  %v249_v38 = vld [vmem:[#allocation2] sm:$0xff] }
   0xf   : > { %s1055_s6 = sshll.u32 %s1500_s18, 3  ;;  %246 = vst.msk [vmem:[#allocation2 + $0x68] sm:$0xff] %vm232_vm0, %v1281_v32  ;;  %247 = vst.msk [vmem:[#allocation2 + $0x70] sm:$0xff] %vm232_vm0, %v1281_v32  ;;  %v250_v45 = vld [vmem:[#allocation2 + $0x8] sm:$0xff] }
  0x10   : > { %1077 = vmatpush3.bf16.msra.mxu0 %v1218_v5  ;;  %1182 = vmatpush3.bf16.msra.mxu1 %v1218_v5  ;;  %s1353_s11 = scalar_lea.vmem %s1491_s0, %s1055_s6  ;;  %248 = vst.msk [vmem:[#allocation2 + $0x78] sm:$0xff] %vm232_vm0, %v1281_v32  ;;  %v251_v58 = vld [vmem:[#allocation2 + $0x10] sm:$0xff] }
  0x11   : > { %1078 = vmatprep.subr.bf16.mxu0 %v1219_v6  ;;  %1175 = vmatprep.subr.bf16.mxu1 %v1219_v6  ;;  %v1231_v11 = vld [vmem:[%s1353_s11 + $0x4] ss:$8 sps:$4 sm:$0xff]   ;;  %v1229_v18 = vld [vmem:[%s1353_s11] ss:$8 sps:$4 sm:$0xff]   ;;  %v1232_v19 = vld [vmem:[%s1353_s11 + $0x14] ss:$8 sps:$4 sm:$0xff]  }
  0x12   : > { %521 = vmatprep.mubr.bf16.mxu0 %v1231_v11  ;;  %v1246_v15 = vld [vmem:[%s1353_s11 + $0x64] ss:$8 sps:$4 sm:$0xff]   ;;  %v1244_v20 = vld [vmem:[%s1353_s11 + $0x60] ss:$8 sps:$4 sm:$0xff]   ;;  %v1250_v21 = vld [vmem:[%s1353_s11 + $0x74] ss:$8 sps:$4 sm:$0xff]  }
  0x13   : > { %569 = vmatprep.mubr.bf16.mxu1 %v1246_v15  ;;  %v1234_v22 = vld [vmem:[%s1353_s11 + $0x10] ss:$8 sps:$4 sm:$0xff]   ;;  %v1235_v23 = vld [vmem:[%s1353_s11 + $0x24] ss:$8 sps:$4 sm:$0xff]   ;;  %v1237_v25 = vld [vmem:[%s1353_s11 + $0x20] ss:$8 sps:$4 sm:$0xff]  }
  0x14   : > { %1079 = vmatpush3.bf16.msra.mxu0 %v1220_v7  ;;  %1183 = vmatpush3.bf16.msra.mxu1 %v1220_v7  ;;  %v1252_v24 = vld [vmem:[%s1353_s11 + $0x70] ss:$8 sps:$4 sm:$0xff]   ;;  %v1238_v26 = vld [vmem:[%s1353_s11 + $0x34] ss:$8 sps:$4 sm:$0xff]   ;;  %v1241_v28 = vld [vmem:[%s1353_s11 + $0x44] ss:$8 sps:$4 sm:$0xff]  }
  0x15   : > { %1080 = vmatprep.subr.bf16.mxu0 %v1221_v8  ;;  %1176 = vmatprep.subr.bf16.mxu1 %v1221_v8  ;;  %v1240_v27 = vld [vmem:[%s1353_s11 + $0x30] ss:$8 sps:$4 sm:$0xff]   ;;  %v1243_v29 = vld [vmem:[%s1353_s11 + $0x40] ss:$8 sps:$4 sm:$0xff]   ;;  %v1247_v30 = vld [vmem:[%s1353_s11 + $0x54] ss:$8 sps:$4 sm:$0xff]  }
  0x16   : > { %v1249_v31 = vld [vmem:[%s1353_s11 + $0x50] ss:$8 sps:$4 sm:$0xff]   ;;  %v261_v43 = vld [vmem:[#allocation2 + $0x60] sm:$0xff]  ;;  %v262_v51 = vld [vmem:[#allocation2 + $0x68] sm:$0xff]  ;;  %s992_s11 = sshll.u32 %s1500_s18, 2 }
  0x17   : > { %v263_v63 = vld [vmem:[#allocation2 + $0x70] sm:$0xff]  ;;  %v252_v1 = vld [vmem:[#allocation2 + $0x18] sm:$0xff]  ;;  %s1448_s17 = scalar_lea.vmem %s1494_s3, %s992_s11 }
  0x18   : > { %1081 = vmatpush3.bf16.msra.mxu0 %v1222_v9  ;;  %1184 = vmatpush3.bf16.msra.mxu1 %v1222_v9  ;;  %v264_v7 = vld [vmem:[#allocation2 + $0x78] sm:$0xff] }
  0x19   : > { %1082 = vmatprep.subr.bf16.mxu0 %v1223_v10  ;;  %1177 = vmatprep.subr.bf16.mxu1 %v1223_v10 }
  0x1c   : > { %1083 = vmatpush3.bf16.msra.mxu0 %v1224_v12  ;;  %1185 = vmatpush3.bf16.msra.mxu1 %v1224_v12 }
  0x1d   : > { %1084 = vmatprep.subr.bf16.mxu0 %v1225_v13  ;;  %1178 = vmatprep.subr.bf16.mxu1 %v1225_v13 }
  0x20   : > { %1085 = vmatpush3.bf16.msra.mxu0 %v1226_v14  ;;  %1186 = vmatpush3.bf16.msra.mxu1 %v1226_v14 }
  0x21   : > { %1086 = vmatprep.subr.bf16.mxu0 %v1227_v16  ;;  %1179 = vmatprep.subr.bf16.mxu1 %v1227_v16 }
  0x24   : > { %1087 = vmatpush3.bf16.msra.mxu0 %v1228_v17  ;;  %1187 = vmatpush3.bf16.msra.mxu1 %v1228_v17  ;;  %v253_v17 = vld [vmem:[#allocation2 + $0x20] sm:$0xff] }
  0x25   : > { %1148 = vmatprep.subr.bf16.mxu1 %v1253_v33 }
  0x27   : > { %522 = vmatmul.mubr.bf16.vlgmr.msra.gmra.mrb[0].mxu0 %v1229_v18  ;;  %570 = vmatmul.mubr.bf16.vlgmr.msra.gmra.mrb[0].mxu1 %v1244_v20 }
  0x28   : > { %529 = vmatprep.mubr.bf16.mxu0 %v1232_v19  ;;  %577 = vmatprep.mubr.bf16.mxu1 %v1250_v21  ;;  %v254_v21 = vld [vmem:[#allocation2 + $0x28] sm:$0xff] }
  0x29   : > { %1149 = vmatpush3.bf16.msra.mxu1 %v1253_v33 }
  0x2a   : > { %1150 = vmatprep.subr.bf16.mxu1 %v1254_v34 }
  0x2d   : > { %1151 = vmatpush3.bf16.msra.mxu1 %v1254_v34  ;;  %v256_v34 = vld [vmem:[#allocation2 + $0x38] sm:$0xff] }
  0x2e   : > { %1152 = vmatprep.subr.bf16.mxu1 %v1255_v35 }
  0x2f   : > { %530 = vmatmul.mubr.bf16.gmra.mrb[4].mxu0 %v1234_v22  ;;  %578 = vmatmul.mubr.bf16.gmra.mrb[4].mxu1 %v1252_v24 }
  0x30   : > { %537 = vmatprep.mubr.bf16.mxu0 %v1235_v23 }
  0x31   : > { %1153 = vmatpush3.bf16.msra.mxu1 %v1255_v35 }
  0x32   : > { %1154 = vmatprep.subr.bf16.mxu1 %v1256_v36 }
  0x35   : > { %1155 = vmatpush3.bf16.msra.mxu1 %v1256_v36 }
  0x37   : > { %538 = vmatmul.mubr.bf16.gmra.mrb[8].mxu0 %v1237_v25 }
  0x38   : > { %545 = vmatprep.mubr.bf16.mxu0 %v1238_v26 }
  0x3f   : > { %546 = vmatmul.mubr.bf16.gmra.mrb[12].mxu0 %v1240_v27 }
  0x40   : > { %553 = vmatprep.mubr.bf16.mxu0 %v1241_v28 }
  0x47   : > { %554 = vmatmul.mubr.bf16.gmra.mrb[16].mxu0 %v1243_v29 }
  0x48   : > { %561 = vmatprep.mubr.bf16.mxu0 %v1247_v30  ;;  %v255_v30 = vld [vmem:[#allocation2 + $0x30] sm:$0xff] }
  0x4f   : > { %562 = vmatmul.mubr.bf16.gmra.mrb[20].mxu0 %v1249_v31 }
  0xfa   : > { %v1088_v37 = vpop.f32.mrb[0].mxu0  ;;  %v1124_v40 = vpop.f32.mrb[0].mxu1 }
  0xfb   : > { %v1089_v39 = vpop.f32.mrb[1].mxu0  ;;  %v1125_v44 = vpop.f32.mrb[1].mxu1 }
  0xfc   : > { %v1090_v41 = vadd.f32 %v1089_v39, %v1088_v37  ;;  %v1091_v42 = vpop.f32.mrb[2].mxu0  ;;  %v1126_v47 = vadd.f32 %v1125_v44, %v1124_v40  ;;  %v1127_v48 = vpop.f32.mrb[2].mxu1 }
  0xfd   : > { %v1092_v46 = vpop.f32.mrb[3].mxu0  ;;  %v1128_v52 = vpop.f32.mrb[3].mxu1 }
  0xfe   : > { %v586_v49 = vadd.f32 %v1090_v41, %v249_v38  ;;  %v1093_v50 = vadd.f32 %v1092_v46, %v1091_v42  ;;  %v598_v53 = vadd.f32 %v1126_v47, %v261_v43  ;;  %v1129_v54 = vadd.f32 %v1128_v52, %v1127_v48  ;;  %v257_v43 = vld [vmem:[#allocation2 + $0x40] sm:$0xff]  ;;  %v258_v47 = vld [vmem:[#allocation2 + $0x48] sm:$0xff] }
 0x100   : > { %603 = vst.msk [vmem:[#allocation2] sm:$0xff] %vm232_vm0, %v586_v49  ;;  %v587_v55 = vadd.f32 %v1093_v50, %v250_v45  ;;  %615 = vst.msk [vmem:[#allocation2 + $0x60] sm:$0xff] %vm232_vm0, %v598_v53  ;;  %v599_v56 = vadd.f32 %v1129_v54, %v262_v51 }
 0x102   : > { %604 = vst.msk [vmem:[#allocation2 + $0x8] sm:$0xff] %vm232_vm0, %v587_v55  ;;  %v1094_v57 = vpop.f32.mrb[4].mxu0  ;;  %616 = vst.msk [vmem:[#allocation2 + $0x68] sm:$0xff] %vm232_vm0, %v599_v56  ;;  %v1130_v60 = vpop.f32.mrb[4].mxu1  ;;  %v259_v56 = vld [vmem:[#allocation2 + $0x50] sm:$0xff] }
 0x103   : > { %v1095_v59 = vpop.f32.mrb[5].mxu0  ;;  %v1131_v0 = vpop.f32.mrb[5].mxu1 }
 0x104   : > { %v1096_v61 = vadd.f32 %v1095_v59, %v1094_v57  ;;  %v1097_v62 = vpop.f32.mrb[6].mxu0  ;;  %v1132_v3 = vadd.f32 %v1131_v0, %v1130_v60  ;;  %v1133_v4 = vpop.f32.mrb[6].mxu1  ;;  %v260_v60 = vld [vmem:[#allocation2 + $0x58] sm:$0xff] }
 0x105   : > { %v1098_v2 = vpop.f32.mrb[7].mxu0  ;;  %v1134_v8 = vpop.f32.mrb[7].mxu1 }
 0x106   : > { %v588_v5 = vadd.f32 %v1096_v61, %v251_v58  ;;  %v1099_v6 = vadd.f32 %v1098_v2, %v1097_v62  ;;  %v600_v9 = vadd.f32 %v1132_v3, %v263_v63  ;;  %v1135_v10 = vadd.f32 %v1134_v8, %v1133_v4 }
 0x107   : > { %v622_v12 = vld [vmem:[#allocation2] sm:$0xff] }
 0x108   : > { %605 = vst.msk [vmem:[#allocation2 + $0x10] sm:$0xff] %vm232_vm0, %v588_v5  ;;  %v589_v11 = vadd.f32 %v1099_v6, %v252_v1  ;;  %617 = vst.msk [vmem:[#allocation2 + $0x70] sm:$0xff] %vm232_vm0, %v600_v9  ;;  %v601_v14 = vadd.f32 %v1135_v10, %v264_v7  ;;  %v634_v4 = vld [vmem:[#allocation2 + $0x60] sm:$0xff] }
 0x109   : > { %v623_v13 = vld [vmem:[#allocation2 + $0x8] sm:$0xff] }
 0x10a   : > { %606 = vst.msk [vmem:[#allocation2 + $0x18] sm:$0xff] %vm232_vm0, %v589_v11  ;;  %v1100_v15 = vpop.f32.mrb[8].mxu0  ;;  %v638_v16 = vpack.c.bf16 %v623_v13, %v622_v12  ;;  %618 = vst.msk [vmem:[#allocation2 + $0x78] sm:$0xff] %vm232_vm0, %v601_v14  ;;  %v635_v5 = vld [vmem:[#allocation2 + $0x68] sm:$0xff] }
 0x10b   : > { %v1101_v18 = vpop.f32.mrb[9].mxu0  ;;  %v644_v9 = vpack.c.bf16 %v635_v5, %v634_v4 }
 0x10c   : > { %v1102_v19 = vadd.f32 %v1101_v18, %v1100_v15  ;;  %v1103_v20 = vpop.f32.mrb[10].mxu0  ;;  %1156 = vmatprep.mubr.msk.bf16.mxu1 %vm232_vm0, %v638_v16 }
 0x10d   : > { %v1104_v22 = vpop.f32.mrb[11].mxu0 }
 0x10e   : > { %v590_v23 = vadd.f32 %v1102_v19, %v253_v17  ;;  %v1105_v24 = vadd.f32 %v1104_v22, %v1103_v20 }
 0x10f   : > { %v624_v26 = vld [vmem:[#allocation2 + $0x10] sm:$0xff] }
 0x110   : > { %607 = vst.msk [vmem:[#allocation2 + $0x20] sm:$0xff] %vm232_vm0, %v590_v23  ;;  %v591_v25 = vadd.f32 %v1105_v24, %v254_v21  ;;  %v636_v10 = vld [vmem:[#allocation2 + $0x70] sm:$0xff] }
 0x111   : > { %v625_v27 = vld [vmem:[#allocation2 + $0x18] sm:$0xff] }
 0x112   : > { %608 = vst.msk [vmem:[#allocation2 + $0x28] sm:$0xff] %vm232_vm0, %v591_v25  ;;  %v1106_v28 = vpop.f32.mrb[12].mxu0  ;;  %v639_v29 = vpack.c.bf16 %v625_v27, %v624_v26  ;;  %v637_v11 = vld [vmem:[#allocation2 + $0x78] sm:$0xff] }
 0x113   : > { %v1107_v31 = vpop.f32.mrb[13].mxu0  ;;  %v645_v12 = vpack.c.bf16 %v637_v11, %v636_v10 }
 0x114   : > { %v1108_v32 = vadd.f32 %v1107_v31, %v1106_v28  ;;  %v1109_v33 = vpop.f32.mrb[14].mxu0  ;;  %1157 = vmatmul.mubr.msk.bf16.vlgmr.msra.gmra.mrb[8].mxu1 %vm232_vm0, %v639_v29 }
 0x115   : > { %v1110_v35 = vpop.f32.mrb[15].mxu0 }
 0x116   : > { %v592_v36 = vadd.f32 %v1108_v32, %v255_v30  ;;  %v1111_v37 = vadd.f32 %v1110_v35, %v1109_v33 }
 0x117   : > { %v626_v39 = vld [vmem:[#allocation2 + $0x20] sm:$0xff] }
 0x118   : > { %609 = vst.msk [vmem:[#allocation2 + $0x30] sm:$0xff] %vm232_vm0, %v592_v36  ;;  %v593_v38 = vadd.f32 %v1111_v37, %v256_v34 }
 0x119   : > { %v627_v40 = vld [vmem:[#allocation2 + $0x28] sm:$0xff] }
 0x11a   : > { %610 = vst.msk [vmem:[#allocation2 + $0x38] sm:$0xff] %vm232_vm0, %v593_v38  ;;  %v1112_v41 = vpop.f32.mrb[16].mxu0  ;;  %v640_v42 = vpack.c.bf16 %v627_v40, %v626_v39 }
 0x11b   : > { %v1113_v44 = vpop.f32.mrb[17].mxu0 }
 0x11c   : > { %v1114_v45 = vadd.f32 %v1113_v44, %v1112_v41  ;;  %v1115_v46 = vpop.f32.mrb[18].mxu0  ;;  %1160 = vmatprep.mubr.msk.bf16.mxu1 %vm232_vm0, %v640_v42 }
 0x11d   : > { %v1116_v48 = vpop.f32.mrb[19].mxu0 }
 0x11e   : > { %v594_v49 = vadd.f32 %v1114_v45, %v257_v43  ;;  %v1117_v50 = vadd.f32 %v1116_v48, %v1115_v46 }
 0x11f   : > { %v628_v52 = vld [vmem:[#allocation2 + $0x30] sm:$0xff] }
 0x120   : > { %611 = vst.msk [vmem:[#allocation2 + $0x40] sm:$0xff] %vm232_vm0, %v594_v49  ;;  %v595_v51 = vadd.f32 %v1117_v50, %v258_v47 }
 0x121   : > { %v629_v53 = vld [vmem:[#allocation2 + $0x38] sm:$0xff] }
 0x122   : > { %612 = vst.msk [vmem:[#allocation2 + $0x48] sm:$0xff] %vm232_vm0, %v595_v51  ;;  %v1118_v54 = vpop.f32.mrb[20].mxu0  ;;  %v641_v55 = vpack.c.bf16 %v629_v53, %v628_v52 }
 0x123   : > { %v1119_v57 = vpop.f32.mrb[21].mxu0 }
 0x124   : > { %v1120_v58 = vadd.f32 %v1119_v57, %v1118_v54  ;;  %v1121_v59 = vpop.f32.mrb[22].mxu0  ;;  %1161 = vmatmul.mubr.msk.bf16.gmra.mrb[12].mxu1 %vm232_vm0, %v641_v55 }
 0x125   : > { %v1122_v61 = vpop.f32.mrb[23].mxu0 }
 0x126   : > { %v596_v62 = vadd.f32 %v1120_v58, %v259_v56  ;;  %v1123_v63 = vadd.f32 %v1122_v61, %v1121_v59 }
 0x127   : > { %v630_v1 = vld [vmem:[#allocation2 + $0x40] sm:$0xff] }
 0x128   : > { %613 = vst.msk [vmem:[#allocation2 + $0x50] sm:$0xff] %vm232_vm0, %v596_v62  ;;  %v597_v0 = vadd.f32 %v1123_v63, %v260_v60 }
 0x129   : > { %v631_v2 = vld [vmem:[#allocation2 + $0x48] sm:$0xff] }
 0x12a   : > { %614 = vst.msk [vmem:[#allocation2 + $0x58] sm:$0xff] %vm232_vm0, %v597_v0  ;;  %v642_v3 = vpack.c.bf16 %v631_v2, %v630_v1 }
 0x12c   : > { %1164 = vmatprep.mubr.msk.bf16.mxu1 %vm232_vm0, %v642_v3 }
 0x12f   : > { %v632_v6 = vld [vmem:[#allocation2 + $0x50] sm:$0xff] }
 0x131   : > { %v633_v7 = vld [vmem:[#allocation2 + $0x58] sm:$0xff] }
 0x132   : > { %v643_v8 = vpack.c.bf16 %v633_v7, %v632_v6 }
 0x134   : > { %1165 = vmatmul.mubr.msk.bf16.gmra.mrb[16].mxu1 %vm232_vm0, %v643_v8 }
 0x135   : > { %1168 = vmatprep.mubr.msk.bf16.mxu1 %vm232_vm0, %v644_v9 }
 0x13c   : > { %1169 = vmatmul.mubr.msk.bf16.gmra.mrb[20].mxu1 %vm232_vm0, %v645_v12 }
 0x1e7   : > { %v1158_v13 = vpop.f32.mrb[8].mxu1 }
 0x1e8   : > { %v801_v14 = vmax.f32 %v1158_v13, 0.0  ;;  %v736_v15 = vpop.f32.mrb[9].mxu1 }
 0x1e9   : > { %v799_v16 = vmax.f32 %v736_v15, 0.0  ;;  %v1159_v17 = vpop.f32.mrb[10].mxu1 }
 0x1ea   : > { %v1058_v18 = vpack.c.bf16 %v801_v14, %v801_v14  ;;  %v802_v19 = vmax.f32 %v1159_v17, 0.0  ;;  %v739_v20 = vpop.f32.mrb[11].mxu1 }
 0x1eb   : > { %v1056_v21 = vpack.c.bf16 %v799_v16, %v799_v16  ;;  %v800_v22 = vmax.f32 %v739_v20, 0.0 }
 0x1ec   : > { %882 = vst.msk [vmem:[%s1448_s17 + $0x8] sm:$0xf] %vm879_vm1, %v1058_v18  ;;  %v1059_v23 = vpack.c.bf16 %v802_v19, %v802_v19 }
 0x1ed   : > { %880 = vst.msk [vmem:[%s1448_s17] sm:$0xf] %vm879_vm1, %v1056_v21  ;;  %v1057_v24 = vpack.c.bf16 %v800_v22, %v800_v22 }
 0x1ee   : > { %883 = vst.msk [vmem:[%s1448_s17 + $0xc] sm:$0xf] %vm879_vm1, %v1059_v23 }
 0x1ef   : > { %881 = vst.msk [vmem:[%s1448_s17 + $0x4] sm:$0xf] %vm879_vm1, %v1057_v24 }
 0x1f7   : > { %v1162_v25 = vpop.f32.mrb[12].mxu1 }
 0x1f8   : > { %v805_v26 = vmax.f32 %v1162_v25, 0.0  ;;  %v752_v27 = vpop.f32.mrb[13].mxu1 }
 0x1f9   : > { %v803_v28 = vmax.f32 %v752_v27, 0.0  ;;  %v1163_v29 = vpop.f32.mrb[14].mxu1 }
 0x1fa   : > { %v1062_v30 = vpack.c.bf16 %v805_v26, %v805_v26  ;;  %v806_v31 = vmax.f32 %v1163_v29, 0.0  ;;  %v755_v32 = vpop.f32.mrb[15].mxu1 }
 0x1fb   : > { %v1060_v33 = vpack.c.bf16 %v803_v28, %v803_v28  ;;  %v804_v34 = vmax.f32 %v755_v32, 0.0 }
 0x1fc   : > { %886 = vst.msk [vmem:[%s1448_s17 + $0x18] sm:$0xf] %vm879_vm1, %v1062_v30  ;;  %v1063_v35 = vpack.c.bf16 %v806_v31, %v806_v31 }
 0x1fd   : > { %884 = vst.msk [vmem:[%s1448_s17 + $0x10] sm:$0xf] %vm879_vm1, %v1060_v33  ;;  %v1061_v36 = vpack.c.bf16 %v804_v34, %v804_v34 }
 0x1fe   : > { %887 = vst.msk [vmem:[%s1448_s17 + $0x1c] sm:$0xf] %vm879_vm1, %v1063_v35 }
 0x1ff   : > { %885 = vst.msk [vmem:[%s1448_s17 + $0x14] sm:$0xf] %vm879_vm1, %v1061_v36 }
 0x207   : > { %v1166_v37 = vpop.f32.mrb[16].mxu1 }
 0x208   : > { %v809_v38 = vmax.f32 %v1166_v37, 0.0  ;;  %v768_v39 = vpop.f32.mrb[17].mxu1 }
 0x209   : > { %v807_v40 = vmax.f32 %v768_v39, 0.0  ;;  %v1167_v41 = vpop.f32.mrb[18].mxu1 }
 0x20a   : > { %v1066_v42 = vpack.c.bf16 %v809_v38, %v809_v38  ;;  %v810_v43 = vmax.f32 %v1167_v41, 0.0  ;;  %v771_v44 = vpop.f32.mrb[19].mxu1 }
 0x20b   : > { %v1064_v45 = vpack.c.bf16 %v807_v40, %v807_v40  ;;  %v808_v46 = vmax.f32 %v771_v44, 0.0 }
 0x20c   : > { %890 = vst.msk [vmem:[%s1448_s17 + $0x28] sm:$0xf] %vm879_vm1, %v1066_v42  ;;  %v1067_v47 = vpack.c.bf16 %v810_v43, %v810_v43 }
 0x20d   : > { %888 = vst.msk [vmem:[%s1448_s17 + $0x20] sm:$0xf] %vm879_vm1, %v1064_v45  ;;  %v1065_v48 = vpack.c.bf16 %v808_v46, %v808_v46 }
 0x20e   : > { %891 = vst.msk [vmem:[%s1448_s17 + $0x2c] sm:$0xf] %vm879_vm1, %v1067_v47 }
 0x20f   : > { %889 = vst.msk [vmem:[%s1448_s17 + $0x24] sm:$0xf] %vm879_vm1, %v1065_v48  ;;  %v1170_v49 = vpop.f32.mrb[20].mxu1 }
 0x210   : > { %v813_v50 = vmax.f32 %v1170_v49, 0.0  ;;  %v784_v51 = vpop.f32.mrb[21].mxu1 }
 0x211   : > { %v811_v52 = vmax.f32 %v784_v51, 0.0  ;;  %v1171_v53 = vpop.f32.mrb[22].mxu1 }
 0x212   : > { %v1070_v54 = vpack.c.bf16 %v813_v50, %v813_v50  ;;  %v814_v55 = vmax.f32 %v1171_v53, 0.0  ;;  %v787_v56 = vpop.f32.mrb[23].mxu1 }
 0x213   : > { %v1068_v57 = vpack.c.bf16 %v811_v52, %v811_v52  ;;  %v812_v58 = vmax.f32 %v787_v56, 0.0 }
 0x214   : > { %894 = vst.msk [vmem:[%s1448_s17 + $0x38] sm:$0xf] %vm879_vm1, %v1070_v54  ;;  %v1071_v59 = vpack.c.bf16 %v814_v55, %v814_v55 }
 0x215   : > { %892 = vst.msk [vmem:[%s1448_s17 + $0x30] sm:$0xf] %vm879_vm1, %v1068_v57  ;;  %v1069_v60 = vpack.c.bf16 %v812_v58, %v812_v58 }
 0x216   : > { %895 = vst.msk [vmem:[%s1448_s17 + $0x3c] sm:$0xf] %vm879_vm1, %v1071_v59 }
 0x217   : > { %893 = vst.msk [vmem:[%s1448_s17 + $0x34] sm:$0xf] %vm879_vm1, %v1069_v60 }
 0x218 PF: > { %s13_s14 = sadd.s32 1, %s1279_s14   ;;  %s1495_s12 = smov %s1275_s13 }
 0x219   : > { %p10_p5 = scmp.ge.s32.totalorder %s13_s14, 4   ;;  %s1496_s13 = smov %s1498_s15 }
 0x21b   :  { %12 = sbr.rel (!%p10_p5) target bundleno = 2 (0x2), region = 73 }

// kernel: gae_forward.11
= control target key start
LH: loop header
LB: loop body
LE: loop exit
PB: predicated region body
PF: predicated region fallthrough
CT: control target
= control target key end

     0   :  { %s1302_s12 = smov 0   ;;  %s1304_s13 = smov 0   ;;  %s1491_s0 = inlined_call_operand.vmem [shape: bf16[256,256], index: 0, kind: input, shape index: {}]   ;;  %s1492_s1 = inlined_call_operand.vmem [shape: bf16[256,64], index: 1, kind: input, shape index: {}]   ;;  %s1493_s2 = inlined_call_operand.vmem [shape: bf16[64,32], index: 2, kind: input, shape index: {}]   ;;  %s1494_s3 = inlined_call_operand.vmem [shape: bf16[256,32], index: 3, kind: output, shape index: {}]  }
   0x1   :  { %s1306_s14 = smov 0  }
   0x2 LB: > { %s25_s15 = sadd.s32 1, %s1275_s13  ;;  %p987_p0 = scmp.ge.s32.totalorder %s1279_s14, 1  ;;  %s1279_s14 = sphi %s1306_s14, %s13_s14   ;;  %s1275_s13 = sphi %s1304_s13, %s1496_s13   ;;  %s1271_s12 = sphi %s1302_s12, %s1495_s12  }
   0x3   : > { %p27_p1 = scmp.ge.s32.totalorder %s25_s15, 2  ;;  %p169_p2 = scmp.lt.s32.totalorder %s1279_s14, 3 }
   0x5   : > { %s1498_s15 = smov (%p27_p1, %s25_s15), 0  ;;  %p170_p3 = pnand %p987_p0, %p169_p2 }
   0x6   : > { %v1213_v0 = vld [vmem:[%s1492_s1 + $0x40] sm:$0xff] (!%p170_p3)   ;;  %s988_s18 = sshll.u32 (!%p170_p3), %s1271_s12, 4  ;;  %v1215_v2 = vld [vmem:[%s1492_s1 + $0x48] sm:$0xff] (!%p170_p3)   ;;  %v1217_v4 = vld [vmem:[%s1492_s1 + $0x50] sm:$0xff] (!%p170_p3)   ;;  %vm232_vm0 = vcmask (!%p170_p3), 523264   ;;  %v1281_v32 = vmov (!%p170_p3), 0.0  }
   0x7   : > { %173 = sbr.rel (%p170_p3) target bundleno = 536 (0x218), region = 32  ;;  %v1214_v1 = vld [vmem:[%s1492_s1] sm:$0xff] (!%p170_p3)   ;;  %1072 = vmatprep.subr.bf16.mxu0 (!%p170_p3), %v1213_v0  ;;  %1172 = vmatprep.subr.bf16.mxu1 (!%p170_p3), %v1213_v0  ;;  %v1216_v3 = vld [vmem:[%s1492_s1 + $0x8] sm:$0xff] (!%p170_p3)   ;;  %p205_p4 = scmp.lt.s32.totalorder (!%p170_p3), %s988_s18, 31  ;;  %v1218_v5 = vld [vmem:[%s1492_s1 + $0x10] sm:$0xff] (!%p170_p3)   ;;  %233 = vst.msk [vmem:[#allocation2] sm:$0xff] (!%p170_p3), %vm232_vm0, %v1281_v32 }
   0x8   : > { %1073 = vmatpush3.bf16.msra.mxu0 (!%p170_p3), %v1214_v1  ;;  %1180 = vmatpush3.bf16.msra.mxu1 (!%p170_p3), %v1214_v1  ;;  %v1219_v6 = vld [vmem:[%s1492_s1 + $0x58] sm:$0xff] (!%p170_p3)   ;;  %v1221_v8 = vld [vmem:[%s1492_s1 + $0x60] sm:$0xff] (!%p170_p3)   ;;  %v1223_v10 = vld [vmem:[%s1492_s1 + $0x68] sm:$0xff] (!%p170_p3)   ;;  %234 = vst.msk [vmem:[#allocation2 + $0x8] sm:$0xff] (!%p170_p3), %vm232_vm0, %v1281_v32  ;;  %vm879_vm1 = vcmask (!%p170_p3), 257024  }
   0x9   : > { %1074 = vmatprep.subr.bf16.mxu0 (!%p170_p3), %v1215_v2  ;;  %1173 = vmatprep.subr.bf16.mxu1 (!%p170_p3), %v1215_v2  ;;  %v1220_v7 = vld [vmem:[%s1492_s1 + $0x18] sm:$0xff] (!%p170_p3)   ;;  %v1222_v9 = vld [vmem:[%s1492_s1 + $0x20] sm:$0xff] (!%p170_p3)   ;;  %v1224_v12 = vld [vmem:[%s1492_s1 + $0x28] sm:$0xff] (!%p170_p3)   ;;  %235 = vst.msk [vmem:[#allocation2 + $0x10] sm:$0xff] (!%p170_p3), %vm232_vm0, %v1281_v32 }
   0xa   : > { %v1225_v13 = vld [vmem:[%s1492_s1 + $0x70] sm:$0xff] (!%p170_p3)   ;;  %v1227_v16 = vld [vmem:[%s1492_s1 + $0x78] sm:$0xff] (!%p170_p3)   ;;  %236 = vst.msk [vmem:[#allocation2 + $0x18] sm:$0xff] (!%p170_p3), %vm232_vm0, %v1281_v32  ;;  %237 = vst.msk [vmem:[#allocation2 + $0x20] sm:$0xff] (!%p170_p3), %vm232_vm0, %v1281_v32 }
   0xb   : > { %v1226_v14 = vld [vmem:[%s1492_s1 + $0x30] sm:$0xff] (!%p170_p3)   ;;  %v1228_v17 = vld [vmem:[%s1492_s1 + $0x38] sm:$0xff] (!%p170_p3)   ;;  %238 = vst.msk [vmem:[#allocation2 + $0x28] sm:$0xff] (!%p170_p3), %vm232_vm0, %v1281_v32  ;;  %239 = vst.msk [vmem:[#allocation2 + $0x30] sm:$0xff] (!%p170_p3), %vm232_vm0, %v1281_v32 }
   0xc   : > { %1075 = vmatpush3.bf16.msra.mxu0 (!%p170_p3), %v1216_v3  ;;  %1181 = vmatpush3.bf16.msra.mxu1 (!%p170_p3), %v1216_v3  ;;  %240 = vst.msk [vmem:[#allocation2 + $0x38] sm:$0xff] (!%p170_p3), %vm232_vm0, %v1281_v32  ;;  %241 = vst.msk [vmem:[#allocation2 + $0x40] sm:$0xff] (!%p170_p3), %vm232_vm0, %v1281_v32  ;;  %v1253_v33 = vld [vmem:[%s1493_s2] sm:$0xff] (!%p170_p3)   ;;  %v1254_v34 = vld [vmem:[%s1493_s2 + $0x8] sm:$0xff] (!%p170_p3)  }
   0xd   : > { %1076 = vmatprep.subr.bf16.mxu0 (!%p170_p3), %v1217_v4  ;;  %1174 = vmatprep.subr.bf16.mxu1 (!%p170_p3), %v1217_v4  ;;  %242 = vst.msk [vmem:[#allocation2 + $0x48] sm:$0xff] (!%p170_p3), %vm232_vm0, %v1281_v32  ;;  %243 = vst.msk [vmem:[#allocation2 + $0x50] sm:$0xff] (!%p170_p3), %vm232_vm0, %v1281_v32  ;;  %v1255_v35 = vld [vmem:[%s1493_s2 + $0x10] sm:$0xff] (!%p170_p3)   ;;  %v1256_v36 = vld [vmem:[%s1493_s2 + $0x18] sm:$0xff] (!%p170_p3)  }
   0xe   : > { %s1500_s18 = smov (!%p205_p4, %s988_s18), 31  ;;  %244 = vst.msk [vmem:[#allocation2 + $0x58] sm:$0xff] %vm232_vm0, %v1281_v32  ;;  %245 = vst.msk [vmem:[#allocation2 + $0x60] sm:$0xff] %vm232_vm0, %v1281_v32  ;;  %v249_v38 = vld [vmem:[#allocation2] sm:$0xff] }
   0xf   : > { %s1055_s6 = sshll.u32 %s1500_s18, 3  ;;  %246 = vst.msk [vmem:[#allocation2 + $0x68] sm:$0xff] %vm232_vm0, %v1281_v32  ;;  %247 = vst.msk [vmem:[#allocation2 + $0x70] sm:$0xff] %vm232_vm0, %v1281_v32  ;;  %v250_v45 = vld [vmem:[#allocation2 + $0x8] sm:$0xff] }
  0x10   : > { %1077 = vmatpush3.bf16.msra.mxu0 %v1218_v5  ;;  %1182 = vmatpush3.bf16.msra.mxu1 %v1218_v5  ;;  %s1353_s11 = scalar_lea.vmem %s1491_s0, %s1055_s6  ;;  %248 = vst.msk [vmem:[#allocation2 + $0x78] sm:$0xff] %vm232_vm0, %v1281_v32  ;;  %v251_v58 = vld [vmem:[#allocation2 + $0x10] sm:$0xff] }
  0x11   : > { %1078 = vmatprep.subr.bf16.mxu0 %v1219_v6  ;;  %1175 = vmatprep.subr.bf16.mxu1 %v1219_v6  ;;  %v1231_v11 = vld [vmem:[%s1353_s11 + $0x4] ss:$8 sps:$4 sm:$0xff]   ;;  %v1229_v18 = vld [vmem:[%s1353_s11] ss:$8 sps:$4 sm:$0xff]   ;;  %v1232_v19 = vld [vmem:[%s1353_s11 + $0x14] ss:$8 sps:$4 sm:$0xff]  }
  0x12   : > { %521 = vmatprep.mubr.bf16.mxu0 %v1231_v11  ;;  %v1246_v15 = vld [vmem:[%s1353_s11 + $0x64] ss:$8 sps:$4 sm:$0xff]   ;;  %v1244_v20 = vld [vmem:[%s1353_s11 + $0x60] ss:$8 sps:$4 sm:$0xff]   ;;  %v1250_v21 = vld [vmem:[%s1353_s11 + $0x74] ss:$8 sps:$4 sm:$0xff]  }
  0x13   : > { %569 = vmatprep.mubr.bf16.mxu1 %v1246_v15  ;;  %v1234_v22 = vld [vmem:[%s1353_s11 + $0x10] ss:$8 sps:$4 sm:$0xff]   ;;  %v1235_v23 = vld [vmem:[%s1353_s11 + $0x24] ss:$8 sps:$4 sm:$0xff]   ;;  %v1237_v25 = vld [vmem:[%s1353_s11 + $0x20] ss:$8 sps:$4 sm:$0xff]  }
  0x14   : > { %1079 = vmatpush3.bf16.msra.mxu0 %v1220_v7  ;;  %1183 = vmatpush3.bf16.msra.mxu1 %v1220_v7  ;;  %v1252_v24 = vld [vmem:[%s1353_s11 + $0x70] ss:$8 sps:$4 sm:$0xff]   ;;  %v1238_v26 = vld [vmem:[%s1353_s11 + $0x34] ss:$8 sps:$4 sm:$0xff]   ;;  %v1241_v28 = vld [vmem:[%s1353_s11 + $0x44] ss:$8 sps:$4 sm:$0xff]  }
  0x15   : > { %1080 = vmatprep.subr.bf16.mxu0 %v1221_v8  ;;  %1176 = vmatprep.subr.bf16.mxu1 %v1221_v8  ;;  %v1240_v27 = vld [vmem:[%s1353_s11 + $0x30] ss:$8 sps:$4 sm:$0xff]   ;;  %v1243_v29 = vld [vmem:[%s1353_s11 + $0x40] ss:$8 sps:$4 sm:$0xff]   ;;  %v1247_v30 = vld [vmem:[%s1353_s11 + $0x54] ss:$8 sps:$4 sm:$0xff]  }
  0x16   : > { %v1249_v31 = vld [vmem:[%s1353_s11 + $0x50] ss:$8 sps:$4 sm:$0xff]   ;;  %v261_v43 = vld [vmem:[#allocation2 + $0x60] sm:$0xff]  ;;  %v262_v51 = vld [vmem:[#allocation2 + $0x68] sm:$0xff]  ;;  %s992_s11 = sshll.u32 %s1500_s18, 2 }
  0x17   : > { %v263_v63 = vld [vmem:[#allocation2 + $0x70] sm:$0xff]  ;;  %v252_v1 = vld [vmem:[#allocation2 + $0x18] sm:$0xff]  ;;  %s1448_s17 = scalar_lea.vmem %s1494_s3, %s992_s11 }
  0x18   : > { %1081 = vmatpush3.bf16.msra.mxu0 %v1222_v9  ;;  %1184 = vmatpush3.bf16.msra.mxu1 %v1222_v9  ;;  %v264_v7 = vld [vmem:[#allocation2 + $0x78] sm:$0xff] }
  0x19   : > { %1082 = vmatprep.subr.bf16.mxu0 %v1223_v10  ;;  %1177 = vmatprep.subr.bf16.mxu1 %v1223_v10 }
  0x1c   : > { %1083 = vmatpush3.bf16.msra.mxu0 %v1224_v12  ;;  %1185 = vmatpush3.bf16.msra.mxu1 %v1224_v12 }
  0x1d   : > { %1084 = vmatprep.subr.bf16.mxu0 %v1225_v13  ;;  %1178 = vmatprep.subr.bf16.mxu1 %v1225_v13 }
  0x20   : > { %1085 = vmatpush3.bf16.msra.mxu0 %v1226_v14  ;;  %1186 = vmatpush3.bf16.msra.mxu1 %v1226_v14 }
  0x21   : > { %1086 = vmatprep.subr.bf16.mxu0 %v1227_v16  ;;  %1179 = vmatprep.subr.bf16.mxu1 %v1227_v16 }
  0x24   : > { %1087 = vmatpush3.bf16.msra.mxu0 %v1228_v17  ;;  %1187 = vmatpush3.bf16.msra.mxu1 %v1228_v17  ;;  %v253_v17 = vld [vmem:[#allocation2 + $0x20] sm:$0xff] }
  0x25   : > { %1148 = vmatprep.subr.bf16.mxu1 %v1253_v33 }
  0x27   : > { %522 = vmatmul.mubr.bf16.vlgmr.msra.gmra.mrb[0].mxu0 %v1229_v18  ;;  %570 = vmatmul.mubr.bf16.vlgmr.msra.gmra.mrb[0].mxu1 %v1244_v20 }
  0x28   : > { %529 = vmatprep.mubr.bf16.mxu0 %v1232_v19  ;;  %577 = vmatprep.mubr.bf16.mxu1 %v1250_v21  ;;  %v254_v21 = vld [vmem:[#allocation2 + $0x28] sm:$0xff] }
  0x29   : > { %1149 = vmatpush3.bf16.msra.mxu1 %v1253_v33 }
  0x2a   : > { %1150 = vmatprep.subr.bf16.mxu1 %v1254_v34 }
  0x2d   : > { %1151 = vmatpush3.bf16.msra.mxu1 %v1254_v34  ;;  %v256_v34 = vld [vmem:[#allocation2 + $0x38] sm:$0xff] }
  0x2e   : > { %1152 = vmatprep.subr.bf16.mxu1 %v1255_v35 }
  0x2f   : > { %530 = vmatmul.mubr.bf16.gmra.mrb[4].mxu0 %v1234_v22  ;;  %578 = vmatmul.mubr.bf16.gmra.mrb[4].mxu1 %v1252_v24 }
  0x30   : > { %537 = vmatprep.mubr.bf16.mxu0 %v1235_v23 }
  0x31   : > { %1153 = vmatpush3.bf16.msra.mxu1 %v1255_v35 }
  0x32   : > { %1154 = vmatprep.subr.bf16.mxu1 %v1256_v36 }
  0x35   : > { %1155 = vmatpush3.bf16.msra.mxu1 %v1256_v36 }
  0x37   : > { %538 = vmatmul.mubr.bf16.gmra.mrb[8].mxu0 %v1237_v25 }
  0x38   : > { %545 = vmatprep.mubr.bf16.mxu0 %v1238_v26 }
  0x3f   : > { %546 = vmatmul.mubr.bf16.gmra.mrb[12].mxu0 %v1240_v27 }
  0x40   : > { %553 = vmatprep.mubr.bf16.mxu0 %v1241_v28 }
  0x47   : > { %554 = vmatmul.mubr.bf16.gmra.mrb[16].mxu0 %v1243_v29 }
  0x48   : > { %561 = vmatprep.mubr.bf16.mxu0 %v1247_v30  ;;  %v255_v30 = vld [vmem:[#allocation2 + $0x30] sm:$0xff] }
  0x4f   : > { %562 = vmatmul.mubr.bf16.gmra.mrb[20].mxu0 %v1249_v31 }
  0xfa   : > { %v1088_v37 = vpop.f32.mrb[0].mxu0  ;;  %v1124_v40 = vpop.f32.mrb[0].mxu1 }
  0xfb   : > { %v1089_v39 = vpop.f32.mrb[1].mxu0  ;;  %v1125_v44 = vpop.f32.mrb[1].mxu1 }
  0xfc   : > { %v1090_v41 = vadd.f32 %v1089_v39, %v1088_v37  ;;  %v1091_v42 = vpop.f32.mrb[2].mxu0  ;;  %v1126_v47 = vadd.f32 %v1125_v44, %v1124_v40  ;;  %v1127_v48 = vpop.f32.mrb[2].mxu1 }
  0xfd   : > { %v1092_v46 = vpop.f32.mrb[3].mxu0  ;;  %v1128_v52 = vpop.f32.mrb[3].mxu1 }
  0xfe   : > { %v586_v49 = vadd.f32 %v1090_v41, %v249_v38  ;;  %v1093_v50 = vadd.f32 %v1092_v46, %v1091_v42  ;;  %v598_v53 = vadd.f32 %v1126_v47, %v261_v43  ;;  %v1129_v54 = vadd.f32 %v1128_v52, %v1127_v48  ;;  %v257_v43 = vld [vmem:[#allocation2 + $0x40] sm:$0xff]  ;;  %v258_v47 = vld [vmem:[#allocation2 + $0x48] sm:$0xff] }
 0x100   : > { %603 = vst.msk [vmem:[#allocation2] sm:$0xff] %vm232_vm0, %v586_v49  ;;  %v587_v55 = vadd.f32 %v1093_v50, %v250_v45  ;;  %615 = vst.msk [vmem:[#allocation2 + $0x60] sm:$0xff] %vm232_vm0, %v598_v53  ;;  %v599_v56 = vadd.f32 %v1129_v54, %v262_v51 }
 0x102   : > { %604 = vst.msk [vmem:[#allocation2 + $0x8] sm:$0xff] %vm232_vm0, %v587_v55  ;;  %v1094_v57 = vpop.f32.mrb[4].mxu0  ;;  %616 = vst.msk [vmem:[#allocation2 + $0x68] sm:$0xff] %vm232_vm0, %v599_v56  ;;  %v1130_v60 = vpop.f32.mrb[4].mxu1  ;;  %v259_v56 = vld [vmem:[#allocation2 + $0x50] sm:$0xff] }
 0x103   : > { %v1095_v59 = vpop.f32.mrb[5].mxu0  ;;  %v1131_v0 = vpop.f32.mrb[5].mxu1 }
 0x104   : > { %v1096_v61 = vadd.f32 %v1095_v59, %v1094_v57  ;;  %v1097_v62 = vpop.f32.mrb[6].mxu0  ;;  %v1132_v3 = vadd.f32 %v1131_v0, %v1130_v60  ;;  %v1133_v4 = vpop.f32.mrb[6].mxu1  ;;  %v260_v60 = vld [vmem:[#allocation2 + $0x58] sm:$0xff] }
 0x105   : > { %v1098_v2 = vpop.f32.mrb[7].mxu0  ;;  %v1134_v8 = vpop.f32.mrb[7].mxu1 }
 0x106   : > { %v588_v5 = vadd.f32 %v1096_v61, %v251_v58  ;;  %v1099_v6 = vadd.f32 %v1098_v2, %v1097_v62  ;;  %v600_v9 = vadd.f32 %v1132_v3, %v263_v63  ;;  %v1135_v10 = vadd.f32 %v1134_v8, %v1133_v4 }
 0x107   : > { %v622_v12 = vld [vmem:[#allocation2] sm:$0xff] }
 0x108   : > { %605 = vst.msk [vmem:[#allocation2 + $0x10] sm:$0xff] %vm232_vm0, %v588_v5  ;;  %v589_v11 = vadd.f32 %v1099_v6, %v252_v1  ;;  %617 = vst.msk [vmem:[#allocation2 + $0x70] sm:$0xff] %vm232_vm0, %v600_v9  ;;  %v601_v14 = vadd.f32 %v1135_v10, %v264_v7  ;;  %v634_v4 = vld [vmem:[#allocation2 + $0x60] sm:$0xff] }
 0x109   : > { %v623_v13 = vld [vmem:[#allocation2 + $0x8] sm:$0xff] }
 0x10a   : > { %606 = vst.msk [vmem:[#allocation2 + $0x18] sm:$0xff] %vm232_vm0, %v589_v11  ;;  %v1100_v15 = vpop.f32.mrb[8].mxu0  ;;  %v638_v16 = vpack.c.bf16 %v623_v13, %v622_v12  ;;  %618 = vst.msk [vmem:[#allocation2 + $0x78] sm:$0xff] %vm232_vm0, %v601_v14  ;;  %v635_v5 = vld [vmem:[#allocation2 + $0x68] sm:$0xff] }
 0x10b   : > { %v1101_v18 = vpop.f32.mrb[9].mxu0  ;;  %v644_v9 = vpack.c.bf16 %v635_v5, %v634_v4 }
 0x10c   : > { %v1102_v19 = vadd.f32 %v1101_v18, %v1100_v15  ;;  %v1103_v20 = vpop.f32.mrb[10].mxu0  ;;  %1156 = vmatprep.mubr.msk.bf16.mxu1 %vm232_vm0, %v638_v16 }
 0x10d   : > { %v1104_v22 = vpop.f32.mrb[11].mxu0 }
 0x10e   : > { %v590_v23 = vadd.f32 %v1102_v19, %v253_v17  ;;  %v1105_v24 = vadd.f32 %v1104_v22, %v1103_v20 }
 0x10f   : > { %v624_v26 = vld [vmem:[#allocation2 + $0x10] sm:$0xff] }
 0x110   : > { %607 = vst.msk [vmem:[#allocation2 + $0x20] sm:$0xff] %vm232_vm0, %v590_v23  ;;  %v591_v25 = vadd.f32 %v1105_v24, %v254_v21  ;;  %v636_v10 = vld [vmem:[#allocation2 + $0x70] sm:$0xff] }
 0x111   : > { %v625_v27 = vld [vmem:[#allocation2 + $0x18] sm:$0xff] }
 0x112   : > { %608 = vst.msk [vmem:[#allocation2 + $0x28] sm:$0xff] %vm232_vm0, %v591_v25  ;;  %v1106_v28 = vpop.f32.mrb[12].mxu0  ;;  %v639_v29 = vpack.c.bf16 %v625_v27, %v624_v26  ;;  %v637_v11 = vld [vmem:[#allocation2 + $0x78] sm:$0xff] }
 0x113   : > { %v1107_v31 = vpop.f32.mrb[13].mxu0  ;;  %v645_v12 = vpack.c.bf16 %v637_v11, %v636_v10 }
 0x114   : > { %v1108_v32 = vadd.f32 %v1107_v31, %v1106_v28  ;;  %v1109_v33 = vpop.f32.mrb[14].mxu0  ;;  %1157 = vmatmul.mubr.msk.bf16.vlgmr.msra.gmra.mrb[8].mxu1 %vm232_vm0, %v639_v29 }
 0x115   : > { %v1110_v35 = vpop.f32.mrb[15].mxu0 }
 0x116   : > { %v592_v36 = vadd.f32 %v1108_v32, %v255_v30  ;;  %v1111_v37 = vadd.f32 %v1110_v35, %v1109_v33 }
 0x117   : > { %v626_v39 = vld [vmem:[#allocation2 + $0x20] sm:$0xff] }
 0x118   : > { %609 = vst.msk [vmem:[#allocation2 + $0x30] sm:$0xff] %vm232_vm0, %v592_v36  ;;  %v593_v38 = vadd.f32 %v1111_v37, %v256_v34 }
 0x119   : > { %v627_v40 = vld [vmem:[#allocation2 + $0x28] sm:$0xff] }
 0x11a   : > { %610 = vst.msk [vmem:[#allocation2 + $0x38] sm:$0xff] %vm232_vm0, %v593_v38  ;;  %v1112_v41 = vpop.f32.mrb[16].mxu0  ;;  %v640_v42 = vpack.c.bf16 %v627_v40, %v626_v39 }
 0x11b   : > { %v1113_v44 = vpop.f32.mrb[17].mxu0 }
 0x11c   : > { %v1114_v45 = vadd.f32 %v1113_v44, %v1112_v41  ;;  %v1115_v46 = vpop.f32.mrb[18].mxu0  ;;  %1160 = vmatprep.mubr.msk.bf16.mxu1 %vm232_vm0, %v640_v42 }
 0x11d   : > { %v1116_v48 = vpop.f32.mrb[19].mxu0 }
 0x11e   : > { %v594_v49 = vadd.f32 %v1114_v45, %v257_v43  ;;  %v1117_v50 = vadd.f32 %v1116_v48, %v1115_v46 }
 0x11f   : > { %v628_v52 = vld [vmem:[#allocation2 + $0x30] sm:$0xff] }
 0x120   : > { %611 = vst.msk [vmem:[#allocation2 + $0x40] sm:$0xff] %vm232_vm0, %v594_v49  ;;  %v595_v51 = vadd.f32 %v1117_v50, %v258_v47 }
 0x121   : > { %v629_v53 = vld [vmem:[#allocation2 + $0x38] sm:$0xff] }
 0x122   : > { %612 = vst.msk [vmem:[#allocation2 + $0x48] sm:$0xff] %vm232_vm0, %v595_v51  ;;  %v1118_v54 = vpop.f32.mrb[20].mxu0  ;;  %v641_v55 = vpack.c.bf16 %v629_v53, %v628_v52 }
 0x123   : > { %v1119_v57 = vpop.f32.mrb[21].mxu0 }
 0x124   : > { %v1120_v58 = vadd.f32 %v1119_v57, %v1118_v54  ;;  %v1121_v59 = vpop.f32.mrb[22].mxu0  ;;  %1161 = vmatmul.mubr.msk.bf16.gmra.mrb[12].mxu1 %vm232_vm0, %v641_v55 }
 0x125   : > { %v1122_v61 = vpop.f32.mrb[23].mxu0 }
 0x126   : > { %v596_v62 = vadd.f32 %v1120_v58, %v259_v56  ;;  %v1123_v63 = vadd.f32 %v1122_v61, %v1121_v59 }
 0x127   : > { %v630_v1 = vld [vmem:[#allocation2 + $0x40] sm:$0xff] }
 0x128   : > { %613 = vst.msk [vmem:[#allocation2 + $0x50] sm:$0xff] %vm232_vm0, %v596_v62  ;;  %v597_v0 = vadd.f32 %v1123_v63, %v260_v60 }
 0x129   : > { %v631_v2 = vld [vmem:[#allocation2 + $0x48] sm:$0xff] }
 0x12a   : > { %614 = vst.msk [vmem:[#allocation2 + $0x58] sm:$0xff] %vm232_vm0, %v597_v0  ;;  %v642_v3 = vpack.c.bf16 %v631_v2, %v630_v1 }
 0x12c   : > { %1164 = vmatprep.mubr.msk.bf16.mxu1 %vm232_vm0, %v642_v3 }
 0x12f   : > { %v632_v6 = vld [vmem:[#allocation2 + $0x50] sm:$0xff] }
 0x131   : > { %v633_v7 = vld [vmem:[#allocation2 + $0x58] sm:$0xff] }
 0x132   : > { %v643_v8 = vpack.c.bf16 %v633_v7, %v632_v6 }
 0x134   : > { %1165 = vmatmul.mubr.msk.bf16.gmra.mrb[16].mxu1 %vm232_vm0, %v643_v8 }
 0x135   : > { %1168 = vmatprep.mubr.msk.bf16.mxu1 %vm232_vm0, %v644_v9 }
 0x13c   : > { %1169 = vmatmul.mubr.msk.bf16.gmra.mrb[20].mxu1 %vm232_vm0, %v645_v12 }
 0x1e7   : > { %v1158_v13 = vpop.f32.mrb[8].mxu1 }
 0x1e8   : > { %v801_v14 = vmax.f32 %v1158_v13, 0.0  ;;  %v736_v15 = vpop.f32.mrb[9].mxu1 }
 0x1e9   : > { %v799_v16 = vmax.f32 %v736_v15, 0.0  ;;  %v1159_v17 = vpop.f32.mrb[10].mxu1 }
 0x1ea   : > { %v1058_v18 = vpack.c.bf16 %v801_v14, %v801_v14  ;;  %v802_v19 = vmax.f32 %v1159_v17, 0.0  ;;  %v739_v20 = vpop.f32.mrb[11].mxu1 }
 0x1eb   : > { %v1056_v21 = vpack.c.bf16 %v799_v16, %v799_v16  ;;  %v800_v22 = vmax.f32 %v739_v20, 0.0 }
 0x1ec   : > { %882 = vst.msk [vmem:[%s1448_s17 + $0x8] sm:$0xf] %vm879_vm1, %v1058_v18  ;;  %v1059_v23 = vpack.c.bf16 %v802_v19, %v802_v19 }
 0x1ed   : > { %880 = vst.msk [vmem:[%s1448_s17] sm:$0xf] %vm879_vm1, %v1056_v21  ;;  %v1057_v24 = vpack.c.bf16 %v800_v22, %v800_v22 }
 0x1ee   : > { %883 = vst.msk [vmem:[%s1448_s17 + $0xc] sm:$0xf] %vm879_vm1, %v1059_v23 }
 0x1ef   : > { %881 = vst.msk [vmem:[%s1448_s17 + $0x4] sm:$0xf] %vm879_vm1, %v1057_v24 }
 0x1f7   : > { %v1162_v25 = vpop.f32.mrb[12].mxu1 }
 0x1f8   : > { %v805_v26 = vmax.f32 %v1162_v25, 0.0  ;;  %v752_v27 = vpop.f32.mrb[13].mxu1 }
 0x1f9   : > { %v803_v28 = vmax.f32 %v752_v27, 0.0  ;;  %v1163_v29 = vpop.f32.mrb[14].mxu1 }
 0x1fa   : > { %v1062_v30 = vpack.c.bf16 %v805_v26, %v805_v26  ;;  %v806_v31 = vmax.f32 %v1163_v29, 0.0  ;;  %v755_v32 = vpop.f32.mrb[15].mxu1 }
 0x1fb   : > { %v1060_v33 = vpack.c.bf16 %v803_v28, %v803_v28  ;;  %v804_v34 = vmax.f32 %v755_v32, 0.0 }
 0x1fc   : > { %886 = vst.msk [vmem:[%s1448_s17 + $0x18] sm:$0xf] %vm879_vm1, %v1062_v30  ;;  %v1063_v35 = vpack.c.bf16 %v806_v31, %v806_v31 }
 0x1fd   : > { %884 = vst.msk [vmem:[%s1448_s17 + $0x10] sm:$0xf] %vm879_vm1, %v1060_v33  ;;  %v1061_v36 = vpack.c.bf16 %v804_v34, %v804_v34 }
 0x1fe   : > { %887 = vst.msk [vmem:[%s1448_s17 + $0x1c] sm:$0xf] %vm879_vm1, %v1063_v35 }
 0x1ff   : > { %885 = vst.msk [vmem:[%s1448_s17 + $0x14] sm:$0xf] %vm879_vm1, %v1061_v36 }
 0x207   : > { %v1166_v37 = vpop.f32.mrb[16].mxu1 }
 0x208   : > { %v809_v38 = vmax.f32 %v1166_v37, 0.0  ;;  %v768_v39 = vpop.f32.mrb[17].mxu1 }
 0x209   : > { %v807_v40 = vmax.f32 %v768_v39, 0.0  ;;  %v1167_v41 = vpop.f32.mrb[18].mxu1 }
 0x20a   : > { %v1066_v42 = vpack.c.bf16 %v809_v38, %v809_v38  ;;  %v810_v43 = vmax.f32 %v1167_v41, 0.0  ;;  %v771_v44 = vpop.f32.mrb[19].mxu1 }
 0x20b   : > { %v1064_v45 = vpack.c.bf16 %v807_v40, %v807_v40  ;;  %v808_v46 = vmax.f32 %v771_v44, 0.0 }
 0x20c   : > { %890 = vst.msk [vmem:[%s1448_s17 + $0x28] sm:$0xf] %vm879_vm1, %v1066_v42  ;;  %v1067_v47 = vpack.c.bf16 %v810_v43, %v810_v43 }
 0x20d   : > { %888 = vst.msk [vmem:[%s1448_s17 + $0x20] sm:$0xf] %vm879_vm1, %v1064_v45  ;;  %v1065_v48 = vpack.c.bf16 %v808_v46, %v808_v46 }
 0x20e   : > { %891 = vst.msk [vmem:[%s1448_s17 + $0x2c] sm:$0xf] %vm879_vm1, %v1067_v47 }
 0x20f   : > { %889 = vst.msk [vmem:[%s1448_s17 + $0x24] sm:$0xf] %vm879_vm1, %v1065_v48  ;;  %v1170_v49 = vpop.f32.mrb[20].mxu1 }
 0x210   : > { %v813_v50 = vmax.f32 %v1170_v49, 0.0  ;;  %v784_v51 = vpop.f32.mrb[21].mxu1 }
 0x211   : > { %v811_v52 = vmax.f32 %v784_v51, 0.0  ;;  %v1171_v53 = vpop.f32.mrb[22].mxu1 }
 0x212   : > { %v1070_v54 = vpack.c.bf16 %v813_v50, %v813_v50  ;;  %v814_v55 = vmax.f32 %v1171_v53, 0.0  ;;  %v787_v56 = vpop.f32.mrb[23].mxu1 }
 0x213   : > { %v1068_v57 = vpack.c.bf16 %v811_v52, %v811_v52  ;;  %v812_v58 = vmax.f32 %v787_v56, 0.0 }
 0x214   : > { %894 = vst.msk [vmem:[%s1448_s17 + $0x38] sm:$0xf] %vm879_vm1, %v1070_v54  ;;  %v1071_v59 = vpack.c.bf16 %v814_v55, %v814_v55 }
 0x215   : > { %892 = vst.msk [vmem:[%s1448_s17 + $0x30] sm:$0xf] %vm879_vm1, %v1068_v57  ;;  %v1069_v60 = vpack.c.bf16 %v812_v58, %v812_v58 }
 0x216   : > { %895 = vst.msk [vmem:[%s1448_s17 + $0x3c] sm:$0xf] %vm879_vm1, %v1071_v59 }
 0x217   : > { %893 = vst.msk [vmem:[%s1448_s17 + $0x34] sm:$0xf] %vm879_vm1, %v1069_v60 }
 0x218 PF: > { %s13_s14 = sadd.s32 1, %s1279_s14   ;;  %s1495_s12 = smov %s1275_s13 }
 0x219   : > { %p10_p5 = scmp.ge.s32.totalorder %s13_s14, 4   ;;  %s1496_s13 = smov %s1498_s15 }
 0x21b   :  { %12 = sbr.rel (!%p10_p5) target bundleno = 2 (0x2), region = 73 }

// kernel: gae_forward.9
= control target key start
LH: loop header
LB: loop body
LE: loop exit
PB: predicated region body
PF: predicated region fallthrough
CT: control target
= control target key end

     0   :  { %s1263_s12 = smov 0   ;;  %s1265_s13 = smov 0   ;;  %s1443_s0 = inlined_call_operand.vmem [shape: bf16[256,256], index: 0, kind: input, shape index: {}]   ;;  %s1444_s1 = inlined_call_operand.vmem [shape: bf16[256,16], index: 1, kind: input, shape index: {}]   ;;  %s1445_s2 = inlined_call_operand.vmem [shape: bf16[16,64], index: 2, kind: input, shape index: {}]   ;;  %s1446_s3 = inlined_call_operand.vmem [shape: bf16[256,64], index: 3, kind: output, shape index: {}]  }
   0x1   :  { %s1267_s14 = smov 0  }
   0x2 LB: > { %s25_s15 = sadd.s32 1, %s1236_s13  ;;  %p963_p0 = scmp.ge.s32.totalorder %s1240_s14, 1  ;;  %s1240_s14 = sphi %s1267_s14, %s13_s14   ;;  %s1236_s13 = sphi %s1265_s13, %s1448_s13   ;;  %s1232_s12 = sphi %s1263_s12, %s1447_s12  }
   0x3   : > { %p27_p1 = scmp.ge.s32.totalorder %s25_s15, 2  ;;  %p169_p2 = scmp.lt.s32.totalorder %s1240_s14, 3 }
   0x5   : > { %s1450_s15 = smov (%p27_p1, %s25_s15), 0  ;;  %p170_p3 = pnand %p963_p0, %p169_p2 }
   0x6   : > { %v1177_v0 = vld [vmem:[%s1444_s1 + $0x40] sm:$0xff] (!%p170_p3)   ;;  %s964_s18 = sshll.u32 (!%p170_p3), %s1232_s12, 4  ;;  %v1179_v2 = vld [vmem:[%s1444_s1 + $0x48] sm:$0xff] (!%p170_p3)   ;;  %v1181_v4 = vld [vmem:[%s1444_s1 + $0x50] sm:$0xff] (!%p170_p3)   ;;  %vm232_vm0 = vcmask (!%p170_p3), 130048   ;;  %v1242_v32 = vmov (!%p170_p3), 0.0  }
   0x7   : > { %173 = sbr.rel (%p170_p3) target bundleno = 536 (0x218), region = 32  ;;  %v1178_v1 = vld [vmem:[%s1444_s1] sm:$0xff] (!%p170_p3)   ;;  %1045 = vmatprep.subr.bf16.mxu0 (!%p170_p3), %v1177_v0  ;;  %1136 = vmatprep.subr.bf16.mxu1 (!%p170_p3), %v1177_v0  ;;  %v1180_v3 = vld [vmem:[%s1444_s1 + $0x8] sm:$0xff] (!%p170_p3)   ;;  %p205_p4 = scmp.lt.s32.totalorder (!%p170_p3), %s964_s18, 31  ;;  %v1182_v5 = vld [vmem:[%s1444_s1 + $0x10] sm:$0xff] (!%p170_p3)   ;;  %233 = vst.msk [vmem:[#allocation2] sm:$0xff] (!%p170_p3), %vm232_vm0, %v1242_v32 }
   0x8   : > { %1046 = vmatpush3.bf16.msra.mxu0 (!%p170_p3), %v1178_v1  ;;  %1144 = vmatpush3.bf16.msra.mxu1 (!%p170_p3), %v1178_v1  ;;  %v1183_v6 = vld [vmem:[%s1444_s1 + $0x58] sm:$0xff] (!%p170_p3)   ;;  %v1185_v8 = vld [vmem:[%s1444_s1 + $0x60] sm:$0xff] (!%p170_p3)   ;;  %v1187_v10 = vld [vmem:[%s1444_s1 + $0x68] sm:$0xff] (!%p170_p3)   ;;  %234 = vst.msk [vmem:[#allocation2 + $0x8] sm:$0xff] (!%p170_p3), %vm232_vm0, %v1242_v32  ;;  %vm855_vm1 = vcmask (!%p170_p3), 519168  }
   0x9   : > { %1047 = vmatprep.subr.bf16.mxu0 (!%p170_p3), %v1179_v2  ;;  %1137 = vmatprep.subr.bf16.mxu1 (!%p170_p3), %v1179_v2  ;;  %v1184_v7 = vld [vmem:[%s1444_s1 + $0x18] sm:$0xff] (!%p170_p3)   ;;  %v1186_v9 = vld [vmem:[%s1444_s1 + $0x20] sm:$0xff] (!%p170_p3)   ;;  %v1188_v12 = vld [vmem:[%s1444_s1 + $0x28] sm:$0xff] (!%p170_p3)   ;;  %235 = vst.msk [vmem:[#allocation2 + $0x10] sm:$0xff] (!%p170_p3), %vm232_vm0, %v1242_v32 }
   0xa   : > { %v1189_v13 = vld [vmem:[%s1444_s1 + $0x70] sm:$0xff] (!%p170_p3)   ;;  %v1191_v16 = vld [vmem:[%s1444_s1 + $0x78] sm:$0xff] (!%p170_p3)   ;;  %236 = vst.msk [vmem:[#allocation2 + $0x18] sm:$0xff] (!%p170_p3), %vm232_vm0, %v1242_v32  ;;  %237 = vst.msk [vmem:[#allocation2 + $0x20] sm:$0xff] (!%p170_p3), %vm232_vm0, %v1242_v32 }
   0xb   : > { %v1190_v14 = vld [vmem:[%s1444_s1 + $0x30] sm:$0xff] (!%p170_p3)   ;;  %v1192_v17 = vld [vmem:[%s1444_s1 + $0x38] sm:$0xff] (!%p170_p3)   ;;  %238 = vst.msk [vmem:[#allocation2 + $0x28] sm:$0xff] (!%p170_p3), %vm232_vm0, %v1242_v32  ;;  %239 = vst.msk [vmem:[#allocation2 + $0x30] sm:$0xff] (!%p170_p3), %vm232_vm0, %v1242_v32 }
   0xc   : > { %1048 = vmatpush3.bf16.msra.mxu0 (!%p170_p3), %v1180_v3  ;;  %1145 = vmatpush3.bf16.msra.mxu1 (!%p170_p3), %v1180_v3  ;;  %240 = vst.msk [vmem:[#allocation2 + $0x38] sm:$0xff] (!%p170_p3), %vm232_vm0, %v1242_v32  ;;  %241 = vst.msk [vmem:[#allocation2 + $0x40] sm:$0xff] (!%p170_p3), %vm232_vm0, %v1242_v32  ;;  %v1217_v33 = vld [vmem:[%s1445_s2] sm:$0xff] (!%p170_p3)  }
   0xd   : > { %1049 = vmatprep.subr.bf16.mxu0 (!%p170_p3), %v1181_v4  ;;  %1138 = vmatprep.subr.bf16.mxu1 (!%p170_p3), %v1181_v4  ;;  %242 = vst.msk [vmem:[#allocation2 + $0x48] sm:$0xff] (!%p170_p3), %vm232_vm0, %v1242_v32  ;;  %243 = vst.msk [vmem:[#allocation2 + $0x50] sm:$0xff] (!%p170_p3), %vm232_vm0, %v1242_v32 }
   0xe   : > { %s1452_s18 = smov (!%p205_p4, %s964_s18), 31  ;;  %244 = vst.msk [vmem:[#allocation2 + $0x58] sm:$0xff] %vm232_vm0, %v1242_v32  ;;  %245 = vst.msk [vmem:[#allocation2 + $0x60] sm:$0xff] %vm232_vm0, %v1242_v32  ;;  %v249_v35 = vld [vmem:[#allocation2] sm:$0xff] }
   0xf   : > { %s1028_s6 = sshll.u32 %s1452_s18, 3  ;;  %246 = vst.msk [vmem:[#allocation2 + $0x68] sm:$0xff] %vm232_vm0, %v1242_v32  ;;  %247 = vst.msk [vmem:[#allocation2 + $0x70] sm:$0xff] %vm232_vm0, %v1242_v32  ;;  %v250_v42 = vld [vmem:[#allocation2 + $0x8] sm:$0xff]  ;;  %s968_s5 = sshll.u32 %s1452_s18, 2 }
  0x10   : > { %1050 = vmatpush3.bf16.msra.mxu0 %v1182_v5  ;;  %1146 = vmatpush3.bf16.msra.mxu1 %v1182_v5  ;;  %s1314_s11 = scalar_lea.vmem %s1443_s0, %s1028_s6  ;;  %248 = vst.msk [vmem:[#allocation2 + $0x78] sm:$0xff] %vm232_vm0, %v1242_v32  ;;  %v251_v55 = vld [vmem:[#allocation2 + $0x10] sm:$0xff]  ;;  %s1400_s8 = scalar_lea.vmem %s1446_s3, %s968_s5 }
  0x11   : > { %1051 = vmatprep.subr.bf16.mxu0 %v1183_v6  ;;  %1139 = vmatprep.subr.bf16.mxu1 %v1183_v6  ;;  %v1195_v11 = vld [vmem:[%s1314_s11 + $0x4] ss:$8 sps:$4 sm:$0xff]   ;;  %v1193_v18 = vld [vmem:[%s1314_s11] ss:$8 sps:$4 sm:$0xff]   ;;  %v1196_v19 = vld [vmem:[%s1314_s11 + $0x14] ss:$8 sps:$4 sm:$0xff]  }
  0x12   : > { %521 = vmatprep.mubr.bf16.mxu0 %v1195_v11  ;;  %v1210_v15 = vld [vmem:[%s1314_s11 + $0x64] ss:$8 sps:$4 sm:$0xff]   ;;  %v1208_v20 = vld [vmem:[%s1314_s11 + $0x60] ss:$8 sps:$4 sm:$0xff]   ;;  %v1214_v21 = vld [vmem:[%s1314_s11 + $0x74] ss:$8 sps:$4 sm:$0xff]  }
  0x13   : > { %569 = vmatprep.mubr.bf16.mxu1 %v1210_v15  ;;  %v1198_v22 = vld [vmem:[%s1314_s11 + $0x10] ss:$8 sps:$4 sm:$0xff]   ;;  %v1199_v23 = vld [vmem:[%s1314_s11 + $0x24] ss:$8 sps:$4 sm:$0xff]   ;;  %v1201_v25 = vld [vmem:[%s1314_s11 + $0x20] ss:$8 sps:$4 sm:$0xff]  }
  0x14   : > { %1052 = vmatpush3.bf16.msra.mxu0 %v1184_v7  ;;  %1147 = vmatpush3.bf16.msra.mxu1 %v1184_v7  ;;  %v1216_v24 = vld [vmem:[%s1314_s11 + $0x70] ss:$8 sps:$4 sm:$0xff]   ;;  %v1202_v26 = vld [vmem:[%s1314_s11 + $0x34] ss:$8 sps:$4 sm:$0xff]   ;;  %v1205_v28 = vld [vmem:[%s1314_s11 + $0x44] ss:$8 sps:$4 sm:$0xff]  }
  0x15   : > { %1053 = vmatprep.subr.bf16.mxu0 %v1185_v8  ;;  %1140 = vmatprep.subr.bf16.mxu1 %v1185_v8  ;;  %v1204_v27 = vld [vmem:[%s1314_s11 + $0x30] ss:$8 sps:$4 sm:$0xff]   ;;  %v1207_v29 = vld [vmem:[%s1314_s11 + $0x40] ss:$8 sps:$4 sm:$0xff]   ;;  %v1211_v30 = vld [vmem:[%s1314_s11 + $0x54] ss:$8 sps:$4 sm:$0xff]  }
  0x16   : > { %v1213_v31 = vld [vmem:[%s1314_s11 + $0x50] ss:$8 sps:$4 sm:$0xff]   ;;  %v261_v40 = vld [vmem:[#allocation2 + $0x60] sm:$0xff]  ;;  %v262_v48 = vld [vmem:[#allocation2 + $0x68] sm:$0xff] }
  0x17   : > { %v263_v60 = vld [vmem:[#allocation2 + $0x70] sm:$0xff]  ;;  %v252_v62 = vld [vmem:[#allocation2 + $0x18] sm:$0xff] }
  0x18   : > { %1054 = vmatpush3.bf16.msra.mxu0 %v1186_v9  ;;  %1148 = vmatpush3.bf16.msra.mxu1 %v1186_v9  ;;  %v264_v4 = vld [vmem:[#allocation2 + $0x78] sm:$0xff] }
  0x19   : > { %1055 = vmatprep.subr.bf16.mxu0 %v1187_v10  ;;  %1141 = vmatprep.subr.bf16.mxu1 %v1187_v10 }
  0x1c   : > { %1056 = vmatpush3.bf16.msra.mxu0 %v1188_v12  ;;  %1149 = vmatpush3.bf16.msra.mxu1 %v1188_v12 }
  0x1d   : > { %1057 = vmatprep.subr.bf16.mxu0 %v1189_v13  ;;  %1142 = vmatprep.subr.bf16.mxu1 %v1189_v13 }
  0x20   : > { %1058 = vmatpush3.bf16.msra.mxu0 %v1190_v14  ;;  %1150 = vmatpush3.bf16.msra.mxu1 %v1190_v14  ;;  %v253_v14 = vld [vmem:[#allocation2 + $0x20] sm:$0xff] }
  0x21   : > { %1059 = vmatprep.subr.bf16.mxu0 %v1191_v16  ;;  %1143 = vmatprep.subr.bf16.mxu1 %v1191_v16 }
  0x24   : > { %1060 = vmatpush3.bf16.msra.mxu0 %v1192_v17  ;;  %1151 = vmatpush3.bf16.msra.mxu1 %v1192_v17 }
  0x25   : > { %1118 = vmatprep.subr.bf16.mxu1 %v1217_v33 }
  0x27   : > { %522 = vmatmul.mubr.bf16.vlgmr.msra.gmra.mrb[0].mxu0 %v1193_v18  ;;  %570 = vmatmul.mubr.bf16.vlgmr.msra.gmra.mrb[0].mxu1 %v1208_v20  ;;  %v254_v18 = vld [vmem:[#allocation2 + $0x28] sm:$0xff] }
  0x28   : > { %529 = vmatprep.mubr.bf16.mxu0 %v1196_v19  ;;  %577 = vmatprep.mubr.bf16.mxu1 %v1214_v21 }
  0x29   : > { %1119 = vmatpush3.bf16.msra.mxu1 %v1217_v33 }
  0x2f   : > { %530 = vmatmul.mubr.bf16.gmra.mrb[4].mxu0 %v1198_v22  ;;  %578 = vmatmul.mubr.bf16.gmra.mrb[4].mxu1 %v1216_v24 }
  0x30   : > { %537 = vmatprep.mubr.bf16.mxu0 %v1199_v23 }
  0x37   : > { %538 = vmatmul.mubr.bf16.gmra.mrb[8].mxu0 %v1201_v25 }
  0x38   : > { %545 = vmatprep.mubr.bf16.mxu0 %v1202_v26 }
  0x3f   : > { %546 = vmatmul.mubr.bf16.gmra.mrb[12].mxu0 %v1204_v27  ;;  %v255_v27 = vld [vmem:[#allocation2 + $0x30] sm:$0xff] }
  0x40   : > { %553 = vmatprep.mubr.bf16.mxu0 %v1205_v28 }
  0x47   : > { %554 = vmatmul.mubr.bf16.gmra.mrb[16].mxu0 %v1207_v29 }
  0x48   : > { %561 = vmatprep.mubr.bf16.mxu0 %v1211_v30 }
  0x4f   : > { %562 = vmatmul.mubr.bf16.gmra.mrb[20].mxu0 %v1213_v31  ;;  %v256_v31 = vld [vmem:[#allocation2 + $0x38] sm:$0xff] }
  0xfa   : > { %v1061_v34 = vpop.f32.mrb[0].mxu0  ;;  %v1097_v37 = vpop.f32.mrb[0].mxu1 }
  0xfb   : > { %v1062_v36 = vpop.f32.mrb[1].mxu0  ;;  %v1098_v41 = vpop.f32.mrb[1].mxu1 }
  0xfc   : > { %v1063_v38 = vadd.f32 %v1062_v36, %v1061_v34  ;;  %v1064_v39 = vpop.f32.mrb[2].mxu0  ;;  %v1099_v44 = vadd.f32 %v1098_v41, %v1097_v37  ;;  %v1100_v45 = vpop.f32.mrb[2].mxu1 }
  0xfd   : > { %v1065_v43 = vpop.f32.mrb[3].mxu0  ;;  %v1101_v49 = vpop.f32.mrb[3].mxu1 }
  0xfe   : > { %v586_v46 = vadd.f32 %v1063_v38, %v249_v35  ;;  %v1066_v47 = vadd.f32 %v1065_v43, %v1064_v39  ;;  %v598_v50 = vadd.f32 %v1099_v44, %v261_v40  ;;  %v1102_v51 = vadd.f32 %v1101_v49, %v1100_v45  ;;  %v257_v40 = vld [vmem:[#allocation2 + $0x40] sm:$0xff]  ;;  %v258_v44 = vld [vmem:[#allocation2 + $0x48] sm:$0xff] }
 0x100   : > { %603 = vst.msk [vmem:[#allocation2] sm:$0xff] %vm232_vm0, %v586_v46  ;;  %v587_v52 = vadd.f32 %v1066_v47, %v250_v42  ;;  %615 = vst.msk [vmem:[#allocation2 + $0x60] sm:$0xff] %vm232_vm0, %v598_v50  ;;  %v599_v53 = vadd.f32 %v1102_v51, %v262_v48 }
 0x102   : > { %604 = vst.msk [vmem:[#allocation2 + $0x8] sm:$0xff] %vm232_vm0, %v587_v52  ;;  %v1067_v54 = vpop.f32.mrb[4].mxu0  ;;  %616 = vst.msk [vmem:[#allocation2 + $0x68] sm:$0xff] %vm232_vm0, %v599_v53  ;;  %v1103_v57 = vpop.f32.mrb[4].mxu1  ;;  %v259_v53 = vld [vmem:[#allocation2 + $0x50] sm:$0xff] }
 0x103   : > { %v1068_v56 = vpop.f32.mrb[5].mxu0  ;;  %v1104_v61 = vpop.f32.mrb[5].mxu1 }
 0x104   : > { %v1069_v58 = vadd.f32 %v1068_v56, %v1067_v54  ;;  %v1070_v59 = vpop.f32.mrb[6].mxu0  ;;  %v1105_v0 = vadd.f32 %v1104_v61, %v1103_v57  ;;  %v1106_v1 = vpop.f32.mrb[6].mxu1  ;;  %v260_v57 = vld [vmem:[#allocation2 + $0x58] sm:$0xff] }
 0x105   : > { %v1071_v63 = vpop.f32.mrb[7].mxu0  ;;  %v1107_v5 = vpop.f32.mrb[7].mxu1 }
 0x106   : > { %v588_v2 = vadd.f32 %v1069_v58, %v251_v55  ;;  %v1072_v3 = vadd.f32 %v1071_v63, %v1070_v59  ;;  %v600_v6 = vadd.f32 %v1105_v0, %v263_v60  ;;  %v1108_v7 = vadd.f32 %v1107_v5, %v1106_v1 }
 0x107   : > { %v622_v9 = vld [vmem:[#allocation2] sm:$0xff] }
 0x108   : > { %605 = vst.msk [vmem:[#allocation2 + $0x10] sm:$0xff] %vm232_vm0, %v588_v2  ;;  %v589_v8 = vadd.f32 %v1072_v3, %v252_v62  ;;  %617 = vst.msk [vmem:[#allocation2 + $0x70] sm:$0xff] %vm232_vm0, %v600_v6  ;;  %v601_v11 = vadd.f32 %v1108_v7, %v264_v4  ;;  %v634_v1 = vld [vmem:[#allocation2 + $0x60] sm:$0xff] }
 0x109   : > { %v623_v10 = vld [vmem:[#allocation2 + $0x8] sm:$0xff] }
 0x10a   : > { %606 = vst.msk [vmem:[#allocation2 + $0x18] sm:$0xff] %vm232_vm0, %v589_v8  ;;  %v1073_v12 = vpop.f32.mrb[8].mxu0  ;;  %v638_v13 = vpack.c.bf16 %v623_v10, %v622_v9  ;;  %618 = vst.msk [vmem:[#allocation2 + $0x78] sm:$0xff] %vm232_vm0, %v601_v11  ;;  %v635_v2 = vld [vmem:[#allocation2 + $0x68] sm:$0xff] }
 0x10b   : > { %v1074_v15 = vpop.f32.mrb[9].mxu0  ;;  %v644_v6 = vpack.c.bf16 %v635_v2, %v634_v1 }
 0x10c   : > { %v1075_v16 = vadd.f32 %v1074_v15, %v1073_v12  ;;  %v1076_v17 = vpop.f32.mrb[10].mxu0  ;;  %1120 = vmatprep.mubr.msk.bf16.mxu1 %vm232_vm0, %v638_v13 }
 0x10d   : > { %v1077_v19 = vpop.f32.mrb[11].mxu0 }
 0x10e   : > { %v590_v20 = vadd.f32 %v1075_v16, %v253_v14  ;;  %v1078_v21 = vadd.f32 %v1077_v19, %v1076_v17 }
 0x10f   : > { %v624_v23 = vld [vmem:[#allocation2 + $0x10] sm:$0xff] }
 0x110   : > { %607 = vst.msk [vmem:[#allocation2 + $0x20] sm:$0xff] %vm232_vm0, %v590_v20  ;;  %v591_v22 = vadd.f32 %v1078_v21, %v254_v18  ;;  %v636_v7 = vld [vmem:[#allocation2 + $0x70] sm:$0xff] }
 0x111   : > { %v625_v24 = vld [vmem:[#allocation2 + $0x18] sm:$0xff] }
 0x112   : > { %608 = vst.msk [vmem:[#allocation2 + $0x28] sm:$0xff] %vm232_vm0, %v591_v22  ;;  %v1079_v25 = vpop.f32.mrb[12].mxu0  ;;  %v639_v26 = vpack.c.bf16 %v625_v24, %v624_v23  ;;  %v637_v8 = vld [vmem:[#allocation2 + $0x78] sm:$0xff] }
 0x113   : > { %v1080_v28 = vpop.f32.mrb[13].mxu0  ;;  %v645_v9 = vpack.c.bf16 %v637_v8, %v636_v7 }
 0x114   : > { %v1081_v29 = vadd.f32 %v1080_v28, %v1079_v25  ;;  %v1082_v30 = vpop.f32.mrb[14].mxu0  ;;  %1121 = vmatmul.mubr.msk.bf16.vlgmr.msra.gmra.mrb[8].mxu1 %vm232_vm0, %v639_v26 }
 0x115   : > { %v1083_v32 = vpop.f32.mrb[15].mxu0 }
 0x116   : > { %v592_v33 = vadd.f32 %v1081_v29, %v255_v27  ;;  %v1084_v34 = vadd.f32 %v1083_v32, %v1082_v30 }
 0x117   : > { %v626_v36 = vld [vmem:[#allocation2 + $0x20] sm:$0xff] }
 0x118   : > { %609 = vst.msk [vmem:[#allocation2 + $0x30] sm:$0xff] %vm232_vm0, %v592_v33  ;;  %v593_v35 = vadd.f32 %v1084_v34, %v256_v31 }
 0x119   : > { %v627_v37 = vld [vmem:[#allocation2 + $0x28] sm:$0xff] }
 0x11a   : > { %610 = vst.msk [vmem:[#allocation2 + $0x38] sm:$0xff] %vm232_vm0, %v593_v35  ;;  %v1085_v38 = vpop.f32.mrb[16].mxu0  ;;  %v640_v39 = vpack.c.bf16 %v627_v37, %v626_v36 }
 0x11b   : > { %v1086_v41 = vpop.f32.mrb[17].mxu0 }
 0x11c   : > { %v1087_v42 = vadd.f32 %v1086_v41, %v1085_v38  ;;  %v1088_v43 = vpop.f32.mrb[18].mxu0  ;;  %1124 = vmatprep.mubr.msk.bf16.mxu1 %vm232_vm0, %v640_v39 }
 0x11d   : > { %v1089_v45 = vpop.f32.mrb[19].mxu0 }
 0x11e   : > { %v594_v46 = vadd.f32 %v1087_v42, %v257_v40  ;;  %v1090_v47 = vadd.f32 %v1089_v45, %v1088_v43 }
 0x11f   : > { %v628_v49 = vld [vmem:[#allocation2 + $0x30] sm:$0xff] }
 0x120   : > { %611 = vst.msk [vmem:[#allocation2 + $0x40] sm:$0xff] %vm232_vm0, %v594_v46  ;;  %v595_v48 = vadd.f32 %v1090_v47, %v258_v44 }
 0x121   : > { %v629_v50 = vld [vmem:[#allocation2 + $0x38] sm:$0xff] }
 0x122   : > { %612 = vst.msk [vmem:[#allocation2 + $0x48] sm:$0xff] %vm232_vm0, %v595_v48  ;;  %v1091_v51 = vpop.f32.mrb[20].mxu0  ;;  %v641_v52 = vpack.c.bf16 %v629_v50, %v628_v49 }
 0x123   : > { %v1092_v54 = vpop.f32.mrb[21].mxu0 }
 0x124   : > { %v1093_v55 = vadd.f32 %v1092_v54, %v1091_v51  ;;  %v1094_v56 = vpop.f32.mrb[22].mxu0  ;;  %1125 = vmatmul.mubr.msk.bf16.gmra.mrb[12].mxu1 %vm232_vm0, %v641_v52 }
 0x125   : > { %v1095_v58 = vpop.f32.mrb[23].mxu0 }
 0x126   : > { %v596_v59 = vadd.f32 %v1093_v55, %v259_v53  ;;  %v1096_v60 = vadd.f32 %v1095_v58, %v1094_v56 }
 0x127   : > { %v630_v62 = vld [vmem:[#allocation2 + $0x40] sm:$0xff] }
 0x128   : > { %613 = vst.msk [vmem:[#allocation2 + $0x50] sm:$0xff] %vm232_vm0, %v596_v59  ;;  %v597_v61 = vadd.f32 %v1096_v60, %v260_v57 }
 0x129   : > { %v631_v63 = vld [vmem:[#allocation2 + $0x48] sm:$0xff] }
 0x12a   : > { %614 = vst.msk [vmem:[#allocation2 + $0x58] sm:$0xff] %vm232_vm0, %v597_v61  ;;  %v642_v0 = vpack.c.bf16 %v631_v63, %v630_v62 }
 0x12c   : > { %1128 = vmatprep.mubr.msk.bf16.mxu1 %vm232_vm0, %v642_v0 }
 0x12f   : > { %v632_v3 = vld [vmem:[#allocation2 + $0x50] sm:$0xff] }
 0x131   : > { %v633_v4 = vld [vmem:[#allocation2 + $0x58] sm:$0xff] }
 0x132   : > { %v643_v5 = vpack.c.bf16 %v633_v4, %v632_v3 }
 0x134   : > { %1129 = vmatmul.mubr.msk.bf16.gmra.mrb[16].mxu1 %vm232_vm0, %v643_v5 }
 0x135   : > { %1132 = vmatprep.mubr.msk.bf16.mxu1 %vm232_vm0, %v644_v6 }
 0x13c   : > { %1133 = vmatmul.mubr.msk.bf16.gmra.mrb[20].mxu1 %vm232_vm0, %v645_v9 }
 0x1e7   : > { %v1122_v10 = vpop.f32.mrb[8].mxu1 }
 0x1e8   : > { %v777_v11 = vmax.f32 %v1122_v10, 0.0  ;;  %v712_v12 = vpop.f32.mrb[9].mxu1 }
 0x1e9   : > { %v775_v13 = vmax.f32 %v712_v12, 0.0  ;;  %v1123_v14 = vpop.f32.mrb[10].mxu1 }
 0x1ea   : > { %v1031_v15 = vpack.c.bf16 %v777_v11, %v777_v11  ;;  %v778_v16 = vmax.f32 %v1123_v14, 0.0  ;;  %v715_v17 = vpop.f32.mrb[11].mxu1 }
 0x1eb   : > { %v1029_v18 = vpack.c.bf16 %v775_v13, %v775_v13  ;;  %v776_v19 = vmax.f32 %v715_v17, 0.0 }
 0x1ec   : > { %858 = vst.msk [vmem:[%s1400_s8 + $0x8] sm:$0xf] %vm855_vm1, %v1031_v15  ;;  %v1032_v20 = vpack.c.bf16 %v778_v16, %v778_v16 }
 0x1ed   : > { %856 = vst.msk [vmem:[%s1400_s8] sm:$0xf] %vm855_vm1, %v1029_v18  ;;  %v1030_v21 = vpack.c.bf16 %v776_v19, %v776_v19 }
 0x1ee   : > { %859 = vst.msk [vmem:[%s1400_s8 + $0xc] sm:$0xf] %vm855_vm1, %v1032_v20 }
 0x1ef   : > { %857 = vst.msk [vmem:[%s1400_s8 + $0x4] sm:$0xf] %vm855_vm1, %v1030_v21 }
 0x1f7   : > { %v1126_v22 = vpop.f32.mrb[12].mxu1 }
 0x1f8   : > { %v781_v23 = vmax.f32 %v1126_v22, 0.0  ;;  %v728_v24 = vpop.f32.mrb[13].mxu1 }
 0x1f9   : > { %v779_v25 = vmax.f32 %v728_v24, 0.0  ;;  %v1127_v26 = vpop.f32.mrb[14].mxu1 }
 0x1fa   : > { %v1035_v27 = vpack.c.bf16 %v781_v23, %v781_v23  ;;  %v782_v28 = vmax.f32 %v1127_v26, 0.0  ;;  %v731_v29 = vpop.f32.mrb[15].mxu1 }
 0x1fb   : > { %v1033_v30 = vpack.c.bf16 %v779_v25, %v779_v25  ;;  %v780_v31 = vmax.f32 %v731_v29, 0.0 }
 0x1fc   : > { %862 = vst.msk [vmem:[%s1400_s8 + $0x18] sm:$0xf] %vm855_vm1, %v1035_v27  ;;  %v1036_v32 = vpack.c.bf16 %v782_v28, %v782_v28 }
 0x1fd   : > { %860 = vst.msk [vmem:[%s1400_s8 + $0x10] sm:$0xf] %vm855_vm1, %v1033_v30  ;;  %v1034_v33 = vpack.c.bf16 %v780_v31, %v780_v31 }
 0x1fe   : > { %863 = vst.msk [vmem:[%s1400_s8 + $0x1c] sm:$0xf] %vm855_vm1, %v1036_v32 }
 0x1ff   : > { %861 = vst.msk [vmem:[%s1400_s8 + $0x14] sm:$0xf] %vm855_vm1, %v1034_v33 }
 0x207   : > { %v1130_v34 = vpop.f32.mrb[16].mxu1 }
 0x208   : > { %v785_v35 = vmax.f32 %v1130_v34, 0.0  ;;  %v744_v36 = vpop.f32.mrb[17].mxu1 }
 0x209   : > { %v783_v37 = vmax.f32 %v744_v36, 0.0  ;;  %v1131_v38 = vpop.f32.mrb[18].mxu1 }
 0x20a   : > { %v1039_v39 = vpack.c.bf16 %v785_v35, %v785_v35  ;;  %v786_v40 = vmax.f32 %v1131_v38, 0.0  ;;  %v747_v41 = vpop.f32.mrb[19].mxu1 }
 0x20b   : > { %v1037_v42 = vpack.c.bf16 %v783_v37, %v783_v37  ;;  %v784_v43 = vmax.f32 %v747_v41, 0.0 }
 0x20c   : > { %866 = vst.msk [vmem:[%s1400_s8 + $0x28] sm:$0xf] %vm855_vm1, %v1039_v39  ;;  %v1040_v44 = vpack.c.bf16 %v786_v40, %v786_v40 }
 0x20d   : > { %864 = vst.msk [vmem:[%s1400_s8 + $0x20] sm:$0xf] %vm855_vm1, %v1037_v42  ;;  %v1038_v45 = vpack.c.bf16 %v784_v43, %v784_v43 }
 0x20e   : > { %867 = vst.msk [vmem:[%s1400_s8 + $0x2c] sm:$0xf] %vm855_vm1, %v1040_v44 }
 0x20f   : > { %865 = vst.msk [vmem:[%s1400_s8 + $0x24] sm:$0xf] %vm855_vm1, %v1038_v45  ;;  %v1134_v46 = vpop.f32.mrb[20].mxu1 }
 0x210   : > { %v789_v47 = vmax.f32 %v1134_v46, 0.0  ;;  %v760_v48 = vpop.f32.mrb[21].mxu1 }
 0x211   : > { %v787_v49 = vmax.f32 %v760_v48, 0.0  ;;  %v1135_v50 = vpop.f32.mrb[22].mxu1 }
 0x212   : > { %v1043_v51 = vpack.c.bf16 %v789_v47, %v789_v47  ;;  %v790_v52 = vmax.f32 %v1135_v50, 0.0  ;;  %v763_v53 = vpop.f32.mrb[23].mxu1 }
 0x213   : > { %v1041_v54 = vpack.c.bf16 %v787_v49, %v787_v49  ;;  %v788_v55 = vmax.f32 %v763_v53, 0.0 }
 0x214   : > { %870 = vst.msk [vmem:[%s1400_s8 + $0x38] sm:$0xf] %vm855_vm1, %v1043_v51  ;;  %v1044_v56 = vpack.c.bf16 %v790_v52, %v790_v52 }
 0x215   : > { %868 = vst.msk [vmem:[%s1400_s8 + $0x30] sm:$0xf] %vm855_vm1, %v1041_v54  ;;  %v1042_v57 = vpack.c.bf16 %v788_v55, %v788_v55 }
 0x216   : > { %871 = vst.msk [vmem:[%s1400_s8 + $0x3c] sm:$0xf] %vm855_vm1, %v1044_v56 }
 0x217   : > { %869 = vst.msk [vmem:[%s1400_s8 + $0x34] sm:$0xf] %vm855_vm1, %v1042_v57 }
 0x218 PF: > { %s13_s14 = sadd.s32 1, %s1240_s14   ;;  %s1447_s12 = smov %s1236_s13 }
 0x219   : > { %p10_p5 = scmp.ge.s32.totalorder %s13_s14, 4   ;;  %s1448_s13 = smov %s1450_s15 }
 0x21b   :  { %12 = sbr.rel (!%p10_p5) target bundleno = 2 (0x2), region = 73 }

// kernel: gae_forward.12
= control target key start
LH: loop header
LB: loop body
LE: loop exit
PB: predicated region body
PF: predicated region fallthrough
CT: control target
= control target key end

     0   :  { %s1322_s12 = smov 0   ;;  %s1324_s13 = smov 0   ;;  %s1481_s0 = inlined_call_operand.vmem [shape: bf16[256,256], index: 0, kind: input, shape index: {}]   ;;  %s1482_s1 = inlined_call_operand.vmem [shape: bf16[256,32], index: 1, kind: input, shape index: {}]   ;;  %s1483_s2 = inlined_call_operand.vmem [shape: bf16[32,128], index: 2, kind: input, shape index: {}]   ;;  %s1484_s3 = inlined_call_operand.vmem [shape: bf16[256,128], index: 3, kind: output, shape index: {}]  }
   0x1   :  { %s1326_s14 = smov 0  }
   0x2 LB: > { %s25_s15 = sadd.s32 1, %s1295_s13  ;;  %p970_p0 = scmp.ge.s32.totalorder %s1299_s14, 1  ;;  %s1299_s14 = sphi %s1326_s14, %s13_s14   ;;  %s1295_s13 = sphi %s1324_s13, %s1486_s13   ;;  %s1291_s12 = sphi %s1322_s12, %s1485_s12  }
   0x3   : > { %p27_p1 = scmp.ge.s32.totalorder %s25_s15, 2  ;;  %p169_p2 = scmp.lt.s32.totalorder %s1299_s14, 3 }
   0x5   : > { %s1488_s15 = smov (%p27_p1, %s25_s15), 0  ;;  %p170_p3 = pnand %p970_p0, %p169_p2 }
   0x6   : > { %v1235_v0 = vld [vmem:[%s1482_s1 + $0x40] sm:$0xff] (!%p170_p3)   ;;  %s971_s18 = sshll.u32 (!%p170_p3), %s1291_s12, 4  ;;  %v1237_v2 = vld [vmem:[%s1482_s1 + $0x48] sm:$0xff] (!%p170_p3)   ;;  %v1239_v4 = vld [vmem:[%s1482_s1 + $0x50] sm:$0xff] (!%p170_p3)   ;;  %vm232_vm0 = vcmask (!%p170_p3), 261120   ;;  %v1301_v32 = vmov (!%p170_p3), 0.0  }
   0x7   : > { %173 = sbr.rel (%p170_p3) target bundleno = 536 (0x218), region = 32  ;;  %v1236_v1 = vld [vmem:[%s1482_s1] sm:$0xff] (!%p170_p3)   ;;  %1100 = vmatprep.subr.bf16.mxu0 (!%p170_p3), %v1235_v0  ;;  %1194 = vmatprep.subr.bf16.mxu1 (!%p170_p3), %v1235_v0  ;;  %v1238_v3 = vld [vmem:[%s1482_s1 + $0x8] sm:$0xff] (!%p170_p3)   ;;  %p205_p4 = scmp.lt.s32.totalorder (!%p170_p3), %s971_s18, 31  ;;  %v1240_v5 = vld [vmem:[%s1482_s1 + $0x10] sm:$0xff] (!%p170_p3)   ;;  %233 = vst.msk [vmem:[#allocation2] sm:$0xff] (!%p170_p3), %vm232_vm0, %v1301_v32 }
   0x8   : > { %1101 = vmatpush3.bf16.msra.mxu0 (!%p170_p3), %v1236_v1  ;;  %1202 = vmatpush3.bf16.msra.mxu1 (!%p170_p3), %v1236_v1  ;;  %v1241_v6 = vld [vmem:[%s1482_s1 + $0x58] sm:$0xff] (!%p170_p3)   ;;  %v1243_v8 = vld [vmem:[%s1482_s1 + $0x60] sm:$0xff] (!%p170_p3)   ;;  %v1245_v10 = vld [vmem:[%s1482_s1 + $0x68] sm:$0xff] (!%p170_p3)   ;;  %234 = vst.msk [vmem:[#allocation2 + $0x8] sm:$0xff] (!%p170_p3), %vm232_vm0, %v1301_v32 }
   0x9   : > { %1102 = vmatprep.subr.bf16.mxu0 (!%p170_p3), %v1237_v2  ;;  %1195 = vmatprep.subr.bf16.mxu1 (!%p170_p3), %v1237_v2  ;;  %v1242_v7 = vld [vmem:[%s1482_s1 + $0x18] sm:$0xff] (!%p170_p3)   ;;  %v1244_v9 = vld [vmem:[%s1482_s1 + $0x20] sm:$0xff] (!%p170_p3)   ;;  %v1246_v12 = vld [vmem:[%s1482_s1 + $0x28] sm:$0xff] (!%p170_p3)   ;;  %235 = vst.msk [vmem:[#allocation2 + $0x10] sm:$0xff] (!%p170_p3), %vm232_vm0, %v1301_v32 }
   0xa   : > { %v1247_v13 = vld [vmem:[%s1482_s1 + $0x70] sm:$0xff] (!%p170_p3)   ;;  %v1249_v16 = vld [vmem:[%s1482_s1 + $0x78] sm:$0xff] (!%p170_p3)   ;;  %236 = vst.msk [vmem:[#allocation2 + $0x18] sm:$0xff] (!%p170_p3), %vm232_vm0, %v1301_v32  ;;  %237 = vst.msk [vmem:[#allocation2 + $0x20] sm:$0xff] (!%p170_p3), %vm232_vm0, %v1301_v32 }
   0xb   : > { %v1248_v14 = vld [vmem:[%s1482_s1 + $0x30] sm:$0xff] (!%p170_p3)   ;;  %v1250_v17 = vld [vmem:[%s1482_s1 + $0x38] sm:$0xff] (!%p170_p3)   ;;  %238 = vst.msk [vmem:[#allocation2 + $0x28] sm:$0xff] (!%p170_p3), %vm232_vm0, %v1301_v32  ;;  %239 = vst.msk [vmem:[#allocation2 + $0x30] sm:$0xff] (!%p170_p3), %vm232_vm0, %v1301_v32 }
   0xc   : > { %1103 = vmatpush3.bf16.msra.mxu0 (!%p170_p3), %v1238_v3  ;;  %1203 = vmatpush3.bf16.msra.mxu1 (!%p170_p3), %v1238_v3  ;;  %240 = vst.msk [vmem:[#allocation2 + $0x38] sm:$0xff] (!%p170_p3), %vm232_vm0, %v1301_v32  ;;  %241 = vst.msk [vmem:[#allocation2 + $0x40] sm:$0xff] (!%p170_p3), %vm232_vm0, %v1301_v32  ;;  %v1275_v33 = vld [vmem:[%s1483_s2] sm:$0xff] (!%p170_p3)   ;;  %v1276_v34 = vld [vmem:[%s1483_s2 + $0x8] sm:$0xff] (!%p170_p3)  }
   0xd   : > { %1104 = vmatprep.subr.bf16.mxu0 (!%p170_p3), %v1239_v4  ;;  %1196 = vmatprep.subr.bf16.mxu1 (!%p170_p3), %v1239_v4  ;;  %242 = vst.msk [vmem:[#allocation2 + $0x48] sm:$0xff] (!%p170_p3), %vm232_vm0, %v1301_v32  ;;  %243 = vst.msk [vmem:[#allocation2 + $0x50] sm:$0xff] (!%p170_p3), %vm232_vm0, %v1301_v32 }
   0xe   : > { %s1490_s18 = smov (!%p205_p4, %s971_s18), 31  ;;  %244 = vst.msk [vmem:[#allocation2 + $0x58] sm:$0xff] %vm232_vm0, %v1301_v32  ;;  %245 = vst.msk [vmem:[#allocation2 + $0x60] sm:$0xff] %vm232_vm0, %v1301_v32  ;;  %v249_v36 = vld [vmem:[#allocation2] sm:$0xff] }
   0xf   : > { %s1036_s6 = sshll.u32 %s1490_s18, 3  ;;  %246 = vst.msk [vmem:[#allocation2 + $0x68] sm:$0xff] %vm232_vm0, %v1301_v32  ;;  %247 = vst.msk [vmem:[#allocation2 + $0x70] sm:$0xff] %vm232_vm0, %v1301_v32  ;;  %v250_v43 = vld [vmem:[#allocation2 + $0x8] sm:$0xff]  ;;  %s975_s7 = sshll.u32 %s1490_s18, 2 }
  0x10   : > { %1105 = vmatpush3.bf16.msra.mxu0 %v1240_v5  ;;  %1204 = vmatpush3.bf16.msra.mxu1 %v1240_v5  ;;  %s1373_s11 = scalar_lea.vmem %s1481_s0, %s1036_s6  ;;  %248 = vst.msk [vmem:[#allocation2 + $0x78] sm:$0xff] %vm232_vm0, %v1301_v32  ;;  %v251_v56 = vld [vmem:[#allocation2 + $0x10] sm:$0xff]  ;;  %s1462_s10 = scalar_lea.vmem %s1484_s3, %s975_s7 }
  0x11   : > { %1106 = vmatprep.subr.bf16.mxu0 %v1241_v6  ;;  %1197 = vmatprep.subr.bf16.mxu1 %v1241_v6  ;;  %v1253_v11 = vld [vmem:[%s1373_s11 + $0x4] ss:$8 sps:$4 sm:$0xff]   ;;  %v1251_v18 = vld [vmem:[%s1373_s11] ss:$8 sps:$4 sm:$0xff]   ;;  %v1254_v19 = vld [vmem:[%s1373_s11 + $0x14] ss:$8 sps:$4 sm:$0xff]  }
  0x12   : > { %521 = vmatprep.mubr.bf16.mxu0 %v1253_v11  ;;  %v1268_v15 = vld [vmem:[%s1373_s11 + $0x64] ss:$8 sps:$4 sm:$0xff]   ;;  %v1266_v20 = vld [vmem:[%s1373_s11 + $0x60] ss:$8 sps:$4 sm:$0xff]   ;;  %v1272_v21 = vld [vmem:[%s1373_s11 + $0x74] ss:$8 sps:$4 sm:$0xff]  }
  0x13   : > { %569 = vmatprep.mubr.bf16.mxu1 %v1268_v15  ;;  %v1256_v22 = vld [vmem:[%s1373_s11 + $0x10] ss:$8 sps:$4 sm:$0xff]   ;;  %v1257_v23 = vld [vmem:[%s1373_s11 + $0x24] ss:$8 sps:$4 sm:$0xff]   ;;  %v1259_v25 = vld [vmem:[%s1373_s11 + $0x20] ss:$8 sps:$4 sm:$0xff]  }
  0x14   : > { %1107 = vmatpush3.bf16.msra.mxu0 %v1242_v7  ;;  %1205 = vmatpush3.bf16.msra.mxu1 %v1242_v7  ;;  %v1274_v24 = vld [vmem:[%s1373_s11 + $0x70] ss:$8 sps:$4 sm:$0xff]   ;;  %v1260_v26 = vld [vmem:[%s1373_s11 + $0x34] ss:$8 sps:$4 sm:$0xff]   ;;  %v1263_v28 = vld [vmem:[%s1373_s11 + $0x44] ss:$8 sps:$4 sm:$0xff]  }
  0x15   : > { %1108 = vmatprep.subr.bf16.mxu0 %v1243_v8  ;;  %1198 = vmatprep.subr.bf16.mxu1 %v1243_v8  ;;  %v1262_v27 = vld [vmem:[%s1373_s11 + $0x30] ss:$8 sps:$4 sm:$0xff]   ;;  %v1265_v29 = vld [vmem:[%s1373_s11 + $0x40] ss:$8 sps:$4 sm:$0xff]   ;;  %v1269_v30 = vld [vmem:[%s1373_s11 + $0x54] ss:$8 sps:$4 sm:$0xff]  }
  0x16   : > { %v1271_v31 = vld [vmem:[%s1373_s11 + $0x50] ss:$8 sps:$4 sm:$0xff]   ;;  %v261_v41 = vld [vmem:[#allocation2 + $0x60] sm:$0xff]  ;;  %v262_v49 = vld [vmem:[#allocation2 + $0x68] sm:$0xff] }
  0x17   : > { %v263_v61 = vld [vmem:[#allocation2 + $0x70] sm:$0xff]  ;;  %v252_v63 = vld [vmem:[#allocation2 + $0x18] sm:$0xff]  ;;  %v253_v15 = vld [vmem:[#allocation2 + $0x20] sm:$0xff] }
  0x18   : > { %1109 = vmatpush3.bf16.msra.mxu0 %v1244_v9  ;;  %1206 = vmatpush3.bf16.msra.mxu1 %v1244_v9  ;;  %v264_v5 = vld [vmem:[#allocation2 + $0x78] sm:$0xff] }
  0x19   : > { %1110 = vmatprep.subr.bf16.mxu0 %v1245_v10  ;;  %1199 = vmatprep.subr.bf16.mxu1 %v1245_v10  ;;  %v256_v32 = vld [vmem:[#allocation2 + $0x38] sm:$0xff] }
  0x1c   : > { %1111 = vmatpush3.bf16.msra.mxu0 %v1246_v12  ;;  %1207 = vmatpush3.bf16.msra.mxu1 %v1246_v12 }
  0x1d   : > { %1112 = vmatprep.subr.bf16.mxu0 %v1247_v13  ;;  %1200 = vmatprep.subr.bf16.mxu1 %v1247_v13 }
  0x20   : > { %1113 = vmatpush3.bf16.msra.mxu0 %v1248_v14  ;;  %1208 = vmatpush3.bf16.msra.mxu1 %v1248_v14 }
  0x21   : > { %1114 = vmatprep.subr.bf16.mxu0 %v1249_v16  ;;  %1201 = vmatprep.subr.bf16.mxu1 %v1249_v16 }
  0x24   : > { %1115 = vmatpush3.bf16.msra.mxu0 %v1250_v17  ;;  %1209 = vmatpush3.bf16.msra.mxu1 %v1250_v17 }
  0x25   : > { %1174 = vmatprep.subr.bf16.mxu1 %v1275_v33 }
  0x27   : > { %522 = vmatmul.mubr.bf16.vlgmr.msra.gmra.mrb[0].mxu0 %v1251_v18  ;;  %570 = vmatmul.mubr.bf16.vlgmr.msra.gmra.mrb[0].mxu1 %v1266_v20 }
  0x28   : > { %529 = vmatprep.mubr.bf16.mxu0 %v1254_v19  ;;  %577 = vmatprep.mubr.bf16.mxu1 %v1272_v21  ;;  %v254_v19 = vld [vmem:[#allocation2 + $0x28] sm:$0xff] }
  0x29   : > { %1175 = vmatpush3.bf16.msra.mxu1 %v1275_v33 }
  0x2a   : > { %1176 = vmatprep.subr.bf16.mxu1 %v1276_v34 }
  0x2d   : > { %1177 = vmatpush3.bf16.msra.mxu1 %v1276_v34 }
  0x2f   : > { %530 = vmatmul.mubr.bf16.gmra.mrb[4].mxu0 %v1256_v22  ;;  %578 = vmatmul.mubr.bf16.gmra.mrb[4].mxu1 %v1274_v24 }
  0x30   : > { %537 = vmatprep.mubr.bf16.mxu0 %v1257_v23 }
  0x37   : > { %538 = vmatmul.mubr.bf16.gmra.mrb[8].mxu0 %v1259_v25 }
  0x38   : > { %545 = vmatprep.mubr.bf16.mxu0 %v1260_v26 }
  0x3f   : > { %546 = vmatmul.mubr.bf16.gmra.mrb[12].mxu0 %v1262_v27 }
  0x40   : > { %553 = vmatprep.mubr.bf16.mxu0 %v1263_v28  ;;  %v255_v28 = vld [vmem:[#allocation2 + $0x30] sm:$0xff] }
  0x47   : > { %554 = vmatmul.mubr.bf16.gmra.mrb[16].mxu0 %v1265_v29 }
  0x48   : > { %561 = vmatprep.mubr.bf16.mxu0 %v1269_v30 }
  0x4f   : > { %562 = vmatmul.mubr.bf16.gmra.mrb[20].mxu0 %v1271_v31 }
  0xfa   : > { %v1116_v35 = vpop.f32.mrb[0].mxu0  ;;  %v1152_v38 = vpop.f32.mrb[0].mxu1 }
  0xfb   : > { %v1117_v37 = vpop.f32.mrb[1].mxu0  ;;  %v1153_v42 = vpop.f32.mrb[1].mxu1 }
  0xfc   : > { %v1118_v39 = vadd.f32 %v1117_v37, %v1116_v35  ;;  %v1119_v40 = vpop.f32.mrb[2].mxu0  ;;  %v1154_v45 = vadd.f32 %v1153_v42, %v1152_v38  ;;  %v1155_v46 = vpop.f32.mrb[2].mxu1 }
  0xfd   : > { %v1120_v44 = vpop.f32.mrb[3].mxu0  ;;  %v1156_v50 = vpop.f32.mrb[3].mxu1 }
  0xfe   : > { %v586_v47 = vadd.f32 %v1118_v39, %v249_v36  ;;  %v1121_v48 = vadd.f32 %v1120_v44, %v1119_v40  ;;  %v598_v51 = vadd.f32 %v1154_v45, %v261_v41  ;;  %v1157_v52 = vadd.f32 %v1156_v50, %v1155_v46  ;;  %v257_v41 = vld [vmem:[#allocation2 + $0x40] sm:$0xff]  ;;  %v258_v45 = vld [vmem:[#allocation2 + $0x48] sm:$0xff] }
 0x100   : > { %603 = vst.msk [vmem:[#allocation2] sm:$0xff] %vm232_vm0, %v586_v47  ;;  %v587_v53 = vadd.f32 %v1121_v48, %v250_v43  ;;  %615 = vst.msk [vmem:[#allocation2 + $0x60] sm:$0xff] %vm232_vm0, %v598_v51  ;;  %v599_v54 = vadd.f32 %v1157_v52, %v262_v49 }
 0x102   : > { %604 = vst.msk [vmem:[#allocation2 + $0x8] sm:$0xff] %vm232_vm0, %v587_v53  ;;  %v1122_v55 = vpop.f32.mrb[4].mxu0  ;;  %616 = vst.msk [vmem:[#allocation2 + $0x68] sm:$0xff] %vm232_vm0, %v599_v54  ;;  %v1158_v58 = vpop.f32.mrb[4].mxu1  ;;  %v259_v54 = vld [vmem:[#allocation2 + $0x50] sm:$0xff] }
 0x103   : > { %v1123_v57 = vpop.f32.mrb[5].mxu0  ;;  %v1159_v62 = vpop.f32.mrb[5].mxu1 }
 0x104   : > { %v1124_v59 = vadd.f32 %v1123_v57, %v1122_v55  ;;  %v1125_v60 = vpop.f32.mrb[6].mxu0  ;;  %v1160_v1 = vadd.f32 %v1159_v62, %v1158_v58  ;;  %v1161_v2 = vpop.f32.mrb[6].mxu1  ;;  %v260_v58 = vld [vmem:[#allocation2 + $0x58] sm:$0xff] }
 0x105   : > { %v1126_v0 = vpop.f32.mrb[7].mxu0  ;;  %v1162_v6 = vpop.f32.mrb[7].mxu1 }
 0x106   : > { %v588_v3 = vadd.f32 %v1124_v59, %v251_v56  ;;  %v1127_v4 = vadd.f32 %v1126_v0, %v1125_v60  ;;  %v600_v7 = vadd.f32 %v1160_v1, %v263_v61  ;;  %v1163_v8 = vadd.f32 %v1162_v6, %v1161_v2 }
 0x107   : > { %v622_v10 = vld [vmem:[#allocation2] sm:$0xff] }
 0x108   : > { %605 = vst.msk [vmem:[#allocation2 + $0x10] sm:$0xff] %vm232_vm0, %v588_v3  ;;  %v589_v9 = vadd.f32 %v1127_v4, %v252_v63  ;;  %617 = vst.msk [vmem:[#allocation2 + $0x70] sm:$0xff] %vm232_vm0, %v600_v7  ;;  %v601_v12 = vadd.f32 %v1163_v8, %v264_v5  ;;  %v634_v2 = vld [vmem:[#allocation2 + $0x60] sm:$0xff] }
 0x109   : > { %v623_v11 = vld [vmem:[#allocation2 + $0x8] sm:$0xff] }
 0x10a   : > { %606 = vst.msk [vmem:[#allocation2 + $0x18] sm:$0xff] %vm232_vm0, %v589_v9  ;;  %v1128_v13 = vpop.f32.mrb[8].mxu0  ;;  %v638_v14 = vpack.c.bf16 %v623_v11, %v622_v10  ;;  %618 = vst.msk [vmem:[#allocation2 + $0x78] sm:$0xff] %vm232_vm0, %v601_v12  ;;  %v635_v3 = vld [vmem:[#allocation2 + $0x68] sm:$0xff] }
 0x10b   : > { %v1129_v16 = vpop.f32.mrb[9].mxu0  ;;  %v644_v7 = vpack.c.bf16 %v635_v3, %v634_v2 }
 0x10c   : > { %v1130_v17 = vadd.f32 %v1129_v16, %v1128_v13  ;;  %v1131_v18 = vpop.f32.mrb[10].mxu0  ;;  %1178 = vmatprep.mubr.msk.bf16.mxu1 %vm232_vm0, %v638_v14 }
 0x10d   : > { %v1132_v20 = vpop.f32.mrb[11].mxu0 }
 0x10e   : > { %v590_v21 = vadd.f32 %v1130_v17, %v253_v15  ;;  %v1133_v22 = vadd.f32 %v1132_v20, %v1131_v18 }
 0x10f   : > { %v624_v24 = vld [vmem:[#allocation2 + $0x10] sm:$0xff] }
 0x110   : > { %607 = vst.msk [vmem:[#allocation2 + $0x20] sm:$0xff] %vm232_vm0, %v590_v21  ;;  %v591_v23 = vadd.f32 %v1133_v22, %v254_v19  ;;  %v636_v8 = vld [vmem:[#allocation2 + $0x70] sm:$0xff] }
 0x111   : > { %v625_v25 = vld [vmem:[#allocation2 + $0x18] sm:$0xff] }
 0x112   : > { %608 = vst.msk [vmem:[#allocation2 + $0x28] sm:$0xff] %vm232_vm0, %v591_v23  ;;  %v1134_v26 = vpop.f32.mrb[12].mxu0  ;;  %v639_v27 = vpack.c.bf16 %v625_v25, %v624_v24  ;;  %v637_v9 = vld [vmem:[#allocation2 + $0x78] sm:$0xff] }
 0x113   : > { %v1135_v29 = vpop.f32.mrb[13].mxu0  ;;  %v645_v10 = vpack.c.bf16 %v637_v9, %v636_v8 }
 0x114   : > { %v1136_v30 = vadd.f32 %v1135_v29, %v1134_v26  ;;  %v1137_v31 = vpop.f32.mrb[14].mxu0  ;;  %1179 = vmatmul.mubr.msk.bf16.vlgmr.msra.gmra.mrb[8].mxu1 %vm232_vm0, %v639_v27 }
 0x115   : > { %v1138_v33 = vpop.f32.mrb[15].mxu0 }
 0x116   : > { %v592_v34 = vadd.f32 %v1136_v30, %v255_v28  ;;  %v1139_v35 = vadd.f32 %v1138_v33, %v1137_v31 }
 0x117   : > { %v626_v37 = vld [vmem:[#allocation2 + $0x20] sm:$0xff] }
 0x118   : > { %609 = vst.msk [vmem:[#allocation2 + $0x30] sm:$0xff] %vm232_vm0, %v592_v34  ;;  %v593_v36 = vadd.f32 %v1139_v35, %v256_v32 }
 0x119   : > { %v627_v38 = vld [vmem:[#allocation2 + $0x28] sm:$0xff] }
 0x11a   : > { %610 = vst.msk [vmem:[#allocation2 + $0x38] sm:$0xff] %vm232_vm0, %v593_v36  ;;  %v1140_v39 = vpop.f32.mrb[16].mxu0  ;;  %v640_v40 = vpack.c.bf16 %v627_v38, %v626_v37 }
 0x11b   : > { %v1141_v42 = vpop.f32.mrb[17].mxu0 }
 0x11c   : > { %v1142_v43 = vadd.f32 %v1141_v42, %v1140_v39  ;;  %v1143_v44 = vpop.f32.mrb[18].mxu0  ;;  %1182 = vmatprep.mubr.msk.bf16.mxu1 %vm232_vm0, %v640_v40 }
 0x11d   : > { %v1144_v46 = vpop.f32.mrb[19].mxu0 }
 0x11e   : > { %v594_v47 = vadd.f32 %v1142_v43, %v257_v41  ;;  %v1145_v48 = vadd.f32 %v1144_v46, %v1143_v44 }
 0x11f   : > { %v628_v50 = vld [vmem:[#allocation2 + $0x30] sm:$0xff] }
 0x120   : > { %611 = vst.msk [vmem:[#allocation2 + $0x40] sm:$0xff] %vm232_vm0, %v594_v47  ;;  %v595_v49 = vadd.f32 %v1145_v48, %v258_v45 }
 0x121   : > { %v629_v51 = vld [vmem:[#allocation2 + $0x38] sm:$0xff] }
 0x122   : > { %612 = vst.msk [vmem:[#allocation2 + $0x48] sm:$0xff] %vm232_vm0, %v595_v49  ;;  %v1146_v52 = vpop.f32.mrb[20].mxu0  ;;  %v641_v53 = vpack.c.bf16 %v629_v51, %v628_v50 }
 0x123   : > { %v1147_v55 = vpop.f32.mrb[21].mxu0 }
 0x124   : > { %v1148_v56 = vadd.f32 %v1147_v55, %v1146_v52  ;;  %v1149_v57 = vpop.f32.mrb[22].mxu0  ;;  %1183 = vmatmul.mubr.msk.bf16.gmra.mrb[12].mxu1 %vm232_vm0, %v641_v53 }
 0x125   : > { %v1150_v59 = vpop.f32.mrb[23].mxu0 }
 0x126   : > { %v596_v60 = vadd.f32 %v1148_v56, %v259_v54  ;;  %v1151_v61 = vadd.f32 %v1150_v59, %v1149_v57 }
 0x127   : > { %v630_v63 = vld [vmem:[#allocation2 + $0x40] sm:$0xff] }
 0x128   : > { %613 = vst.msk [vmem:[#allocation2 + $0x50] sm:$0xff] %vm232_vm0, %v596_v60  ;;  %v597_v62 = vadd.f32 %v1151_v61, %v260_v58 }
 0x129   : > { %v631_v0 = vld [vmem:[#allocation2 + $0x48] sm:$0xff] }
 0x12a   : > { %614 = vst.msk [vmem:[#allocation2 + $0x58] sm:$0xff] %vm232_vm0, %v597_v62  ;;  %v642_v1 = vpack.c.bf16 %v631_v0, %v630_v63 }
 0x12c   : > { %1186 = vmatprep.mubr.msk.bf16.mxu1 %vm232_vm0, %v642_v1 }
 0x12f   : > { %v632_v4 = vld [vmem:[#allocation2 + $0x50] sm:$0xff] }
 0x131   : > { %v633_v5 = vld [vmem:[#allocation2 + $0x58] sm:$0xff] }
 0x132   : > { %v643_v6 = vpack.c.bf16 %v633_v5, %v632_v4 }
 0x134   : > { %1187 = vmatmul.mubr.msk.bf16.gmra.mrb[16].mxu1 %vm232_vm0, %v643_v6 }
 0x135   : > { %1190 = vmatprep.mubr.msk.bf16.mxu1 %vm232_vm0, %v644_v7 }
 0x13c   : > { %1191 = vmatmul.mubr.msk.bf16.gmra.mrb[20].mxu1 %vm232_vm0, %v645_v10 }
 0x1e7   : > { %v1180_v11 = vpop.f32.mrb[8].mxu1 }
 0x1e8   : > { %v720_v12 = vpop.f32.mrb[9].mxu1  ;;  %v785_v14 = vmax.f32 %v1180_v11, 0.0 }
 0x1e9   : > { %v1181_v13 = vpop.f32.mrb[10].mxu1  ;;  %v783_v17 = vmax.f32 %v720_v12, 0.0 }
 0x1ea   : > { %v786_v15 = vmax.f32 %v1181_v13, 0.0  ;;  %v723_v16 = vpop.f32.mrb[11].mxu1 }
 0x1eb   : > { %v784_v18 = vmax.f32 %v723_v16, 0.0 }
 0x1ec   : > { %v1061_v19 = vpack.c.bf16 %v786_v15, %v785_v14 }
 0x1ed   : > { %v1056_v20 = vpack.c.bf16 %v784_v18, %v783_v17 }
 0x1ee   : > { %1093 = vst [vmem:[%s1462_s10 + $0x8] sm:$0xff] %v1061_v19  }
 0x1ef   : > { %1057 = vst [vmem:[%s1462_s10] sm:$0xff] %v1056_v20  }
 0x1f7   : > { %v1184_v21 = vpop.f32.mrb[12].mxu1 }
 0x1f8   : > { %v736_v22 = vpop.f32.mrb[13].mxu1  ;;  %v789_v24 = vmax.f32 %v1184_v21, 0.0 }
 0x1f9   : > { %v1185_v23 = vpop.f32.mrb[14].mxu1  ;;  %v787_v27 = vmax.f32 %v736_v22, 0.0 }
 0x1fa   : > { %v790_v25 = vmax.f32 %v1185_v23, 0.0  ;;  %v739_v26 = vpop.f32.mrb[15].mxu1 }
 0x1fb   : > { %v788_v28 = vmax.f32 %v739_v26, 0.0 }
 0x1fc   : > { %v1071_v29 = vpack.c.bf16 %v790_v25, %v789_v24 }
 0x1fd   : > { %v1066_v30 = vpack.c.bf16 %v788_v28, %v787_v27 }
 0x1fe   : > { %1095 = vst [vmem:[%s1462_s10 + $0x18] sm:$0xff] %v1071_v29  }
 0x1ff   : > { %1094 = vst [vmem:[%s1462_s10 + $0x10] sm:$0xff] %v1066_v30  }
 0x207   : > { %v1188_v31 = vpop.f32.mrb[16].mxu1 }
 0x208   : > { %v752_v32 = vpop.f32.mrb[17].mxu1  ;;  %v793_v34 = vmax.f32 %v1188_v31, 0.0 }
 0x209   : > { %v1189_v33 = vpop.f32.mrb[18].mxu1  ;;  %v791_v37 = vmax.f32 %v752_v32, 0.0 }
 0x20a   : > { %v794_v35 = vmax.f32 %v1189_v33, 0.0  ;;  %v755_v36 = vpop.f32.mrb[19].mxu1 }
 0x20b   : > { %v792_v38 = vmax.f32 %v755_v36, 0.0 }
 0x20c   : > { %v1081_v39 = vpack.c.bf16 %v794_v35, %v793_v34 }
 0x20d   : > { %v1076_v40 = vpack.c.bf16 %v792_v38, %v791_v37 }
 0x20e   : > { %1097 = vst [vmem:[%s1462_s10 + $0x28] sm:$0xff] %v1081_v39  }
 0x20f   : > { %1096 = vst [vmem:[%s1462_s10 + $0x20] sm:$0xff] %v1076_v40   ;;  %v1192_v41 = vpop.f32.mrb[20].mxu1 }
 0x210   : > { %v768_v42 = vpop.f32.mrb[21].mxu1  ;;  %v797_v44 = vmax.f32 %v1192_v41, 0.0 }
 0x211   : > { %v1193_v43 = vpop.f32.mrb[22].mxu1  ;;  %v795_v47 = vmax.f32 %v768_v42, 0.0 }
 0x212   : > { %v798_v45 = vmax.f32 %v1193_v43, 0.0  ;;  %v771_v46 = vpop.f32.mrb[23].mxu1 }
 0x213   : > { %v796_v48 = vmax.f32 %v771_v46, 0.0 }
 0x214   : > { %v1091_v49 = vpack.c.bf16 %v798_v45, %v797_v44 }
 0x215   : > { %v1086_v50 = vpack.c.bf16 %v796_v48, %v795_v47 }
 0x216   : > { %1099 = vst [vmem:[%s1462_s10 + $0x38] sm:$0xff] %v1091_v49  }
 0x217   : > { %1098 = vst [vmem:[%s1462_s10 + $0x30] sm:$0xff] %v1086_v50  }
 0x218 PF: > { %s13_s14 = sadd.s32 1, %s1299_s14   ;;  %s1485_s12 = smov %s1295_s13 }
 0x219   : > { %p10_p5 = scmp.ge.s32.totalorder %s13_s14, 4   ;;  %s1486_s13 = smov %s1488_s15 }
 0x21b   :  { %12 = sbr.rel (!%p10_p5) target bundleno = 2 (0x2), region = 73 }

// kernel: gae_forward.14
= control target key start
LH: loop header
LB: loop body
LE: loop exit
PB: predicated region body
PF: predicated region fallthrough
CT: control target
= control target key end

     0   :  { %s1083_s9 = smov 0   ;;  %s1085_s10 = smov 0   ;;  %s1196_s0 = inlined_call_operand.vmem [shape: bf16[256,256], index: 0, kind: input, shape index: {}]   ;;  %s1197_s1 = inlined_call_operand.vmem [shape: bf16[256,128], index: 1, kind: input, shape index: {}]   ;;  %s1198_s2 = inlined_call_operand.vmem [shape: bf16[256,128], index: 2, kind: output, shape index: {}]  }
   0x1   :  { %s1087_s11 = smov 0  }
   0x2 LB: > { %s24_s12 = sadd.s32 1, %s1062_s10  ;;  %p780_p0 = scmp.ge.s32.totalorder %s1066_s11, 1  ;;  %s1066_s11 = sphi %s1087_s11, %s12_s11   ;;  %s1062_s10 = sphi %s1085_s10, %s1200_s10   ;;  %s1058_s9 = sphi %s1083_s9, %s1199_s9  }
   0x3   : > { %p26_p1 = scmp.ge.s32.totalorder %s24_s12, 2  ;;  %p144_p2 = scmp.lt.s32.totalorder %s1066_s11, 3 }
   0x5   : > { %s1202_s12 = smov (%p26_p1, %s24_s12), 0  ;;  %p145_p3 = pnand %p780_p0, %p144_p2 }
   0x6   : > { %v1004_v0 = vld [vmem:[%s1197_s1 + $0x40] sm:$0xff] (!%p145_p3)   ;;  %s781_s15 = sshll.u32 (!%p145_p3), %s1058_s9, 4  ;;  %v1006_v2 = vld [vmem:[%s1197_s1 + $0x48] sm:$0xff] (!%p145_p3)   ;;  %v1008_v4 = vld [vmem:[%s1197_s1 + $0x50] sm:$0xff] (!%p145_p3)  }
   0x7   : > { %148 = sbr.rel (%p145_p3) target bundleno = 283 (0x11b), region = 28  ;;  %v1005_v1 = vld [vmem:[%s1197_s1] sm:$0xff] (!%p145_p3)   ;;  %900 = vmatprep.subr.bf16.mxu0 (!%p145_p3), %v1004_v0  ;;  %964 = vmatprep.subr.bf16.mxu1 (!%p145_p3), %v1004_v0  ;;  %v1007_v3 = vld [vmem:[%s1197_s1 + $0x8] sm:$0xff] (!%p145_p3)   ;;  %p178_p4 = scmp.lt.s32.totalorder (!%p145_p3), %s781_s15, 31  ;;  %v1009_v5 = vld [vmem:[%s1197_s1 + $0x10] sm:$0xff] (!%p145_p3)  }
   0x8   : > { %901 = vmatpush3.bf16.msra.mxu0 (!%p145_p3), %v1005_v1  ;;  %972 = vmatpush3.bf16.msra.mxu1 (!%p145_p3), %v1005_v1  ;;  %v1010_v6 = vld [vmem:[%s1197_s1 + $0x58] sm:$0xff] (!%p145_p3)   ;;  %v1012_v8 = vld [vmem:[%s1197_s1 + $0x60] sm:$0xff] (!%p145_p3)   ;;  %v1014_v10 = vld [vmem:[%s1197_s1 + $0x68] sm:$0xff] (!%p145_p3)  }
   0x9   : > { %902 = vmatprep.subr.bf16.mxu0 (!%p145_p3), %v1006_v2  ;;  %965 = vmatprep.subr.bf16.mxu1 (!%p145_p3), %v1006_v2  ;;  %v1011_v7 = vld [vmem:[%s1197_s1 + $0x18] sm:$0xff] (!%p145_p3)   ;;  %v1013_v9 = vld [vmem:[%s1197_s1 + $0x20] sm:$0xff] (!%p145_p3)   ;;  %v1015_v13 = vld [vmem:[%s1197_s1 + $0x28] sm:$0xff] (!%p145_p3)  }
   0xa   : > { %v1016_v14 = vld [vmem:[%s1197_s1 + $0x70] sm:$0xff] (!%p145_p3)   ;;  %v1018_v16 = vld [vmem:[%s1197_s1 + $0x78] sm:$0xff] (!%p145_p3)  }
   0xb   : > { %v1017_v15 = vld [vmem:[%s1197_s1 + $0x30] sm:$0xff] (!%p145_p3)   ;;  %v1019_v17 = vld [vmem:[%s1197_s1 + $0x38] sm:$0xff] (!%p145_p3)  }
   0xc   : > { %903 = vmatpush3.bf16.msra.mxu0 (!%p145_p3), %v1007_v3  ;;  %973 = vmatpush3.bf16.msra.mxu1 (!%p145_p3), %v1007_v3 }
   0xd   : > { %904 = vmatprep.subr.bf16.mxu0 (!%p145_p3), %v1008_v4  ;;  %966 = vmatprep.subr.bf16.mxu1 (!%p145_p3), %v1008_v4 }
   0xe   : > { %s1204_s15 = smov (!%p178_p4, %s781_s15), 31 }
   0xf   : > { %s836_s30 = sshll.u32 %s1204_s15, 3  ;;  %s785_s26 = sshll.u32 %s1204_s15, 2 }
  0x10   : > { %905 = vmatpush3.bf16.msra.mxu0 %v1009_v5  ;;  %974 = vmatpush3.bf16.msra.mxu1 %v1009_v5  ;;  %s1134_s7 = scalar_lea.vmem %s1196_s0, %s836_s30  ;;  %s1177_s29 = scalar_lea.vmem %s1198_s2, %s785_s26 }
  0x11   : > { %906 = vmatprep.subr.bf16.mxu0 %v1010_v6  ;;  %967 = vmatprep.subr.bf16.mxu1 %v1010_v6  ;;  %v1022_v11 = vld [vmem:[%s1134_s7 + $0x4] ss:$8 sps:$4 sm:$0xff]   ;;  %v1020_v18 = vld [vmem:[%s1134_s7] ss:$8 sps:$4 sm:$0xff]   ;;  %v1026_v20 = vld [vmem:[%s1134_s7 + $0x14] ss:$8 sps:$4 sm:$0xff]  }
  0x12   : > { %v1025_v12 = vld [vmem:[%s1134_s7 + $0x44] ss:$8 sps:$4 sm:$0xff]   ;;  %493 = vmatprep.mubr.bf16.mxu0 %v1022_v11  ;;  %v1023_v19 = vld [vmem:[%s1134_s7 + $0x40] ss:$8 sps:$4 sm:$0xff]   ;;  %v1028_v21 = vld [vmem:[%s1134_s7 + $0x54] ss:$8 sps:$4 sm:$0xff]  }
  0x13   : > { %525 = vmatprep.mubr.bf16.mxu1 %v1025_v12  ;;  %v1030_v22 = vld [vmem:[%s1134_s7 + $0x10] ss:$8 sps:$4 sm:$0xff]   ;;  %v1032_v24 = vld [vmem:[%s1134_s7 + $0x24] ss:$8 sps:$4 sm:$0xff]   ;;  %v1036_v26 = vld [vmem:[%s1134_s7 + $0x20] ss:$8 sps:$4 sm:$0xff]  }
  0x14   : > { %907 = vmatpush3.bf16.msra.mxu0 %v1011_v7  ;;  %975 = vmatpush3.bf16.msra.mxu1 %v1011_v7  ;;  %v1031_v23 = vld [vmem:[%s1134_s7 + $0x50] ss:$8 sps:$4 sm:$0xff]   ;;  %v1034_v25 = vld [vmem:[%s1134_s7 + $0x64] ss:$8 sps:$4 sm:$0xff]   ;;  %v1037_v27 = vld [vmem:[%s1134_s7 + $0x60] ss:$8 sps:$4 sm:$0xff]  }
  0x15   : > { %908 = vmatprep.subr.bf16.mxu0 %v1012_v8  ;;  %968 = vmatprep.subr.bf16.mxu1 %v1012_v8  ;;  %v1038_v28 = vld [vmem:[%s1134_s7 + $0x34] ss:$8 sps:$4 sm:$0xff]   ;;  %v1042_v30 = vld [vmem:[%s1134_s7 + $0x30] ss:$8 sps:$4 sm:$0xff]  }
  0x16   : > { %v1040_v29 = vld [vmem:[%s1134_s7 + $0x74] ss:$8 sps:$4 sm:$0xff]   ;;  %v1043_v31 = vld [vmem:[%s1134_s7 + $0x70] ss:$8 sps:$4 sm:$0xff]  }
  0x18   : > { %909 = vmatpush3.bf16.msra.mxu0 %v1013_v9  ;;  %976 = vmatpush3.bf16.msra.mxu1 %v1013_v9 }
  0x19   : > { %910 = vmatprep.subr.bf16.mxu0 %v1014_v10  ;;  %969 = vmatprep.subr.bf16.mxu1 %v1014_v10 }
  0x1c   : > { %911 = vmatpush3.bf16.msra.mxu0 %v1015_v13  ;;  %977 = vmatpush3.bf16.msra.mxu1 %v1015_v13 }
  0x1d   : > { %912 = vmatprep.subr.bf16.mxu0 %v1016_v14  ;;  %970 = vmatprep.subr.bf16.mxu1 %v1016_v14 }
  0x20   : > { %913 = vmatpush3.bf16.msra.mxu0 %v1017_v15  ;;  %978 = vmatpush3.bf16.msra.mxu1 %v1017_v15 }
  0x21   : > { %914 = vmatprep.subr.bf16.mxu0 %v1018_v16  ;;  %971 = vmatprep.subr.bf16.mxu1 %v1018_v16 }
  0x24   : > { %915 = vmatpush3.bf16.msra.mxu0 %v1019_v17  ;;  %979 = vmatpush3.bf16.msra.mxu1 %v1019_v17 }
  0x27   : > { %494 = vmatmul.mubr.bf16.vlgmr.msra.gmra.mrb[0].mxu0 %v1020_v18  ;;  %526 = vmatmul.mubr.bf16.vlgmr.msra.gmra.mrb[0].mxu1 %v1023_v19 }
  0x28   : > { %501 = vmatprep.mubr.bf16.mxu0 %v1026_v20  ;;  %533 = vmatprep.mubr.bf16.mxu1 %v1028_v21 }
  0x2f   : > { %502 = vmatmul.mubr.bf16.gmra.mrb[4].mxu0 %v1030_v22  ;;  %534 = vmatmul.mubr.bf16.gmra.mrb[4].mxu1 %v1031_v23 }
  0x30   : > { %509 = vmatprep.mubr.bf16.mxu0 %v1032_v24  ;;  %541 = vmatprep.mubr.bf16.mxu1 %v1034_v25 }
  0x37   : > { %510 = vmatmul.mubr.bf16.gmra.mrb[8].mxu0 %v1036_v26  ;;  %542 = vmatmul.mubr.bf16.gmra.mrb[8].mxu1 %v1037_v27 }
  0x38   : > { %517 = vmatprep.mubr.bf16.mxu0 %v1038_v28  ;;  %549 = vmatprep.mubr.bf16.mxu1 %v1040_v29 }
  0x3f   : > { %518 = vmatmul.mubr.bf16.gmra.mrb[12].mxu0 %v1042_v30  ;;  %550 = vmatmul.mubr.bf16.gmra.mrb[12].mxu1 %v1043_v31 }
  0xfa   : > { %v916_v32 = vpop.f32.mrb[0].mxu0  ;;  %v940_v33 = vpop.f32.mrb[0].mxu1 }
  0xfb   : > { %v917_v34 = vpop.f32.mrb[1].mxu0  ;;  %v941_v35 = vpop.f32.mrb[1].mxu1 }
  0xfc   : > { %v918_v36 = vadd.f32 %v917_v34, %v916_v32  ;;  %v942_v37 = vadd.f32 %v941_v35, %v940_v33  ;;  %v919_v38 = vpop.f32.mrb[2].mxu0  ;;  %v943_v39 = vpop.f32.mrb[2].mxu1 }
  0xfd   : > { %v920_v40 = vpop.f32.mrb[3].mxu0  ;;  %v944_v41 = vpop.f32.mrb[3].mxu1 }
  0xfe   : > { %v921_v42 = vadd.f32 %v920_v40, %v919_v38  ;;  %v945_v43 = vadd.f32 %v944_v41, %v943_v39 }
 0x100   : > { %v856_v44 = vpack.c.bf16 %v921_v42, %v918_v36  ;;  %v876_v45 = vpack.c.bf16 %v945_v43, %v942_v37 }
 0x102   : > { %857 = vst [vmem:[%s1177_s29] sm:$0xff] %v856_v44   ;;  %896 = vst [vmem:[%s1177_s29 + $0x20] sm:$0xff] %v876_v45   ;;  %v922_v46 = vpop.f32.mrb[4].mxu0  ;;  %v946_v47 = vpop.f32.mrb[4].mxu1 }
 0x103   : > { %v923_v48 = vpop.f32.mrb[5].mxu0  ;;  %v947_v49 = vpop.f32.mrb[5].mxu1 }
 0x104   : > { %v924_v50 = vadd.f32 %v923_v48, %v922_v46  ;;  %v948_v51 = vadd.f32 %v947_v49, %v946_v47  ;;  %v925_v52 = vpop.f32.mrb[6].mxu0  ;;  %v949_v53 = vpop.f32.mrb[6].mxu1 }
 0x105   : > { %v926_v54 = vpop.f32.mrb[7].mxu0  ;;  %v950_v55 = vpop.f32.mrb[7].mxu1 }
 0x106   : > { %v927_v56 = vadd.f32 %v926_v54, %v925_v52  ;;  %v951_v57 = vadd.f32 %v950_v55, %v949_v53 }
 0x108   : > { %v861_v58 = vpack.c.bf16 %v927_v56, %v924_v50  ;;  %v881_v59 = vpack.c.bf16 %v951_v57, %v948_v51 }
 0x10a   : > { %893 = vst [vmem:[%s1177_s29 + $0x8] sm:$0xff] %v861_v58   ;;  %897 = vst [vmem:[%s1177_s29 + $0x28] sm:$0xff] %v881_v59   ;;  %v928_v60 = vpop.f32.mrb[8].mxu0  ;;  %v952_v61 = vpop.f32.mrb[8].mxu1 }
 0x10b   : > { %v929_v62 = vpop.f32.mrb[9].mxu0  ;;  %v953_v63 = vpop.f32.mrb[9].mxu1 }
 0x10c   : > { %v930_v0 = vadd.f32 %v929_v62, %v928_v60  ;;  %v954_v1 = vadd.f32 %v953_v63, %v952_v61  ;;  %v931_v2 = vpop.f32.mrb[10].mxu0  ;;  %v955_v3 = vpop.f32.mrb[10].mxu1 }
 0x10d   : > { %v932_v4 = vpop.f32.mrb[11].mxu0  ;;  %v956_v5 = vpop.f32.mrb[11].mxu1 }
 0x10e   : > { %v933_v6 = vadd.f32 %v932_v4, %v931_v2  ;;  %v957_v7 = vadd.f32 %v956_v5, %v955_v3 }
 0x110   : > { %v866_v8 = vpack.c.bf16 %v933_v6, %v930_v0  ;;  %v886_v9 = vpack.c.bf16 %v957_v7, %v954_v1 }
 0x112   : > { %894 = vst [vmem:[%s1177_s29 + $0x10] sm:$0xff] %v866_v8   ;;  %898 = vst [vmem:[%s1177_s29 + $0x30] sm:$0xff] %v886_v9   ;;  %v934_v10 = vpop.f32.mrb[12].mxu0  ;;  %v958_v11 = vpop.f32.mrb[12].mxu1 }
 0x113   : > { %v935_v12 = vpop.f32.mrb[13].mxu0  ;;  %v959_v13 = vpop.f32.mrb[13].mxu1 }
 0x114   : > { %v936_v14 = vadd.f32 %v935_v12, %v934_v10  ;;  %v960_v15 = vadd.f32 %v959_v13, %v958_v11  ;;  %v937_v16 = vpop.f32.mrb[14].mxu0  ;;  %v961_v17 = vpop.f32.mrb[14].mxu1 }
 0x115   : > { %v938_v18 = vpop.f32.mrb[15].mxu0  ;;  %v962_v19 = vpop.f32.mrb[15].mxu1 }
 0x116   : > { %v939_v20 = vadd.f32 %v938_v18, %v937_v16  ;;  %v963_v21 = vadd.f32 %v962_v19, %v961_v17 }
 0x118   : > { %v871_v22 = vpack.c.bf16 %v939_v20, %v936_v14  ;;  %v891_v23 = vpack.c.bf16 %v963_v21, %v960_v15 }
 0x11a   : > { %895 = vst [vmem:[%s1177_s29 + $0x18] sm:$0xff] %v871_v22   ;;  %899 = vst [vmem:[%s1177_s29 + $0x38] sm:$0xff] %v891_v23  }
 0x11b PF: > { %s12_s11 = sadd.s32 1, %s1066_s11   ;;  %s1199_s9 = smov %s1062_s10 }
 0x11c   : > { %p9_p5 = scmp.ge.s32.totalorder %s12_s11, 4   ;;  %s1200_s10 = smov %s1202_s12 }
 0x11e   :  { %11 = sbr.rel (!%p9_p5) target bundleno = 2 (0x2), region = 69 }

// kernel: gae_forward.17
= control target key start
LH: loop header
LB: loop body
LE: loop exit
PB: predicated region body
PF: predicated region fallthrough
CT: control target
= control target key end

     0   :  { %s799_s12 = smov 0   ;;  %s1031_s0 = inlined_call_operand.vmem [shape: bf16[256,32], index: 0, kind: input, shape index: {}]   ;;  %s1032_s1 = inlined_call_operand.vmem [shape: bf16[32,4], index: 1, kind: input, shape index: {}]   ;;  %s1033_s2 = inlined_call_operand.vmem [shape: f32[1,4], index: 2, kind: input, shape index: {}]   ;;  %s1034_s3 = inlined_call_operand.vmem [shape: f32[256,4], index: 3, kind: output, shape index: {}]  }
   0x1 LB: > { %s625_s13 = sadd.s32 4294967295, %s777_s12   ;;  %p629_p0 = scmp.ge.s32.totalorder %s777_s12, 1  ;;  %s777_s12 = sphi %s799_s12, %s13_s12  }
   0x2   : > { %p138_p1 = scmp.lt.s32.totalorder %s777_s12, 3 }
   0x4   : > { %p139_p2 = pnand %p629_p0, %p138_p1 }
   0x5   : > { %v697_v0 = vld [vmem:[%s1032_s1] sm:$0xff] (!%p139_p2)   ;;  %s630_s16 = sshll.u32 (!%p139_p2), %s625_s13, 4  ;;  %v698_v1 = vld [vmem:[%s1032_s1 + $0x8] sm:$0xff] (!%p139_p2)   ;;  %vm254_vm0 = vcmask (!%p139_p2), 261120   ;;  %vm376_vm1 = vcmask (!%p139_p2), 31744  }
   0x6   : > { %142 = sbr.rel (%p139_p2) target bundleno = 580 (0x244), region = 32  ;;  %p163_p3 = scmp.lt.s32.totalorder (!%p139_p2), %s630_s16, 31  ;;  %665 = vmatprep.subr.bf16.mxu0 (!%p139_p2), %v697_v0  ;;  %685 = vmatprep.subr.bf16.mxu1 (!%p139_p2), %v697_v0  ;;  %v634_v10 = vld [vmem:[%s1033_s2] ss:$0 sm:$0xff] (!%p139_p2) }
   0x7   : > { %666 = vmatpush3.bf16.msra.mxu0 (!%p139_p2), %v697_v0  ;;  %687 = vmatpush3.bf16.msra.mxu1 (!%p139_p2), %v697_v0 }
   0x8   : > { %667 = vmatprep.subr.bf16.mxu0 (!%p139_p2), %v698_v1  ;;  %686 = vmatprep.subr.bf16.mxu1 (!%p139_p2), %v698_v1 }
   0xb   : > { %668 = vmatpush3.bf16.msra.mxu0 (!%p139_p2), %v698_v1  ;;  %688 = vmatpush3.bf16.msra.mxu1 (!%p139_p2), %v698_v1 }
   0xd   : > { %s1036_s16 = smov (!%p163_p3, %s630_s16), 31 }
   0xe   : > { %s631_s19 = sshll.u32 %s1036_s16, 2  ;;  %s633_s25 = sshll.u32 %s1036_s16, 3 }
   0xf   : > { %s166_s22 = scalar_lea.vmem %s1031_s0, %s631_s19  ;;  %s978_s28 = scalar_lea.vmem %s1034_s3, %s633_s25 }
  0x10   : > { %v699_v2 = vld [vmem:[%s166_s22] sm:$0xff]   ;;  %v701_v4 = vld [vmem:[%s166_s22 + $0x8] sm:$0xff]   ;;  %v703_v6 = vld [vmem:[%s166_s22 + $0x10] sm:$0xff]  }
  0x11   : > { %v700_v3 = vld [vmem:[%s166_s22 + $0x20] sm:$0xff]   ;;  %669 = vmatprep.mubr.msk.bf16.mxu0 %vm254_vm0, %v699_v2  ;;  %v702_v5 = vld [vmem:[%s166_s22 + $0x28] sm:$0xff]   ;;  %v705_v7 = vld [vmem:[%s166_s22 + $0x30] sm:$0xff]  }
  0x12   : > { %677 = vmatprep.mubr.msk.bf16.mxu1 %vm254_vm0, %v700_v3  ;;  %670 = vmatmul.mubr.msk.bf16.vlgmr.msra.gmra.mrb[0].mxu0 %vm254_vm0, %v701_v4  ;;  %v704_v8 = vld [vmem:[%s166_s22 + $0x18] sm:$0xff]  }
  0x13   : > { %678 = vmatmul.mubr.msk.bf16.vlgmr.msra.gmra.mrb[0].mxu1 %vm254_vm0, %v702_v5  ;;  %673 = vmatprep.mubr.msk.bf16.mxu0 %vm254_vm0, %v703_v6  ;;  %v706_v9 = vld [vmem:[%s166_s22 + $0x38] sm:$0xff]  }
  0x14   : > { %681 = vmatprep.mubr.msk.bf16.mxu1 %vm254_vm0, %v705_v7 }
  0x1a   : > { %674 = vmatmul.mubr.msk.bf16.gmra.mrb[4].mxu0 %vm254_vm0, %v704_v8 }
  0x1b   : > { %682 = vmatmul.mubr.msk.bf16.gmra.mrb[4].mxu1 %vm254_vm0, %v706_v9 }
  0xe5   : > { %v671_v11 = vpop.f32.mrb[0].mxu0 }
  0xe6   : > { %v830_v12 = vadd.f32 %v671_v11, %v634_v10  ;;  %v679_v13 = vpop.f32.mrb[0].mxu1  ;;  %v313_v14 = vpop.f32.mrb[1].mxu0 }
  0xe7   : > { %v832_v15 = vadd.f32 %v679_v13, %v634_v10  ;;  %v345_v16 = vpop.f32.mrb[1].mxu1  ;;  %v672_v17 = vpop.f32.mrb[2].mxu0  ;;  %v838_v22 = vadd.f32 %v634_v10, %v313_v14 }
  0xe8   : > { %v834_v18 = vadd.f32 %v672_v17, %v634_v10  ;;  %v680_v19 = vpop.f32.mrb[2].mxu1  ;;  %v316_v20 = vpop.f32.mrb[3].mxu0  ;;  %v383_v21 = vsel %vm376_vm1, %v830_v12, -inf  ;;  %v846_v27 = vadd.f32 %v634_v10, %v345_v16 }
  0xe9   : > { %v348_v23 = vpop.f32.mrb[3].mxu1  ;;  %v407_v24 = vsel %vm376_vm1, %v832_v15, -inf  ;;  %384 = vmax.xlane.f32.xlu1 %v383_v21  ;;  %v842_v25 = vadd.f32 %v680_v19, %v634_v10  ;;  %v377_v28 = vsel %vm376_vm1, %v838_v22, -inf  ;;  %v854_v38 = vadd.f32 %v634_v10, %v316_v20 }
  0xea   : > { %408 = vmax.xlane.f32.xlu0 %v407_v24  ;;  %v386_v26 = vsel %vm376_vm1, %v834_v18, -inf  ;;  %v850_v34 = vadd.f32 %v634_v10, %v348_v23  ;;  %v401_v39 = vsel %vm376_vm1, %v846_v27, -inf }
  0xeb   : > { %v410_v35 = vsel %vm376_vm1, %v842_v25, -inf  ;;  %v380_v44 = vsel %vm376_vm1, %v854_v38, -inf }
  0xec   : > { %v404_v43 = vsel %vm376_vm1, %v850_v34, -inf }
  0xed   : > { %387 = vmax.xlane.f32.xlu1 %v386_v26  ;;  %v675_v29 = vpop.f32.mrb[4].mxu0 }
  0xee   : > { %378 = vmax.xlane.f32.xlu0 %v377_v28  ;;  %v329_v30 = vpop.f32.mrb[5].mxu0  ;;  %v683_v31 = vpop.f32.mrb[4].mxu1  ;;  %v860_v42 = vadd.f32 %v675_v29, %v634_v10 }
  0xef   : > { %v676_v32 = vpop.f32.mrb[6].mxu0  ;;  %v361_v33 = vpop.f32.mrb[5].mxu1  ;;  %v872_v48 = vadd.f32 %v634_v10, %v329_v30  ;;  %v888_v56 = vadd.f32 %v683_v31, %v634_v10 }
  0xf0   : > { %v332_v36 = vpop.f32.mrb[7].mxu0  ;;  %v684_v37 = vpop.f32.mrb[6].mxu1  ;;  %v858_v41 = vadd.f32 %v676_v32, %v634_v10  ;;  %v395_v46 = vsel %vm376_vm1, %v860_v42, -inf  ;;  %v876_v50 = vadd.f32 %v634_v10, %v361_v33 }
  0xf1   : > { %411 = vmax.xlane.f32.xlu1 %v410_v35  ;;  %v364_v40 = vpop.f32.mrb[7].mxu1  ;;  %v870_v47 = vadd.f32 %v634_v10, %v332_v36  ;;  %v389_v52 = vsel %vm376_vm1, %v872_v48, -inf  ;;  %v886_v55 = vadd.f32 %v684_v37, %v634_v10  ;;  %v419_v58 = vsel %vm376_vm1, %v888_v56, -inf }
  0xf2   : > { %402 = vmax.xlane.f32.xlu0 %v401_v39  ;;  %v398_v45 = vsel %vm376_vm1, %v858_v41, -inf  ;;  %v874_v49 = vadd.f32 %v634_v10, %v364_v40  ;;  %v413_v54 = vsel %vm376_vm1, %v876_v50, -inf }
  0xf3   : > { %v392_v51 = vsel %vm376_vm1, %v870_v47, -inf  ;;  %v422_v57 = vsel %vm376_vm1, %v886_v55, -inf }
  0xf4   : > { %v416_v53 = vsel %vm376_vm1, %v874_v49, -inf }
  0xf5   : > { %405 = vmax.xlane.f32.xlu1 %v404_v43 }
  0xf6   : > { %381 = vmax.xlane.f32.xlu0 %v380_v44 }
  0xf9   : > { %399 = vmax.xlane.f32.xlu1 %v398_v45 }
  0xfa   : > { %396 = vmax.xlane.f32.xlu0 %v395_v46 }
  0xfd   : > { %393 = vmax.xlane.f32.xlu1 %v392_v51 }
  0xfe   : > { %390 = vmax.xlane.f32.xlu0 %v389_v52 }
 0x101   : > { %417 = vmax.xlane.f32.xlu1 %v416_v53 }
 0x102   : > { %414 = vmax.xlane.f32.xlu0 %v413_v54 }
 0x105   : > { %423 = vmax.xlane.f32.xlu1 %v422_v57 }
 0x106   : > { %420 = vmax.xlane.f32.xlu0 %v419_v58 }
 0x176   : > { %v385_v59 = vpop.xlane.xlu1 %384 }
 0x177   : > { %v409_v60 = vpop.xlane.xlu0 %408  ;;  %v427_v61 = vsub.f32 %v830_v12, %v385_v59 }
 0x178   : > { %v435_v62 = vsub.f32 %v832_v15, %v409_v60 }
 0x179   : > { %v445_v63 = vmul.f32 1.442695, %v427_v61 }
 0x17a   : > { %v461_v0 = vmul.f32 1.442695, %v435_v62  ;;  %v388_v1 = vpop.xlane.xlu1 %387 }
 0x17b   : > { %707 = vpow2.f32 %v445_v63  ;;  %v428_v2 = vsub.f32 %v834_v18, %v388_v1  ;;  %v379_v3 = vpop.xlane.xlu0 %378 }
 0x17c   : > { %v425_v4 = vsub.f32 %v838_v22, %v379_v3  ;;  %709 = vpow2.f32 %v461_v0 }
 0x17d   : > { %v447_v5 = vmul.f32 1.442695, %v428_v2 }
 0x17e   : > { %v441_v6 = vmul.f32 1.442695, %v425_v4  ;;  %v412_v7 = vpop.xlane.xlu1 %411 }
 0x17f   : > { %711 = vpow2.f32 %v447_v5  ;;  %v436_v8 = vsub.f32 %v842_v25, %v412_v7  ;;  %v403_v9 = vpop.xlane.xlu0 %402 }
 0x180   : > { %v433_v10 = vsub.f32 %v846_v27, %v403_v9  ;;  %713 = vpow2.f32 %v441_v6 }
 0x181   : > { %v463_v11 = vmul.f32 1.442695, %v436_v8 }
 0x182   : > { %v457_v12 = vmul.f32 1.442695, %v433_v10  ;;  %v406_v13 = vpop.xlane.xlu1 %405 }
 0x183   : > { %715 = vpow2.f32 %v463_v11  ;;  %v434_v14 = vsub.f32 %v850_v34, %v406_v13  ;;  %v382_v15 = vpop.xlane.xlu0 %381 }
 0x184   : > { %v426_v16 = vsub.f32 %v854_v38, %v382_v15  ;;  %717 = vpow2.f32 %v457_v12 }
 0x185   : > { %v902_v17 = vpop.eup %707  ;;  %v459_v18 = vmul.f32 1.442695, %v434_v14 }
 0x186   : > { %v443_v19 = vmul.f32 1.442695, %v426_v16  ;;  %v400_v20 = vpop.xlane.xlu1 %399  ;;  %v479_v21 = vsel %vm376_vm1, %v902_v17, 0.0  ;;  %v906_v22 = vpop.eup %709 }
 0x187   : > { %v432_v23 = vsub.f32 %v858_v41, %v400_v20  ;;  %v397_v24 = vpop.xlane.xlu0 %396  ;;  %480 = vadd.xlane.f32.xlu0 %v479_v21  ;;  %v503_v31 = vsel %vm376_vm1, %v906_v22, 0.0 }
 0x188   : > { %719 = vpow2.f32 %v443_v19  ;;  %v431_v25 = vsub.f32 %v860_v42, %v397_v24 }
 0x189   : > { %v910_v26 = vpop.eup %711  ;;  %v455_v27 = vmul.f32 1.442695, %v432_v23  ;;  %721 = vpow2.f32 %v459_v18 }
 0x18a   : > { %v453_v28 = vmul.f32 1.442695, %v431_v25  ;;  %v394_v29 = vpop.xlane.xlu1 %393  ;;  %v482_v30 = vsel %vm376_vm1, %v910_v26, 0.0  ;;  %v916_v32 = vpop.eup %713 }
 0x18b   : > { %v430_v33 = vsub.f32 %v870_v47, %v394_v29  ;;  %v391_v34 = vpop.xlane.xlu0 %390  ;;  %483 = vadd.xlane.f32.xlu1 %v482_v30  ;;  %504 = vadd.xlane.f32.xlu0 %v503_v31  ;;  %v473_v41 = vsel %vm376_vm1, %v916_v32, 0.0 }
 0x18c   : > { %723 = vpow2.f32 %v453_v28  ;;  %v429_v35 = vsub.f32 %v872_v48, %v391_v34 }
 0x18d   : > { %v920_v36 = vpop.eup %715  ;;  %725 = vpow2.f32 %v455_v27  ;;  %v451_v37 = vmul.f32 1.442695, %v430_v33 }
 0x18e   : > { %v449_v38 = vmul.f32 1.442695, %v429_v35  ;;  %v418_v39 = vpop.xlane.xlu1 %417  ;;  %v506_v40 = vsel %vm376_vm1, %v920_v36, 0.0  ;;  %v926_v42 = vpop.eup %717 }
 0x18f   : > { %v438_v43 = vsub.f32 %v874_v49, %v418_v39  ;;  %v415_v44 = vpop.xlane.xlu0 %414  ;;  %507 = vadd.xlane.f32.xlu1 %v506_v40  ;;  %474 = vadd.xlane.f32.xlu0 %v473_v41  ;;  %v497_v52 = vsel %vm376_vm1, %v926_v42, 0.0 }
 0x190   : > { %727 = vpow2.f32 %v449_v38  ;;  %v437_v45 = vsub.f32 %v876_v50, %v415_v44 }
 0x191   : > { %729 = vpow2.f32 %v451_v37  ;;  %v467_v47 = vmul.f32 1.442695, %v438_v43 }
 0x192   : > { %v930_v46 = vpop.eup %719  ;;  %v465_v48 = vmul.f32 1.442695, %v437_v45  ;;  %v424_v51 = vpop.xlane.xlu1 %423 }
 0x193   : > { %v440_v53 = vsub.f32 %v886_v55, %v424_v51  ;;  %v421_v54 = vpop.xlane.xlu0 %420  ;;  %498 = vadd.xlane.f32.xlu0 %v497_v52  ;;  %v476_v49 = vsel %vm376_vm1, %v930_v46, 0.0  ;;  %v937_v57 = vpop.eup %721 }
 0x194   : > { %731 = vpow2.f32 %v465_v48  ;;  %v439_v50 = vsub.f32 %v888_v56, %v421_v54  ;;  %477 = vadd.xlane.f32.xlu1 %v476_v49  ;;  %v500_v55 = vsel %vm376_vm1, %v937_v57, 0.0 }
 0x195   : > { %733 = vpow2.f32 %v467_v47  ;;  %v471_v59 = vmul.f32 1.442695, %v440_v53 }
 0x196   : > { %v940_v58 = vpop.eup %723  ;;  %v469_v60 = vmul.f32 1.442695, %v439_v50 }
 0x197   : > { %v942_v61 = vpop.eup %725  ;;  %v491_v62 = vsel %vm376_vm1, %v940_v58, 0.0 }
 0x198   : > { %735 = vpow2.f32 %v469_v60  ;;  %501 = vadd.xlane.f32.xlu1 %v500_v55  ;;  %492 = vadd.xlane.f32.xlu0 %v491_v62  ;;  %v494_v56 = vsel %vm376_vm1, %v942_v61, 0.0 }
 0x199   : > { %737 = vpow2.f32 %v471_v59 }
 0x19a   : > { %v948_v63 = vpop.eup %727 }
 0x19b   : > { %v485_v0 = vsel %vm376_vm1, %v948_v63, 0.0  ;;  %v954_v1 = vpop.eup %729 }
 0x19c   : > { %495 = vadd.xlane.f32.xlu1 %v494_v56  ;;  %486 = vadd.xlane.f32.xlu0 %v485_v0  ;;  %v488_v3 = vsel %vm376_vm1, %v954_v1, 0.0 }
 0x19e   : > { %v956_v2 = vpop.eup %731 }
 0x19f   : > { %v509_v4 = vsel %vm376_vm1, %v956_v2, 0.0  ;;  %v962_v5 = vpop.eup %733 }
 0x1a0   : > { %489 = vadd.xlane.f32.xlu1 %v488_v3  ;;  %510 = vadd.xlane.f32.xlu0 %v509_v4  ;;  %v512_v7 = vsel %vm376_vm1, %v962_v5, 0.0 }
 0x1a2   : > { %v964_v6 = vpop.eup %735 }
 0x1a3   : > { %v515_v8 = vsel %vm376_vm1, %v964_v6, 0.0  ;;  %v970_v9 = vpop.eup %737 }
 0x1a4   : > { %513 = vadd.xlane.f32.xlu1 %v512_v7  ;;  %516 = vadd.xlane.f32.xlu0 %v515_v8  ;;  %v518_v10 = vsel %vm376_vm1, %v970_v9, 0.0 }
 0x1a8   : > { %519 = vadd.xlane.f32.xlu1 %v518_v10 }
 0x214   : > { %v481_v11 = vpop.xlane.xlu0 %480 }
 0x215   : > { %739 = vrcp.f32 %v481_v11 }
 0x218   : > { %v484_v12 = vpop.xlane.xlu1 %483  ;;  %v505_v13 = vpop.xlane.xlu0 %504 }
 0x219   : > { %741 = vrcp.f32 %v484_v12 }
 0x21a   : > { %743 = vrcp.f32 %v505_v13 }
 0x21c   : > { %v508_v14 = vpop.xlane.xlu1 %507  ;;  %v475_v15 = vpop.xlane.xlu0 %474 }
 0x21d   : > { %745 = vrcp.f32 %v508_v14 }
 0x21e   : > { %747 = vrcp.f32 %v475_v15 }
 0x21f   : > { %v740_v16 = vpop.eup %739 }
 0x220   : > { %v526_v18 = vmul.f32 %v740_v16, %v902_v17  ;;  %v499_v19 = vpop.xlane.xlu0 %498 }
 0x221   : > { %v478_v20 = vpop.xlane.xlu1 %477  ;;  %749 = vrcp.f32 %v499_v19 }
 0x222   : > { %555 = vst.msk [vmem:[%s978_s28 + $0x10] sm:$0xff] %vm376_vm1, %v526_v18  ;;  %751 = vrcp.f32 %v478_v20 }
 0x223   : > { %v742_v21 = vpop.eup %741 }
 0x224   : > { %v744_v23 = vpop.eup %743  ;;  %v528_v24 = vmul.f32 %v742_v21, %v910_v26 }
 0x225   : > { %v542_v25 = vmul.f32 %v744_v23, %v906_v22  ;;  %v502_v27 = vpop.xlane.xlu1 %501  ;;  %v493_v28 = vpop.xlane.xlu0 %492 }
 0x226   : > { %556 = vst.msk [vmem:[%s978_s28 + $0x18] sm:$0xff] %vm376_vm1, %v528_v24  ;;  %753 = vrcp.f32 %v502_v27 }
 0x227   : > { %v746_v17 = vpop.eup %745  ;;  %563 = vst.msk [vmem:[%s978_s28 + $0x50] sm:$0xff] %vm376_vm1, %v542_v25  ;;  %755 = vrcp.f32 %v493_v28 }
 0x228   : > { %v748_v29 = vpop.eup %747  ;;  %v544_v30 = vmul.f32 %v746_v17, %v920_v36 }
 0x229   : > { %v522_v31 = vmul.f32 %v748_v29, %v916_v32  ;;  %v496_v26 = vpop.xlane.xlu1 %495  ;;  %v487_v33 = vpop.xlane.xlu0 %486 }
 0x22a   : > { %564 = vst.msk [vmem:[%s978_s28 + $0x58] sm:$0xff] %vm376_vm1, %v544_v30  ;;  %757 = vrcp.f32 %v496_v26 }
 0x22b   : > { %v750_v22 = vpop.eup %749  ;;  %553 = vst.msk [vmem:[%s978_s28] sm:$0xff] %vm376_vm1, %v522_v31  ;;  %759 = vrcp.f32 %v487_v33 }
 0x22c   : > { %v752_v34 = vpop.eup %751  ;;  %v538_v35 = vmul.f32 %v750_v22, %v926_v42 }
 0x22d   : > { %v524_v37 = vmul.f32 %v752_v34, %v930_v46  ;;  %v490_v38 = vpop.xlane.xlu1 %489  ;;  %v511_v36 = vpop.xlane.xlu0 %510 }
 0x22e   : > { %561 = vst.msk [vmem:[%s978_s28 + $0x40] sm:$0xff] %vm376_vm1, %v538_v35  ;;  %761 = vrcp.f32 %v490_v38 }
 0x22f   : > { %554 = vst.msk [vmem:[%s978_s28 + $0x8] sm:$0xff] %vm376_vm1, %v524_v37  ;;  %763 = vrcp.f32 %v511_v36 }
 0x230   : > { %v754_v32 = vpop.eup %753 }
 0x231   : > { %v756_v39 = vpop.eup %755  ;;  %v540_v40 = vmul.f32 %v754_v32, %v937_v57  ;;  %v514_v41 = vpop.xlane.xlu1 %513 }
 0x232   : > { %v517_v43 = vpop.xlane.xlu0 %516  ;;  %v534_v42 = vmul.f32 %v756_v39, %v940_v58  ;;  %765 = vrcp.f32 %v514_v41 }
 0x233   : > { %562 = vst.msk [vmem:[%s978_s28 + $0x48] sm:$0xff] %vm376_vm1, %v540_v40  ;;  %767 = vrcp.f32 %v517_v43 }
 0x234   : > { %v758_v44 = vpop.eup %757  ;;  %559 = vst.msk [vmem:[%s978_s28 + $0x30] sm:$0xff] %vm376_vm1, %v534_v42 }
 0x235   : > { %v760_v45 = vpop.eup %759  ;;  %v536_v46 = vmul.f32 %v758_v44, %v942_v61  ;;  %v520_v47 = vpop.xlane.xlu1 %519 }
 0x236   : > { %v530_v48 = vmul.f32 %v760_v45, %v948_v63  ;;  %769 = vrcp.f32 %v520_v47 }
 0x237   : > { %560 = vst.msk [vmem:[%s978_s28 + $0x38] sm:$0xff] %vm376_vm1, %v536_v46 }
 0x238   : > { %v762_v51 = vpop.eup %761  ;;  %557 = vst.msk [vmem:[%s978_s28 + $0x20] sm:$0xff] %vm376_vm1, %v530_v48 }
 0x239   : > { %v764_v52 = vpop.eup %763  ;;  %v532_v53 = vmul.f32 %v762_v51, %v954_v1 }
 0x23a   : > { %v546_v54 = vmul.f32 %v764_v52, %v956_v2 }
 0x23b   : > { %558 = vst.msk [vmem:[%s978_s28 + $0x28] sm:$0xff] %vm376_vm1, %v532_v53 }
 0x23c   : > { %v766_v49 = vpop.eup %765  ;;  %565 = vst.msk [vmem:[%s978_s28 + $0x60] sm:$0xff] %vm376_vm1, %v546_v54 }
 0x23d   : > { %v768_v57 = vpop.eup %767  ;;  %v548_v50 = vmul.f32 %v766_v49, %v962_v5 }
 0x23e   : > { %v550_v58 = vmul.f32 %v768_v57, %v964_v6 }
 0x23f   : > { %566 = vst.msk [vmem:[%s978_s28 + $0x68] sm:$0xff] %vm376_vm1, %v548_v50 }
 0x240   : > { %v770_v59 = vpop.eup %769  ;;  %567 = vst.msk [vmem:[%s978_s28 + $0x70] sm:$0xff] %vm376_vm1, %v550_v58 }
 0x241   : > { %v552_v60 = vmul.f32 %v770_v59, %v970_v9 }
 0x243   : > { %568 = vst.msk [vmem:[%s978_s28 + $0x78] sm:$0xff] %vm376_vm1, %v552_v60 }
 0x244 PF: > { %s13_s12 = sadd.s32 1, %s777_s12  }
 0x245   : > { %p10_p4 = scmp.ge.s32.totalorder %s13_s12, 4  }
 0x247   :  { %12 = sbr.rel (!%p10_p4) target bundleno = 1 (0x1), region = 62 }

// kernel: gae_forward.13
= control target key start
LH: loop header
LB: loop body
LE: loop exit
PB: predicated region body
PF: predicated region fallthrough
CT: control target
= control target key end

     0   :  { %s1348_s12 = smov 0   ;;  %s1350_s13 = smov 0   ;;  %s1485_s0 = inlined_call_operand.vmem [shape: bf16[256,256], index: 0, kind: input, shape index: {}]   ;;  %s1486_s1 = inlined_call_operand.vmem [shape: bf16[256,128], index: 1, kind: input, shape index: {}]   ;;  %s1487_s2 = inlined_call_operand.vmem [shape: bf16[128,128], index: 2, kind: input, shape index: {}]   ;;  %s1488_s3 = inlined_call_operand.vmem [shape: bf16[256,128], index: 3, kind: output, shape index: {}]  }
   0x1   :  { %s1352_s14 = smov 0  }
   0x2 LB: > { %s25_s15 = sadd.s32 1, %s1322_s13  ;;  %p992_p0 = scmp.ge.s32.totalorder %s1326_s14, 1  ;;  %s1326_s14 = sphi %s1352_s14, %s13_s14   ;;  %s1322_s13 = sphi %s1350_s13, %s1490_s13   ;;  %s1318_s12 = sphi %s1348_s12, %s1489_s12  }
   0x3   : > { %p27_p1 = scmp.ge.s32.totalorder %s25_s15, 2  ;;  %p169_p2 = scmp.lt.s32.totalorder %s1326_s14, 3 }
   0x5   : > { %s1492_s15 = smov (%p27_p1, %s25_s15), 0  ;;  %p170_p3 = pnand %p992_p0, %p169_p2 }
   0x6   : > { %v1256_v0 = vld [vmem:[%s1486_s1 + $0x40] sm:$0xff] (!%p170_p3)   ;;  %s993_s18 = sshll.u32 (!%p170_p3), %s1318_s12, 4  ;;  %v1258_v2 = vld [vmem:[%s1486_s1 + $0x48] sm:$0xff] (!%p170_p3)   ;;  %v1260_v4 = vld [vmem:[%s1486_s1 + $0x50] sm:$0xff] (!%p170_p3)  }
   0x7   : > { %173 = sbr.rel (%p170_p3) target bundleno = 534 (0x216), region = 32  ;;  %v1257_v1 = vld [vmem:[%s1486_s1] sm:$0xff] (!%p170_p3)   ;;  %1120 = vmatprep.subr.bf16.mxu0 (!%p170_p3), %v1256_v0  ;;  %v1259_v3 = vld [vmem:[%s1486_s1 + $0x8] sm:$0xff] (!%p170_p3)   ;;  %p205_p4 = scmp.lt.s32.totalorder (!%p170_p3), %s993_s18, 31  ;;  %v1261_v5 = vld [vmem:[%s1486_s1 + $0x10] sm:$0xff] (!%p170_p3)  }
   0x8   : > { %1121 = vmatpush3.bf16.msra.mxu0 (!%p170_p3), %v1257_v1  ;;  %v1262_v6 = vld [vmem:[%s1486_s1 + $0x58] sm:$0xff] (!%p170_p3)   ;;  %v1264_v8 = vld [vmem:[%s1486_s1 + $0x60] sm:$0xff] (!%p170_p3)   ;;  %v1266_v10 = vld [vmem:[%s1486_s1 + $0x68] sm:$0xff] (!%p170_p3)  }
   0x9   : > { %1122 = vmatprep.subr.bf16.mxu0 (!%p170_p3), %v1258_v2  ;;  %v1263_v7 = vld [vmem:[%s1486_s1 + $0x18] sm:$0xff] (!%p170_p3)   ;;  %v1265_v9 = vld [vmem:[%s1486_s1 + $0x20] sm:$0xff] (!%p170_p3)   ;;  %v1267_v12 = vld [vmem:[%s1486_s1 + $0x28] sm:$0xff] (!%p170_p3)  }
   0xa   : > { %v1268_v13 = vld [vmem:[%s1486_s1 + $0x70] sm:$0xff] (!%p170_p3)   ;;  %v1270_v15 = vld [vmem:[%s1486_s1 + $0x78] sm:$0xff] (!%p170_p3)   ;;  %v1296_v17 = vld [vmem:[%s1487_s2] sm:$0xff] (!%p170_p3)  }
   0xb   : > { %v1269_v14 = vld [vmem:[%s1486_s1 + $0x30] sm:$0xff] (!%p170_p3)   ;;  %v1271_v16 = vld [vmem:[%s1486_s1 + $0x38] sm:$0xff] (!%p170_p3)   ;;  %v1297_v19 = vld [vmem:[%s1487_s2 + $0x8] sm:$0xff] (!%p170_p3)   ;;  %1200 = vmatprep.subr.bf16.mxu1 (!%p170_p3), %v1296_v17 }
   0xc   : > { %1123 = vmatpush3.bf16.msra.mxu0 (!%p170_p3), %v1259_v3  ;;  %1201 = vmatpush3.bf16.msra.mxu1 (!%p170_p3), %v1296_v17  ;;  %v1298_v21 = vld [vmem:[%s1487_s2 + $0x10] sm:$0xff] (!%p170_p3)   ;;  %v1299_v22 = vld [vmem:[%s1487_s2 + $0x18] sm:$0xff] (!%p170_p3)   ;;  %v1300_v36 = vld [vmem:[%s1487_s2 + $0x20] sm:$0xff] (!%p170_p3)  }
   0xd   : > { %1124 = vmatprep.subr.bf16.mxu0 (!%p170_p3), %v1260_v4  ;;  %1202 = vmatprep.subr.bf16.mxu1 (!%p170_p3), %v1297_v19  ;;  %v1301_v37 = vld [vmem:[%s1487_s2 + $0x28] sm:$0xff] (!%p170_p3)   ;;  %v1302_v38 = vld [vmem:[%s1487_s2 + $0x30] sm:$0xff] (!%p170_p3)   ;;  %v1303_v39 = vld [vmem:[%s1487_s2 + $0x38] sm:$0xff] (!%p170_p3)  }
   0xe   : > { %s1494_s18 = smov (!%p205_p4, %s993_s18), 31 }
   0xf   : > { %s1056_s6 = sshll.u32 %s1494_s18, 3  ;;  %s997_s23 = sshll.u32 %s1494_s18, 2 }
  0x10   : > { %1125 = vmatpush3.bf16.msra.mxu0 %v1261_v5  ;;  %s1399_s11 = scalar_lea.vmem %s1485_s0, %s1056_s6  ;;  %1203 = vmatpush3.bf16.msra.mxu1 %v1297_v19  ;;  %s1466_s26 = scalar_lea.vmem %s1488_s3, %s997_s23 }
  0x11   : > { %1126 = vmatprep.subr.bf16.mxu0 %v1262_v6  ;;  %v1274_v11 = vld [vmem:[%s1399_s11 + $0x4] ss:$8 sps:$4 sm:$0xff]   ;;  %v1272_v18 = vld [vmem:[%s1399_s11] ss:$8 sps:$4 sm:$0xff]   ;;  %v1275_v20 = vld [vmem:[%s1399_s11 + $0x14] ss:$8 sps:$4 sm:$0xff]   ;;  %1204 = vmatprep.subr.bf16.mxu1 %v1298_v21 }
  0x12   : > { %520 = vmatprep.mubr.bf16.mxu0 %v1274_v11  ;;  %v1277_v23 = vld [vmem:[%s1399_s11 + $0x10] ss:$8 sps:$4 sm:$0xff]   ;;  %v1278_v24 = vld [vmem:[%s1399_s11 + $0x24] ss:$8 sps:$4 sm:$0xff]   ;;  %v1280_v25 = vld [vmem:[%s1399_s11 + $0x20] ss:$8 sps:$4 sm:$0xff]  }
  0x13   : > { %v1281_v26 = vld [vmem:[%s1399_s11 + $0x34] ss:$8 sps:$4 sm:$0xff]   ;;  %v1283_v27 = vld [vmem:[%s1399_s11 + $0x30] ss:$8 sps:$4 sm:$0xff]   ;;  %v1284_v28 = vld [vmem:[%s1399_s11 + $0x44] ss:$8 sps:$4 sm:$0xff]  }
  0x14   : > { %1127 = vmatpush3.bf16.msra.mxu0 %v1263_v7  ;;  %1205 = vmatpush3.bf16.msra.mxu1 %v1298_v21  ;;  %v1286_v29 = vld [vmem:[%s1399_s11 + $0x40] ss:$8 sps:$4 sm:$0xff]   ;;  %v1287_v30 = vld [vmem:[%s1399_s11 + $0x54] ss:$8 sps:$4 sm:$0xff]   ;;  %v1289_v31 = vld [vmem:[%s1399_s11 + $0x50] ss:$8 sps:$4 sm:$0xff]  }
  0x15   : > { %1128 = vmatprep.subr.bf16.mxu0 %v1264_v8  ;;  %1206 = vmatprep.subr.bf16.mxu1 %v1299_v22  ;;  %v1290_v32 = vld [vmem:[%s1399_s11 + $0x64] ss:$8 sps:$4 sm:$0xff]   ;;  %v1292_v33 = vld [vmem:[%s1399_s11 + $0x60] ss:$8 sps:$4 sm:$0xff]   ;;  %v1293_v34 = vld [vmem:[%s1399_s11 + $0x74] ss:$8 sps:$4 sm:$0xff]  }
  0x16   : > { %v1295_v35 = vld [vmem:[%s1399_s11 + $0x70] ss:$8 sps:$4 sm:$0xff]  }
  0x18   : > { %1129 = vmatpush3.bf16.msra.mxu0 %v1265_v9  ;;  %1207 = vmatpush3.bf16.msra.mxu1 %v1299_v22 }
  0x19   : > { %1130 = vmatprep.subr.bf16.mxu0 %v1266_v10  ;;  %1208 = vmatprep.subr.bf16.mxu1 %v1300_v36 }
  0x1c   : > { %1131 = vmatpush3.bf16.msra.mxu0 %v1267_v12  ;;  %1209 = vmatpush3.bf16.msra.mxu1 %v1300_v36 }
  0x1d   : > { %1132 = vmatprep.subr.bf16.mxu0 %v1268_v13  ;;  %1210 = vmatprep.subr.bf16.mxu1 %v1301_v37 }
  0x20   : > { %1133 = vmatpush3.bf16.msra.mxu0 %v1269_v14  ;;  %1211 = vmatpush3.bf16.msra.mxu1 %v1301_v37 }
  0x21   : > { %1134 = vmatprep.subr.bf16.mxu0 %v1270_v15  ;;  %1212 = vmatprep.subr.bf16.mxu1 %v1302_v38 }
  0x24   : > { %1135 = vmatpush3.bf16.msra.mxu0 %v1271_v16  ;;  %1213 = vmatpush3.bf16.msra.mxu1 %v1302_v38 }
  0x25   : > { %1214 = vmatprep.subr.bf16.mxu1 %v1303_v39 }
  0x27   : > { %521 = vmatmul.mubr.bf16.vlgmr.msra.gmra.mrb[0].mxu0 %v1272_v18 }
  0x28   : > { %528 = vmatprep.mubr.bf16.mxu0 %v1275_v20  ;;  %1215 = vmatpush3.bf16.msra.mxu1 %v1303_v39 }
  0x2f   : > { %529 = vmatmul.mubr.bf16.gmra.mrb[4].mxu0 %v1277_v23 }
  0x30   : > { %536 = vmatprep.mubr.bf16.mxu0 %v1278_v24 }
  0x37   : > { %537 = vmatmul.mubr.bf16.gmra.mrb[8].mxu0 %v1280_v25 }
  0x38   : > { %544 = vmatprep.mubr.bf16.mxu0 %v1281_v26 }
  0x3f   : > { %545 = vmatmul.mubr.bf16.gmra.mrb[12].mxu0 %v1283_v27 }
  0x40   : > { %552 = vmatprep.mubr.bf16.mxu0 %v1284_v28 }
  0x47   : > { %553 = vmatmul.mubr.bf16.gmra.mrb[16].mxu0 %v1286_v29 }
  0x48   : > { %560 = vmatprep.mubr.bf16.mxu0 %v1287_v30 }
  0x4f   : > { %561 = vmatmul.mubr.bf16.gmra.mrb[20].mxu0 %v1289_v31 }
  0x50   : > { %568 = vmatprep.mubr.bf16.mxu0 %v1290_v32 }
  0x57   : > { %569 = vmatmul.mubr.bf16.gmra.mrb[24].mxu0 %v1292_v33 }
  0x58   : > { %576 = vmatprep.mubr.bf16.mxu0 %v1293_v34 }
  0x5f   : > { %577 = vmatmul.mubr.bf16.gmra.mrb[28].mxu0 %v1295_v35 }
  0xfa   : > { %v1136_v40 = vpop.f32.mrb[0].mxu0 }
  0xfb   : > { %v1137_v41 = vpop.f32.mrb[1].mxu0 }
  0xfc   : > { %v1138_v42 = vadd.f32 %v1137_v41, %v1136_v40  ;;  %v1139_v43 = vpop.f32.mrb[2].mxu0 }
  0xfd   : > { %v1140_v44 = vpop.f32.mrb[3].mxu0 }
  0xfe   : > { %v1141_v45 = vadd.f32 %v1140_v44, %v1139_v43 }
 0x100   : > { %v636_v46 = vpack.c.bf16 %v1141_v45, %v1138_v42 }
 0x102   : > { %v1142_v47 = vpop.f32.mrb[4].mxu0  ;;  %1216 = vmatprep.mubr.bf16.mxu1 %v636_v46 }
 0x103   : > { %v1143_v48 = vpop.f32.mrb[5].mxu0 }
 0x104   : > { %v1144_v49 = vadd.f32 %v1143_v48, %v1142_v47  ;;  %v1145_v50 = vpop.f32.mrb[6].mxu0 }
 0x105   : > { %v1146_v51 = vpop.f32.mrb[7].mxu0 }
 0x106   : > { %v1147_v52 = vadd.f32 %v1146_v51, %v1145_v50 }
 0x108   : > { %v637_v53 = vpack.c.bf16 %v1147_v52, %v1144_v49 }
 0x10a   : > { %v1148_v54 = vpop.f32.mrb[8].mxu0  ;;  %1217 = vmatmul.mubr.bf16.vlgmr.msra.gmra.mrb[0].mxu1 %v637_v53 }
 0x10b   : > { %v1149_v55 = vpop.f32.mrb[9].mxu0 }
 0x10c   : > { %v1150_v56 = vadd.f32 %v1149_v55, %v1148_v54  ;;  %v1151_v57 = vpop.f32.mrb[10].mxu0 }
 0x10d   : > { %v1152_v58 = vpop.f32.mrb[11].mxu0 }
 0x10e   : > { %v1153_v59 = vadd.f32 %v1152_v58, %v1151_v57 }
 0x110   : > { %v638_v60 = vpack.c.bf16 %v1153_v59, %v1150_v56 }
 0x112   : > { %v1154_v61 = vpop.f32.mrb[12].mxu0  ;;  %1220 = vmatprep.mubr.bf16.mxu1 %v638_v60 }
 0x113   : > { %v1155_v62 = vpop.f32.mrb[13].mxu0 }
 0x114   : > { %v1156_v63 = vadd.f32 %v1155_v62, %v1154_v61  ;;  %v1157_v0 = vpop.f32.mrb[14].mxu0 }
 0x115   : > { %v1158_v1 = vpop.f32.mrb[15].mxu0 }
 0x116   : > { %v1159_v2 = vadd.f32 %v1158_v1, %v1157_v0 }
 0x118   : > { %v639_v3 = vpack.c.bf16 %v1159_v2, %v1156_v63 }
 0x11a   : > { %v1160_v4 = vpop.f32.mrb[16].mxu0  ;;  %1221 = vmatmul.mubr.bf16.gmra.mrb[4].mxu1 %v639_v3 }
 0x11b   : > { %v1161_v5 = vpop.f32.mrb[17].mxu0 }
 0x11c   : > { %v1162_v6 = vadd.f32 %v1161_v5, %v1160_v4  ;;  %v1163_v7 = vpop.f32.mrb[18].mxu0 }
 0x11d   : > { %v1164_v8 = vpop.f32.mrb[19].mxu0 }
 0x11e   : > { %v1165_v9 = vadd.f32 %v1164_v8, %v1163_v7 }
 0x120   : > { %v640_v10 = vpack.c.bf16 %v1165_v9, %v1162_v6 }
 0x122   : > { %v1166_v11 = vpop.f32.mrb[20].mxu0  ;;  %1224 = vmatprep.mubr.bf16.mxu1 %v640_v10 }
 0x123   : > { %v1167_v12 = vpop.f32.mrb[21].mxu0 }
 0x124   : > { %v1168_v13 = vadd.f32 %v1167_v12, %v1166_v11  ;;  %v1169_v14 = vpop.f32.mrb[22].mxu0 }
 0x125   : > { %v1170_v15 = vpop.f32.mrb[23].mxu0 }
 0x126   : > { %v1171_v16 = vadd.f32 %v1170_v15, %v1169_v14 }
 0x128   : > { %v641_v17 = vpack.c.bf16 %v1171_v16, %v1168_v13 }
 0x12a   : > { %v1172_v18 = vpop.f32.mrb[24].mxu0  ;;  %1225 = vmatmul.mubr.bf16.gmra.mrb[8].mxu1 %v641_v17 }
 0x12b   : > { %v1173_v19 = vpop.f32.mrb[25].mxu0 }
 0x12c   : > { %v1174_v20 = vadd.f32 %v1173_v19, %v1172_v18  ;;  %v1175_v21 = vpop.f32.mrb[26].mxu0 }
 0x12d   : > { %v1176_v22 = vpop.f32.mrb[27].mxu0 }
 0x12e   : > { %v1177_v23 = vadd.f32 %v1176_v22, %v1175_v21 }
 0x130   : > { %v642_v24 = vpack.c.bf16 %v1177_v23, %v1174_v20 }
 0x132   : > { %v1178_v25 = vpop.f32.mrb[28].mxu0  ;;  %1228 = vmatprep.mubr.bf16.mxu1 %v642_v24 }
 0x133   : > { %v1179_v26 = vpop.f32.mrb[29].mxu0 }
 0x134   : > { %v1180_v27 = vadd.f32 %v1179_v26, %v1178_v25  ;;  %v1181_v28 = vpop.f32.mrb[30].mxu0 }
 0x135   : > { %v1182_v29 = vpop.f32.mrb[31].mxu0 }
 0x136   : > { %v1183_v30 = vadd.f32 %v1182_v29, %v1181_v28 }
 0x138   : > { %v643_v31 = vpack.c.bf16 %v1183_v30, %v1180_v27 }
 0x13a   : > { %1229 = vmatmul.mubr.bf16.gmra.mrb[12].mxu1 %v643_v31 }
 0x1dd   : > { %v1218_v32 = vpop.f32.mrb[0].mxu1 }
 0x1de   : > { %v742_v33 = vpop.f32.mrb[1].mxu1  ;;  %v807_v35 = vmax.f32 %v1218_v32, 0.0 }
 0x1df   : > { %v1219_v34 = vpop.f32.mrb[2].mxu1  ;;  %v805_v38 = vmax.f32 %v742_v33, 0.0 }
 0x1e0   : > { %v808_v36 = vmax.f32 %v1219_v34, 0.0  ;;  %v745_v37 = vpop.f32.mrb[3].mxu1 }
 0x1e1   : > { %v806_v39 = vmax.f32 %v745_v37, 0.0 }
 0x1e2   : > { %v1081_v40 = vpack.c.bf16 %v808_v36, %v807_v35 }
 0x1e3   : > { %v1076_v41 = vpack.c.bf16 %v806_v39, %v805_v38 }
 0x1e4   : > { %1113 = vst [vmem:[%s1466_s26 + $0x8] sm:$0xff] %v1081_v40  }
 0x1e5   : > { %1077 = vst [vmem:[%s1466_s26] sm:$0xff] %v1076_v41  }
 0x1ed   : > { %v1222_v42 = vpop.f32.mrb[4].mxu1 }
 0x1ee   : > { %v758_v43 = vpop.f32.mrb[5].mxu1  ;;  %v811_v45 = vmax.f32 %v1222_v42, 0.0 }
 0x1ef   : > { %v1223_v44 = vpop.f32.mrb[6].mxu1  ;;  %v809_v48 = vmax.f32 %v758_v43, 0.0 }
 0x1f0   : > { %v812_v46 = vmax.f32 %v1223_v44, 0.0  ;;  %v761_v47 = vpop.f32.mrb[7].mxu1 }
 0x1f1   : > { %v810_v49 = vmax.f32 %v761_v47, 0.0 }
 0x1f2   : > { %v1091_v50 = vpack.c.bf16 %v812_v46, %v811_v45 }
 0x1f3   : > { %v1086_v51 = vpack.c.bf16 %v810_v49, %v809_v48 }
 0x1f4   : > { %1115 = vst [vmem:[%s1466_s26 + $0x18] sm:$0xff] %v1091_v50  }
 0x1f5   : > { %1114 = vst [vmem:[%s1466_s26 + $0x10] sm:$0xff] %v1086_v51  }
 0x1fd   : > { %v1226_v52 = vpop.f32.mrb[8].mxu1 }
 0x1fe   : > { %v774_v53 = vpop.f32.mrb[9].mxu1  ;;  %v815_v55 = vmax.f32 %v1226_v52, 0.0 }
 0x1ff   : > { %v1227_v54 = vpop.f32.mrb[10].mxu1  ;;  %v813_v58 = vmax.f32 %v774_v53, 0.0 }
 0x200   : > { %v816_v56 = vmax.f32 %v1227_v54, 0.0  ;;  %v777_v57 = vpop.f32.mrb[11].mxu1 }
 0x201   : > { %v814_v59 = vmax.f32 %v777_v57, 0.0 }
 0x202   : > { %v1101_v60 = vpack.c.bf16 %v816_v56, %v815_v55 }
 0x203   : > { %v1096_v61 = vpack.c.bf16 %v814_v59, %v813_v58 }
 0x204   : > { %1117 = vst [vmem:[%s1466_s26 + $0x28] sm:$0xff] %v1101_v60  }
 0x205   : > { %1116 = vst [vmem:[%s1466_s26 + $0x20] sm:$0xff] %v1096_v61  }
 0x20d   : > { %v1230_v62 = vpop.f32.mrb[12].mxu1 }
 0x20e   : > { %v790_v63 = vpop.f32.mrb[13].mxu1  ;;  %v819_v1 = vmax.f32 %v1230_v62, 0.0 }
 0x20f   : > { %v1231_v0 = vpop.f32.mrb[14].mxu1  ;;  %v817_v4 = vmax.f32 %v790_v63, 0.0 }
 0x210   : > { %v820_v2 = vmax.f32 %v1231_v0, 0.0  ;;  %v793_v3 = vpop.f32.mrb[15].mxu1 }
 0x211   : > { %v818_v5 = vmax.f32 %v793_v3, 0.0 }
 0x212   : > { %v1111_v6 = vpack.c.bf16 %v820_v2, %v819_v1 }
 0x213   : > { %v1106_v7 = vpack.c.bf16 %v818_v5, %v817_v4 }
 0x214   : > { %1119 = vst [vmem:[%s1466_s26 + $0x38] sm:$0xff] %v1111_v6  }
 0x215   : > { %1118 = vst [vmem:[%s1466_s26 + $0x30] sm:$0xff] %v1106_v7  }
 0x216 PF: > { %s13_s14 = sadd.s32 1, %s1326_s14   ;;  %s1489_s12 = smov %s1322_s13 }
 0x217   : > { %p10_p5 = scmp.ge.s32.totalorder %s13_s14, 4   ;;  %s1490_s13 = smov %s1492_s15 }
 0x219   :  { %12 = sbr.rel (!%p10_p5) target bundleno = 2 (0x2), region = 73 }

// kernel: gae_forward.15
= control target key start
LH: loop header
LB: loop body
LE: loop exit
PB: predicated region body
PF: predicated region fallthrough
CT: control target
= control target key end

     0   :  { %s669_s9 = smov 0   ;;  %s671_s10 = smov 0   ;;  %s760_s0 = inlined_call_operand.vmem [shape: bf16[256,64], index: 0, kind: input, shape index: {}]   ;;  %s761_s1 = inlined_call_operand.vmem [shape: bf16[64,16], index: 1, kind: input, shape index: {}]   ;;  %s762_s2 = inlined_call_operand.vmem [shape: f32[256,16], index: 2, kind: output, shape index: {}]  }
   0x1   :  { %s673_s11 = smov 0  }
   0x2 LB: > { %s24_s12 = sadd.s32 1, %s648_s10  ;;  %p523_p0 = scmp.ge.s32.totalorder %s652_s11, 1  ;;  %s652_s11 = sphi %s673_s11, %s12_s11   ;;  %s648_s10 = sphi %s671_s10, %s764_s10   ;;  %s644_s9 = sphi %s669_s9, %s763_s9  }
   0x3   : > { %p26_p1 = scmp.ge.s32.totalorder %s24_s12, 2  ;;  %p136_p2 = scmp.lt.s32.totalorder %s652_s11, 3 }
   0x5   : > { %s766_s12 = smov (%p26_p1, %s24_s12), 0  ;;  %p137_p3 = pnand %p523_p0, %p136_p2 }
   0x6   : > { %v618_v0 = vld [vmem:[%s761_s1] sm:$0xff] (!%p137_p3)   ;;  %s524_s15 = sshll.u32 (!%p137_p3), %s644_s9, 4  ;;  %v619_v1 = vld [vmem:[%s761_s1 + $0x8] sm:$0xff] (!%p137_p3)   ;;  %v620_v2 = vld [vmem:[%s761_s1 + $0x10] sm:$0xff] (!%p137_p3)   ;;  %vm273_vm0 = vcmask (!%p137_p3), 523264   ;;  %vm411_vm1 = vcmask (!%p137_p3), 130048  }
   0x7   : > { %140 = sbr.rel (%p137_p3) target bundleno = 249 (0xf9), region = 28  ;;  %p166_p4 = scmp.lt.s32.totalorder (!%p137_p3), %s524_s15, 31  ;;  %562 = vmatprep.subr.bf16.mxu0 (!%p137_p3), %v618_v0  ;;  %586 = vmatprep.subr.bf16.mxu1 (!%p137_p3), %v618_v0  ;;  %v621_v3 = vld [vmem:[%s761_s1 + $0x18] sm:$0xff] (!%p137_p3)  }
   0x8   : > { %563 = vmatpush3.bf16.msra.mxu0 (!%p137_p3), %v618_v0  ;;  %590 = vmatpush3.bf16.msra.mxu1 (!%p137_p3), %v618_v0 }
   0x9   : > { %564 = vmatprep.subr.bf16.mxu0 (!%p137_p3), %v619_v1  ;;  %587 = vmatprep.subr.bf16.mxu1 (!%p137_p3), %v619_v1 }
   0xc   : > { %565 = vmatpush3.bf16.msra.mxu0 (!%p137_p3), %v619_v1  ;;  %591 = vmatpush3.bf16.msra.mxu1 (!%p137_p3), %v619_v1 }
   0xd   : > { %566 = vmatprep.subr.bf16.mxu0 (!%p137_p3), %v620_v2  ;;  %588 = vmatprep.subr.bf16.mxu1 (!%p137_p3), %v620_v2 }
   0xe   : > { %s768_s15 = smov (!%p166_p4, %s524_s15), 31 }
   0xf   : > { %s525_s20 = sshll.u32 %s768_s15, 2  ;;  %s527_s26 = sshll.u32 %s768_s15, 3 }
  0x10   : > { %s169_s25 = scalar_lea.vmem %s760_s0, %s525_s20  ;;  %567 = vmatpush3.bf16.msra.mxu0 %v620_v2  ;;  %592 = vmatpush3.bf16.msra.mxu1 %v620_v2  ;;  %s717_s29 = scalar_lea.vmem %s762_s2, %s527_s26 }
  0x11   : > { %v622_v4 = vld [vmem:[%s169_s25] sm:$0xff]   ;;  %568 = vmatprep.subr.bf16.mxu0 %v621_v3  ;;  %589 = vmatprep.subr.bf16.mxu1 %v621_v3  ;;  %v624_v6 = vld [vmem:[%s169_s25 + $0x8] sm:$0xff]   ;;  %v626_v8 = vld [vmem:[%s169_s25 + $0x10] sm:$0xff]  }
  0x12   : > { %v623_v5 = vld [vmem:[%s169_s25 + $0x20] sm:$0xff]   ;;  %570 = vmatprep.mubr.msk.bf16.mxu0 %vm273_vm0, %v622_v4  ;;  %v625_v7 = vld [vmem:[%s169_s25 + $0x28] sm:$0xff]   ;;  %v627_v9 = vld [vmem:[%s169_s25 + $0x30] sm:$0xff]  }
  0x13   : > { %578 = vmatprep.mubr.msk.bf16.mxu1 %vm273_vm0, %v623_v5  ;;  %v628_v10 = vld [vmem:[%s169_s25 + $0x18] sm:$0xff]  }
  0x14   : > { %569 = vmatpush3.bf16.msra.mxu0 %v621_v3  ;;  %593 = vmatpush3.bf16.msra.mxu1 %v621_v3  ;;  %v629_v11 = vld [vmem:[%s169_s25 + $0x38] sm:$0xff]  }
  0x17   : > { %571 = vmatmul.mubr.msk.bf16.vlgmr.msra.gmra.mrb[0].mxu0 %vm273_vm0, %v624_v6  ;;  %579 = vmatmul.mubr.msk.bf16.vlgmr.msra.gmra.mrb[0].mxu1 %vm273_vm0, %v625_v7 }
  0x18   : > { %574 = vmatprep.mubr.msk.bf16.mxu0 %vm273_vm0, %v626_v8  ;;  %582 = vmatprep.mubr.msk.bf16.mxu1 %vm273_vm0, %v627_v9 }
  0x1f   : > { %575 = vmatmul.mubr.msk.bf16.gmra.mrb[4].mxu0 %vm273_vm0, %v628_v10  ;;  %583 = vmatmul.mubr.msk.bf16.gmra.mrb[4].mxu1 %vm273_vm0, %v629_v11 }
  0xea   : > { %v572_v12 = vpop.f32.mrb[0].mxu0  ;;  %v580_v13 = vpop.f32.mrb[0].mxu1 }
  0xeb   : > { %v397_v14 = vmax.f32 %v572_v12, 0.0  ;;  %v405_v15 = vmax.f32 %v580_v13, 0.0  ;;  %v332_v16 = vpop.f32.mrb[1].mxu0  ;;  %v364_v17 = vpop.f32.mrb[1].mxu1 }
  0xec   : > { %v395_v18 = vmax.f32 %v332_v16, 0.0  ;;  %v403_v19 = vmax.f32 %v364_v17, 0.0  ;;  %v573_v20 = vpop.f32.mrb[2].mxu0  ;;  %v581_v21 = vpop.f32.mrb[2].mxu1 }
  0xed   : > { %414 = vst.msk [vmem:[%s717_s29 + $0x10] sm:$0xff] %vm411_vm1, %v397_v14  ;;  %422 = vst.msk [vmem:[%s717_s29 + $0x50] sm:$0xff] %vm411_vm1, %v405_v15  ;;  %v398_v22 = vmax.f32 %v573_v20, 0.0  ;;  %v406_v23 = vmax.f32 %v581_v21, 0.0  ;;  %v335_v24 = vpop.f32.mrb[3].mxu0  ;;  %v367_v25 = vpop.f32.mrb[3].mxu1 }
  0xee   : > { %412 = vst.msk [vmem:[%s717_s29] sm:$0xff] %vm411_vm1, %v395_v18  ;;  %420 = vst.msk [vmem:[%s717_s29 + $0x40] sm:$0xff] %vm411_vm1, %v403_v19  ;;  %v396_v26 = vmax.f32 %v335_v24, 0.0  ;;  %v404_v27 = vmax.f32 %v367_v25, 0.0 }
  0xef   : > { %415 = vst.msk [vmem:[%s717_s29 + $0x18] sm:$0xff] %vm411_vm1, %v398_v22  ;;  %423 = vst.msk [vmem:[%s717_s29 + $0x58] sm:$0xff] %vm411_vm1, %v406_v23 }
  0xf0   : > { %413 = vst.msk [vmem:[%s717_s29 + $0x8] sm:$0xff] %vm411_vm1, %v396_v26  ;;  %421 = vst.msk [vmem:[%s717_s29 + $0x48] sm:$0xff] %vm411_vm1, %v404_v27 }
  0xf2   : > { %v576_v28 = vpop.f32.mrb[4].mxu0  ;;  %v584_v29 = vpop.f32.mrb[4].mxu1 }
  0xf3   : > { %v401_v30 = vmax.f32 %v576_v28, 0.0  ;;  %v409_v31 = vmax.f32 %v584_v29, 0.0  ;;  %v348_v32 = vpop.f32.mrb[5].mxu0  ;;  %v380_v33 = vpop.f32.mrb[5].mxu1 }
  0xf4   : > { %v399_v34 = vmax.f32 %v348_v32, 0.0  ;;  %v407_v35 = vmax.f32 %v380_v33, 0.0  ;;  %v577_v36 = vpop.f32.mrb[6].mxu0  ;;  %v585_v37 = vpop.f32.mrb[6].mxu1 }
  0xf5   : > { %418 = vst.msk [vmem:[%s717_s29 + $0x30] sm:$0xff] %vm411_vm1, %v401_v30  ;;  %426 = vst.msk [vmem:[%s717_s29 + $0x70] sm:$0xff] %vm411_vm1, %v409_v31  ;;  %v402_v38 = vmax.f32 %v577_v36, 0.0  ;;  %v410_v39 = vmax.f32 %v585_v37, 0.0  ;;  %v351_v40 = vpop.f32.mrb[7].mxu0  ;;  %v383_v41 = vpop.f32.mrb[7].mxu1 }
  0xf6   : > { %416 = vst.msk [vmem:[%s717_s29 + $0x20] sm:$0xff] %vm411_vm1, %v399_v34  ;;  %424 = vst.msk [vmem:[%s717_s29 + $0x60] sm:$0xff] %vm411_vm1, %v407_v35  ;;  %v400_v42 = vmax.f32 %v351_v40, 0.0  ;;  %v408_v43 = vmax.f32 %v383_v41, 0.0 }
  0xf7   : > { %419 = vst.msk [vmem:[%s717_s29 + $0x38] sm:$0xff] %vm411_vm1, %v402_v38  ;;  %427 = vst.msk [vmem:[%s717_s29 + $0x78] sm:$0xff] %vm411_vm1, %v410_v39 }
  0xf8   : > { %417 = vst.msk [vmem:[%s717_s29 + $0x28] sm:$0xff] %vm411_vm1, %v400_v42  ;;  %425 = vst.msk [vmem:[%s717_s29 + $0x68] sm:$0xff] %vm411_vm1, %v408_v43 }
  0xf9 PF: > { %s12_s11 = sadd.s32 1, %s652_s11   ;;  %s763_s9 = smov %s648_s10 }
  0xfa   : > { %p9_p5 = scmp.ge.s32.totalorder %s12_s11, 4   ;;  %s764_s10 = smov %s766_s12 }
  0xfc   :  { %11 = sbr.rel (!%p9_p5) target bundleno = 2 (0x2), region = 61 }

// kernel: gae_forward.16
= control target key start
LH: loop header
LB: loop body
LE: loop exit
PB: predicated region body
PF: predicated region fallthrough
CT: control target
= control target key end

     0   :  { %s731_s9 = smov 0   ;;  %s733_s10 = smov 0   ;;  %s844_s0 = inlined_call_operand.vmem [shape: bf16[256,64], index: 0, kind: input, shape index: {}]   ;;  %s845_s1 = inlined_call_operand.vmem [shape: bf16[64,256], index: 1, kind: input, shape index: {}]   ;;  %s846_s2 = inlined_call_operand.vmem [shape: f32[256,256], index: 2, kind: output, shape index: {}]  }
   0x1   :  { %s735_s11 = smov 0  }
   0x2 LB: > { %s24_s12 = sadd.s32 1, %s709_s10  ;;  %p605_p0 = scmp.ge.s32.totalorder %s713_s11, 1  ;;  %s713_s11 = sphi %s735_s11, %s12_s11   ;;  %s709_s10 = sphi %s733_s10, %s848_s10   ;;  %s705_s9 = sphi %s731_s9, %s847_s9  }
   0x3   : > { %p26_p1 = scmp.ge.s32.totalorder %s24_s12, 2  ;;  %p138_p2 = scmp.lt.s32.totalorder %s713_s11, 3 }
   0x5   : > { %s850_s12 = smov (%p26_p1, %s24_s12), 0  ;;  %p139_p3 = pnand %p605_p0, %p138_p2 }
   0x6   : > { %v671_v0 = vld [vmem:[%s845_s1 + $0x4] ss:$8 sps:$4 sm:$0xff] (!%p139_p3)   ;;  %s606_s15 = sshll.u32 (!%p139_p3), %s705_s9, 4  ;;  %v673_v1 = vld [vmem:[%s845_s1] ss:$8 sps:$4 sm:$0xff] (!%p139_p3)   ;;  %v715_v2 = vmov (!%p139_p3), 0  }
   0x7   : > { %142 = sbr.rel (%p139_p3) target bundleno = 266 (0x10a), region = 28  ;;  %356 = vmatprep.mubr.bf16.mxu0 (!%p139_p3), %v715_v2  ;;  %396 = vmatprep.mubr.bf16.mxu1 (!%p139_p3), %v715_v2  ;;  %p171_p4 = scmp.lt.s32.totalorder (!%p139_p3), %s606_s15, 31  ;;  %v674_v3 = vld [vmem:[%s845_s1 + $0x14] ss:$8 sps:$4 sm:$0xff] (!%p139_p3)   ;;  %v676_v4 = vld [vmem:[%s845_s1 + $0x10] ss:$8 sps:$4 sm:$0xff] (!%p139_p3)  }
   0x8   : > { %324 = vmatprep.subr.bf16.mxu0 (!%p139_p3), %v671_v0  ;;  %638 = vmatprep.subr.bf16.mxu1 (!%p139_p3), %v671_v0  ;;  %v677_v5 = vld [vmem:[%s845_s1 + $0x24] ss:$8 sps:$4 sm:$0xff] (!%p139_p3)   ;;  %v679_v6 = vld [vmem:[%s845_s1 + $0x20] ss:$8 sps:$4 sm:$0xff] (!%p139_p3)   ;;  %v680_v7 = vld [vmem:[%s845_s1 + $0x34] ss:$8 sps:$4 sm:$0xff] (!%p139_p3)  }
   0x9   : > { %325 = vmatpush1.bf16.msra.mxu0 (!%p139_p3), %v673_v1  ;;  %642 = vmatpush1.bf16.msra.mxu1 (!%p139_p3), %v673_v1  ;;  %v682_v8 = vld [vmem:[%s845_s1 + $0x30] ss:$8 sps:$4 sm:$0xff] (!%p139_p3)   ;;  %vm299_vm0 = vcmask (!%p139_p3), 523264  }
   0xa   : > { %326 = vmatprep.subr.bf16.mxu0 (!%p139_p3), %v674_v3  ;;  %639 = vmatprep.subr.bf16.mxu1 (!%p139_p3), %v674_v3 }
   0xd   : > { %327 = vmatpush1.bf16.msra.mxu0 (!%p139_p3), %v676_v4  ;;  %643 = vmatpush1.bf16.msra.mxu1 (!%p139_p3), %v676_v4 }
   0xe   : > { %s852_s15 = smov (!%p171_p4, %s606_s15), 31  ;;  %328 = vmatprep.subr.bf16.mxu0 %v677_v5  ;;  %640 = vmatprep.subr.bf16.mxu1 %v677_v5 }
   0xf   : > { %s607_s24 = sshll.u32 %s852_s15, 2  ;;  %s637_s6 = sshll.u32 %s852_s15, 4 }
  0x10   : > { %s770_s27 = scalar_lea.vmem %s844_s0, %s607_s24  ;;  %s801_s9 = scalar_lea.vmem %s846_s2, %s637_s6 }
  0x11   : > { %329 = vmatpush1.bf16.msra.mxu0 %v679_v6  ;;  %644 = vmatpush1.bf16.msra.mxu1 %v679_v6  ;;  %v683_v9 = vld [vmem:[%s770_s27] sm:$0xff]   ;;  %v685_v11 = vld [vmem:[%s770_s27 + $0x8] sm:$0xff]   ;;  %v687_v13 = vld [vmem:[%s770_s27 + $0x10] sm:$0xff]  }
  0x12   : > { %330 = vmatprep.subr.bf16.mxu0 %v680_v7  ;;  %641 = vmatprep.subr.bf16.mxu1 %v680_v7  ;;  %v684_v10 = vld [vmem:[%s770_s27 + $0x20] sm:$0xff]   ;;  %v686_v12 = vld [vmem:[%s770_s27 + $0x28] sm:$0xff]   ;;  %v688_v14 = vld [vmem:[%s770_s27 + $0x30] sm:$0xff]  }
  0x13   : > { %v689_v15 = vld [vmem:[%s770_s27 + $0x18] sm:$0xff]  }
  0x14   : > { %v690_v16 = vld [vmem:[%s770_s27 + $0x38] sm:$0xff]  }
  0x15   : > { %331 = vmatpush1.bf16.msra.mxu0 %v682_v8  ;;  %645 = vmatpush1.bf16.msra.mxu1 %v682_v8 }
  0x18   : > { %627 = vmatmul.mubr.msk.bf16.vlgmr.msra.gmra.mrb[0].mxu0 %vm299_vm0, %v683_v9  ;;  %631 = vmatmul.mubr.msk.bf16.vlgmr.msra.gmra.mrb[0].mxu1 %vm299_vm0, %v684_v10 }
  0x19   : > { %366 = vmatprep.mubr.bf16.mxu0 %v715_v2  ;;  %406 = vmatprep.mubr.bf16.mxu1 %v715_v2 }
  0x20   : > { %628 = vmatmul.mubr.msk.bf16.gmra.mrb[4].mxu0 %vm299_vm0, %v685_v11  ;;  %632 = vmatmul.mubr.msk.bf16.gmra.mrb[4].mxu1 %vm299_vm0, %v686_v12 }
  0x21   : > { %376 = vmatprep.mubr.bf16.mxu0 %v715_v2  ;;  %416 = vmatprep.mubr.bf16.mxu1 %v715_v2 }
  0x28   : > { %629 = vmatmul.mubr.msk.bf16.gmra.mrb[8].mxu0 %vm299_vm0, %v687_v13  ;;  %633 = vmatmul.mubr.msk.bf16.gmra.mrb[8].mxu1 %vm299_vm0, %v688_v14 }
  0x29   : > { %386 = vmatprep.mubr.bf16.mxu0 %v715_v2  ;;  %426 = vmatprep.mubr.bf16.mxu1 %v715_v2 }
  0x30   : > { %630 = vmatmul.mubr.msk.bf16.gmra.mrb[12].mxu0 %vm299_vm0, %v689_v15  ;;  %634 = vmatmul.mubr.msk.bf16.gmra.mrb[12].mxu1 %vm299_vm0, %v690_v16 }
  0xeb   : > { %v358_v17 = vpop.f32.mrb[0].mxu0  ;;  %v398_v18 = vpop.f32.mrb[0].mxu1 }
  0xec   : > { %v437_v19 = vmax.f32 %v358_v17, 0.0  ;;  %v453_v20 = vmax.f32 %v398_v18, 0.0  ;;  %v360_v21 = vpop.f32.mrb[1].mxu0  ;;  %v400_v22 = vpop.f32.mrb[1].mxu1 }
  0xed   : > { %v438_v23 = vmax.f32 %v360_v21, 0.0  ;;  %v454_v24 = vmax.f32 %v400_v22, 0.0  ;;  %v362_v25 = vpop.f32.mrb[2].mxu0  ;;  %v402_v26 = vpop.f32.mrb[2].mxu1 }
  0xee   : > { %469 = vst [vmem:[%s801_s9] sm:$0xff] %v437_v19  ;;  %485 = vst [vmem:[%s801_s9 + $0x80] sm:$0xff] %v453_v20  ;;  %v439_v27 = vmax.f32 %v362_v25, 0.0  ;;  %v455_v28 = vmax.f32 %v402_v26, 0.0  ;;  %v364_v29 = vpop.f32.mrb[3].mxu0  ;;  %v404_v30 = vpop.f32.mrb[3].mxu1 }
  0xef   : > { %470 = vst [vmem:[%s801_s9 + $0x8] sm:$0xff] %v438_v23  ;;  %486 = vst [vmem:[%s801_s9 + $0x88] sm:$0xff] %v454_v24  ;;  %v440_v31 = vmax.f32 %v364_v29, 0.0  ;;  %v456_v32 = vmax.f32 %v404_v30, 0.0 }
  0xf0   : > { %471 = vst [vmem:[%s801_s9 + $0x10] sm:$0xff] %v439_v27  ;;  %487 = vst [vmem:[%s801_s9 + $0x90] sm:$0xff] %v455_v28 }
  0xf1   : > { %472 = vst [vmem:[%s801_s9 + $0x18] sm:$0xff] %v440_v31  ;;  %488 = vst [vmem:[%s801_s9 + $0x98] sm:$0xff] %v456_v32 }
  0xf3   : > { %v368_v33 = vpop.f32.mrb[4].mxu0  ;;  %v408_v34 = vpop.f32.mrb[4].mxu1 }
  0xf4   : > { %v441_v35 = vmax.f32 %v368_v33, 0.0  ;;  %v457_v36 = vmax.f32 %v408_v34, 0.0  ;;  %v370_v37 = vpop.f32.mrb[5].mxu0  ;;  %v410_v38 = vpop.f32.mrb[5].mxu1 }
  0xf5   : > { %v442_v39 = vmax.f32 %v370_v37, 0.0  ;;  %v458_v40 = vmax.f32 %v410_v38, 0.0  ;;  %v372_v41 = vpop.f32.mrb[6].mxu0  ;;  %v412_v42 = vpop.f32.mrb[6].mxu1 }
  0xf6   : > { %473 = vst [vmem:[%s801_s9 + $0x20] sm:$0xff] %v441_v35  ;;  %489 = vst [vmem:[%s801_s9 + $0xa0] sm:$0xff] %v457_v36  ;;  %v443_v43 = vmax.f32 %v372_v41, 0.0  ;;  %v459_v44 = vmax.f32 %v412_v42, 0.0  ;;  %v374_v45 = vpop.f32.mrb[7].mxu0  ;;  %v414_v46 = vpop.f32.mrb[7].mxu1 }
  0xf7   : > { %474 = vst [vmem:[%s801_s9 + $0x28] sm:$0xff] %v442_v39  ;;  %490 = vst [vmem:[%s801_s9 + $0xa8] sm:$0xff] %v458_v40  ;;  %v444_v47 = vmax.f32 %v374_v45, 0.0  ;;  %v460_v48 = vmax.f32 %v414_v46, 0.0 }
  0xf8   : > { %475 = vst [vmem:[%s801_s9 + $0x30] sm:$0xff] %v443_v43  ;;  %491 = vst [vmem:[%s801_s9 + $0xb0] sm:$0xff] %v459_v44 }
  0xf9   : > { %476 = vst [vmem:[%s801_s9 + $0x38] sm:$0xff] %v444_v47  ;;  %492 = vst [vmem:[%s801_s9 + $0xb8] sm:$0xff] %v460_v48 }
  0xfb   : > { %v378_v49 = vpop.f32.mrb[8].mxu0  ;;  %v418_v50 = vpop.f32.mrb[8].mxu1 }
  0xfc   : > { %v445_v51 = vmax.f32 %v378_v49, 0.0  ;;  %v461_v52 = vmax.f32 %v418_v50, 0.0  ;;  %v380_v53 = vpop.f32.mrb[9].mxu0  ;;  %v420_v54 = vpop.f32.mrb[9].mxu1 }
  0xfd   : > { %v446_v55 = vmax.f32 %v380_v53, 0.0  ;;  %v462_v56 = vmax.f32 %v420_v54, 0.0  ;;  %v382_v57 = vpop.f32.mrb[10].mxu0  ;;  %v422_v58 = vpop.f32.mrb[10].mxu1 }
  0xfe   : > { %477 = vst [vmem:[%s801_s9 + $0x40] sm:$0xff] %v445_v51  ;;  %493 = vst [vmem:[%s801_s9 + $0xc0] sm:$0xff] %v461_v52  ;;  %v447_v59 = vmax.f32 %v382_v57, 0.0  ;;  %v463_v60 = vmax.f32 %v422_v58, 0.0  ;;  %v384_v61 = vpop.f32.mrb[11].mxu0  ;;  %v424_v62 = vpop.f32.mrb[11].mxu1 }
  0xff   : > { %478 = vst [vmem:[%s801_s9 + $0x48] sm:$0xff] %v446_v55  ;;  %494 = vst [vmem:[%s801_s9 + $0xc8] sm:$0xff] %v462_v56  ;;  %v448_v63 = vmax.f32 %v384_v61, 0.0  ;;  %v464_v0 = vmax.f32 %v424_v62, 0.0 }
 0x100   : > { %479 = vst [vmem:[%s801_s9 + $0x50] sm:$0xff] %v447_v59  ;;  %495 = vst [vmem:[%s801_s9 + $0xd0] sm:$0xff] %v463_v60 }
 0x101   : > { %480 = vst [vmem:[%s801_s9 + $0x58] sm:$0xff] %v448_v63  ;;  %496 = vst [vmem:[%s801_s9 + $0xd8] sm:$0xff] %v464_v0 }
 0x103   : > { %v388_v1 = vpop.f32.mrb[12].mxu0  ;;  %v428_v2 = vpop.f32.mrb[12].mxu1 }
 0x104   : > { %v449_v3 = vmax.f32 %v388_v1, 0.0  ;;  %v465_v4 = vmax.f32 %v428_v2, 0.0  ;;  %v390_v5 = vpop.f32.mrb[13].mxu0  ;;  %v430_v6 = vpop.f32.mrb[13].mxu1 }
 0x105   : > { %v450_v7 = vmax.f32 %v390_v5, 0.0  ;;  %v466_v8 = vmax.f32 %v430_v6, 0.0  ;;  %v392_v9 = vpop.f32.mrb[14].mxu0  ;;  %v432_v10 = vpop.f32.mrb[14].mxu1 }
 0x106   : > { %481 = vst [vmem:[%s801_s9 + $0x60] sm:$0xff] %v449_v3  ;;  %497 = vst [vmem:[%s801_s9 + $0xe0] sm:$0xff] %v465_v4  ;;  %v451_v11 = vmax.f32 %v392_v9, 0.0  ;;  %v467_v12 = vmax.f32 %v432_v10, 0.0  ;;  %v394_v13 = vpop.f32.mrb[15].mxu0  ;;  %v434_v14 = vpop.f32.mrb[15].mxu1 }
 0x107   : > { %482 = vst [vmem:[%s801_s9 + $0x68] sm:$0xff] %v450_v7  ;;  %498 = vst [vmem:[%s801_s9 + $0xe8] sm:$0xff] %v466_v8  ;;  %v452_v15 = vmax.f32 %v394_v13, 0.0  ;;  %v468_v16 = vmax.f32 %v434_v14, 0.0 }
 0x108   : > { %483 = vst [vmem:[%s801_s9 + $0x70] sm:$0xff] %v451_v11  ;;  %499 = vst [vmem:[%s801_s9 + $0xf0] sm:$0xff] %v467_v12 }
 0x109   : > { %484 = vst [vmem:[%s801_s9 + $0x78] sm:$0xff] %v452_v15  ;;  %500 = vst [vmem:[%s801_s9 + $0xf8] sm:$0xff] %v468_v16 }
 0x10a PF: > { %s12_s11 = sadd.s32 1, %s713_s11   ;;  %s847_s9 = smov %s709_s10 }
 0x10b   : > { %p9_p5 = scmp.ge.s32.totalorder %s12_s11, 4   ;;  %s848_s10 = smov %s850_s12 }
 0x10d   :  { %11 = sbr.rel (!%p9_p5) target bundleno = 2 (0x2), region = 61 }

</bundles_post_ra>
